<compile_context>
chip_gen: v6e
topology: v6e:2x2x1
jax: 0.10.0
libtpu: 0.0.40
codegen_flags: <defaults>
</compile_context>

<pallas_src>
import functools

import jax
import jax.numpy as jnp
from jax.experimental import pallas as pl
from jax.experimental.pallas import tpu as pltpu

IN_DIM = 20
K_PAD = 32          # padded contraction dim of the first matmul
HIDDEN = 512
OUT_PAD = 128       # lane-dense padded output width (real output is column 0)
TILE_M = 128        # batch tile (multiple of 8; fine on v5e/v6e/v7x at these sizes)


def regressor_kernel(x_ref,
                     w1_ref, b1_ref,
                     w2_ref, b2_ref,
                     w3_ref, b3_ref,
                     w4_ref, b4_ref,
                     o_ref):
    # x tile: (TILE_M, K_PAD) bf16
    x = x_ref[...]

    # Linear(20,512,bias=False) + folded BatchNorm1d + ReLU
    h = jnp.dot(x, w1_ref[...], preferred_element_type=jnp.float32)
    h = jnp.maximum(h + b1_ref[...], 0.0)

    # Linear(512,512,bias=False) + folded BN + Dropout(identity) + ReLU
    h = jnp.dot(h.astype(jnp.bfloat16), w2_ref[...],
                preferred_element_type=jnp.float32)
    h = jnp.maximum(h + b2_ref[...], 0.0)

    # Linear(512,512,bias=False) + folded BN + Dropout(identity) + ReLU
    h = jnp.dot(h.astype(jnp.bfloat16), w3_ref[...],
                preferred_element_type=jnp.float32)
    h = jnp.maximum(h + b3_ref[...], 0.0)

    # Linear(512,1) + Sigmoid  (output columns padded to 128; col 0 is real)
    y = jnp.dot(h.astype(jnp.bfloat16), w4_ref[...],
                preferred_element_type=jnp.float32) + b4_ref[...]
    o_ref[...] = jax.nn.sigmoid(y)


def make_params(key, in_dim=IN_DIM, hidden=HIDDEN, eps=1e-5):
    k1, k2, k3, k4, k5 = jax.random.split(key, 5)

    def lin_init(k, fan_in, fan_out):
        # Stored as (in, out) so the kernel computes x @ W (== x @ W_torch.T).
        bound = 1.0 / jnp.sqrt(fan_in)
        return jax.random.uniform(k, (fan_in, fan_out), jnp.float32, -bound, bound)

    w1 = lin_init(k1, in_dim, hidden)
    w2 = lin_init(k2, hidden, hidden)
    w3 = lin_init(k3, hidden, hidden)
    w4 = lin_init(k4, hidden, 1)
    b4 = jax.random.uniform(k5, (1, 1), jnp.float32,
                            -1.0 / jnp.sqrt(hidden), 1.0 / jnp.sqrt(hidden))

    # BatchNorm1d fold (inference mode, module init: gamma=1, beta=0,
    # running_mean=0, running_var=1): scale = gamma/sqrt(var+eps),
    # shift = beta - mean*scale. W' = W * scale (per output column).
    def bn_fold(w):
        gamma = jnp.ones((hidden,), jnp.float32)
        beta = jnp.zeros((hidden,), jnp.float32)
        mean = jnp.zeros((hidden,), jnp.float32)
        var = jnp.ones((hidden,), jnp.float32)
        scale = gamma / jnp.sqrt(var + eps)
        shift = beta - mean * scale
        return w * scale[None, :], shift.reshape(1, hidden)

    w1f, s1 = bn_fold(w1)
    w2f, s2 = bn_fold(w2)
    w3f, s3 = bn_fold(w3)

    # Pad first-layer contraction dim 20 -> 32 (zeros contribute nothing).
    w1p = jnp.zeros((K_PAD, hidden), jnp.float32).at[:in_dim, :].set(w1f)

    # Pad last layer 1 -> 128 output columns (lane-dense store); col 0 real.
    w4p = jnp.zeros((hidden, OUT_PAD), jnp.float32).at[:, :1].set(w4)
    b4p = jnp.zeros((1, OUT_PAD), jnp.float32).at[:, :1].set(b4)

    # Weights in bf16 (halves HBM traffic, bf16-native MXU); shifts stay f32.
    return (w1p.astype(jnp.bfloat16), s1,
            w2f.astype(jnp.bfloat16), s2,
            w3f.astype(jnp.bfloat16), s3,
            w4p.astype(jnp.bfloat16), b4p)


@functools.partial(jax.jit, static_argnums=(2,))
def regressor_forward(x, params, tile_m=TILE_M):
    N = x.shape[0]
    n_pad = pl.cdiv(N, tile_m) * tile_m

    # Pad batch to a tile multiple and contraction dim 20 -> 32; cast to bf16.
    xp = jnp.zeros((n_pad, K_PAD), jnp.bfloat16)
    xp = xp.at[:N, :x.shape[1]].set(x.astype(jnp.bfloat16))

    const = lambda i: (0, 0)   # weights / shifts stay VMEM-resident
    in_specs = [
        pl.BlockSpec((tile_m, K_PAD), lambda i: (i, 0)),      # x tile
        pl.BlockSpec((K_PAD, HIDDEN), const),                 # w1
        pl.BlockSpec((1, HIDDEN), const),                     # shift1
        pl.BlockSpec((HIDDEN, HIDDEN), const),                # w2
        pl.BlockSpec((1, HIDDEN), const),                     # shift2
        pl.BlockSpec((HIDDEN, HIDDEN), const),                # w3
        pl.BlockSpec((1, HIDDEN), const),                     # shift3
        pl.BlockSpec((HIDDEN, OUT_PAD), const),               # w4 (padded)
        pl.BlockSpec((1, OUT_PAD), const),                    # b4 (padded)
    ]
    out = pl.pallas_call(
        regressor_kernel,
        out_shape=jax.ShapeDtypeStruct((n_pad, OUT_PAD), jnp.float32),
        grid=(n_pad // tile_m,),
        in_specs=in_specs,
        out_specs=pl.BlockSpec((tile_m, OUT_PAD), lambda i: (i, 0)),
        compiler_params=pltpu.CompilerParams(
            dimension_semantics=("parallel",)),
    )(xp, *params)

    # Real output is column 0; drop batch padding; torch.squeeze(dim=1).
    return out[:N, 0]


if __name__ == "__main__":
    key = jax.random.PRNGKey(0)
    kx, kp = jax.random.split(key)

    N = 8
    x = jax.random.normal(kx, (N, IN_DIM), jnp.float32)
    params = make_params(kp)

    y = regressor_forward(x, params)
    jax.block_until_ready(y)

    assert y.shape == (N,), y.shape
    assert bool(jnp.all((y >= 0.0) & (y <= 1.0)))
    print("KERNEL_OK")
</pallas_src>

<mosaic_0001>
module attributes {stable_mosaic.version = 11 : i64} {
  func.func @regressor_kernel(%arg0: i32, %arg1: memref<128x32xbf16, #tpu.memory_space<vmem>>, %arg2: memref<32x512xbf16, #tpu.memory_space<vmem>>, %arg3: memref<1x512xf32, #tpu.memory_space<vmem>>, %arg4: memref<512x512xbf16, #tpu.memory_space<vmem>>, %arg5: memref<1x512xf32, #tpu.memory_space<vmem>>, %arg6: memref<512x512xbf16, #tpu.memory_space<vmem>>, %arg7: memref<1x512xf32, #tpu.memory_space<vmem>>, %arg8: memref<512x128xbf16, #tpu.memory_space<vmem>>, %arg9: memref<1x128xf32, #tpu.memory_space<vmem>>, %arg10: memref<128x128xf32, #tpu.memory_space<vmem>>) attributes {dimension_semantics = [#tpu.dimension_semantics<parallel>], iteration_bounds = array<i64: 1>, scalar_prefetch = 0 : i64, scratch_operands = 0 : i64, tpu.core_type = #tpu.core_type<tc>, window_params = [{transform_indices = @transform_0, window_bounds = array<i64: 128, 32>}, {pipeline_mode = #tpu.pipeline_mode<synchronous>, transform_indices = @transform_1, window_bounds = array<i64: 32, 512>}, {pipeline_mode = #tpu.pipeline_mode<synchronous>, transform_indices = @transform_2, window_bounds = array<i64: 1, 512>}, {pipeline_mode = #tpu.pipeline_mode<synchronous>, transform_indices = @transform_3, window_bounds = array<i64: 512, 512>}, {pipeline_mode = #tpu.pipeline_mode<synchronous>, transform_indices = @transform_4, window_bounds = array<i64: 1, 512>}, {pipeline_mode = #tpu.pipeline_mode<synchronous>, transform_indices = @transform_5, window_bounds = array<i64: 512, 512>}, {pipeline_mode = #tpu.pipeline_mode<synchronous>, transform_indices = @transform_6, window_bounds = array<i64: 1, 512>}, {pipeline_mode = #tpu.pipeline_mode<synchronous>, transform_indices = @transform_7, window_bounds = array<i64: 512, 128>}, {pipeline_mode = #tpu.pipeline_mode<synchronous>, transform_indices = @transform_8, window_bounds = array<i64: 1, 128>}, {transform_indices = @transform_9, window_bounds = array<i64: 128, 128>}]} {
    %c0 = arith.constant 0 : index
    %c0_0 = arith.constant 0 : index
    %0 = vector.load %arg1[%c0, %c0_0] : memref<128x32xbf16, #tpu.memory_space<vmem>>, vector<128x32xbf16>
    %c0_1 = arith.constant 0 : index
    %c0_2 = arith.constant 0 : index
    %1 = vector.load %arg2[%c0_1, %c0_2] : memref<32x512xbf16, #tpu.memory_space<vmem>>, vector<32x512xbf16>
    %cst = arith.constant dense<0.000000e+00> : vector<128x512xf32>
    %2 = tpu.matmul %0, %1, %cst {dimension_numbers = #tpu.dot_dimension_numbers<[1], [0], [0], [1], [0, 0, 1, 1], [], []>} : vector<128x32xbf16>, vector<32x512xbf16>, vector<128x512xf32> -> vector<128x512xf32>
    %c0_3 = arith.constant 0 : index
    %c0_4 = arith.constant 0 : index
    %3 = vector.load %arg3[%c0_3, %c0_4] : memref<1x512xf32, #tpu.memory_space<vmem>>, vector<1x512xf32>
    %4 = vector.broadcast %3 : vector<1x512xf32> to vector<128x512xf32>
    %5 = arith.addf %2, %4 : vector<128x512xf32>
    %cst_5 = arith.constant 0.000000e+00 : f32
    %6 = vector.broadcast %cst_5 : f32 to vector<128x512xf32>
    %7 = arith.maximumf %5, %6 : vector<128x512xf32>
    %8 = arith.truncf %7 : vector<128x512xf32> to vector<128x512xbf16>
    %c0_6 = arith.constant 0 : index
    %c0_7 = arith.constant 0 : index
    %9 = vector.load %arg4[%c0_6, %c0_7] : memref<512x512xbf16, #tpu.memory_space<vmem>>, vector<512x512xbf16>
    %cst_8 = arith.constant dense<0.000000e+00> : vector<128x512xf32>
    %10 = tpu.matmul %8, %9, %cst_8 {dimension_numbers = #tpu.dot_dimension_numbers<[1], [0], [0], [1], [0, 0, 1, 1], [], []>} : vector<128x512xbf16>, vector<512x512xbf16>, vector<128x512xf32> -> vector<128x512xf32>
    %c0_9 = arith.constant 0 : index
    %c0_10 = arith.constant 0 : index
    %11 = vector.load %arg5[%c0_9, %c0_10] : memref<1x512xf32, #tpu.memory_space<vmem>>, vector<1x512xf32>
    %12 = vector.broadcast %11 : vector<1x512xf32> to vector<128x512xf32>
    %13 = arith.addf %10, %12 : vector<128x512xf32>
    %cst_11 = arith.constant 0.000000e+00 : f32
    %14 = vector.broadcast %cst_11 : f32 to vector<128x512xf32>
    %15 = arith.maximumf %13, %14 : vector<128x512xf32>
    %16 = arith.truncf %15 : vector<128x512xf32> to vector<128x512xbf16>
    %c0_12 = arith.constant 0 : index
    %c0_13 = arith.constant 0 : index
    %17 = vector.load %arg6[%c0_12, %c0_13] : memref<512x512xbf16, #tpu.memory_space<vmem>>, vector<512x512xbf16>
    %cst_14 = arith.constant dense<0.000000e+00> : vector<128x512xf32>
    %18 = tpu.matmul %16, %17, %cst_14 {dimension_numbers = #tpu.dot_dimension_numbers<[1], [0], [0], [1], [0, 0, 1, 1], [], []>} : vector<128x512xbf16>, vector<512x512xbf16>, vector<128x512xf32> -> vector<128x512xf32>
    %c0_15 = arith.constant 0 : index
    %c0_16 = arith.constant 0 : index
    %19 = vector.load %arg7[%c0_15, %c0_16] : memref<1x512xf32, #tpu.memory_space<vmem>>, vector<1x512xf32>
    %20 = vector.broadcast %19 : vector<1x512xf32> to vector<128x512xf32>
    %21 = arith.addf %18, %20 : vector<128x512xf32>
    %cst_17 = arith.constant 0.000000e+00 : f32
    %22 = vector.broadcast %cst_17 : f32 to vector<128x512xf32>
    %23 = arith.maximumf %21, %22 : vector<128x512xf32>
    %24 = arith.truncf %23 : vector<128x512xf32> to vector<128x512xbf16>
    %c0_18 = arith.constant 0 : index
    %c0_19 = arith.constant 0 : index
    %25 = vector.load %arg8[%c0_18, %c0_19] : memref<512x128xbf16, #tpu.memory_space<vmem>>, vector<512x128xbf16>
    %cst_20 = arith.constant dense<0.000000e+00> : vector<128x128xf32>
    %26 = tpu.matmul %24, %25, %cst_20 {dimension_numbers = #tpu.dot_dimension_numbers<[1], [0], [0], [1], [0, 0, 1, 1], [], []>} : vector<128x512xbf16>, vector<512x128xbf16>, vector<128x128xf32> -> vector<128x128xf32>
    %c0_21 = arith.constant 0 : index
    %c0_22 = arith.constant 0 : index
    %27 = vector.load %arg9[%c0_21, %c0_22] : memref<1x128xf32, #tpu.memory_space<vmem>>, vector<1x128xf32>
    %28 = vector.broadcast %27 : vector<1x128xf32> to vector<128x128xf32>
    %29 = arith.addf %26, %28 : vector<128x128xf32>
    %30 = arith.negf %29 : vector<128x128xf32>
    %31 = math.exp %30 : vector<128x128xf32>
    %cst_23 = arith.constant 1.000000e+00 : f32
    %32 = vector.broadcast %cst_23 : f32 to vector<128x128xf32>
    %33 = arith.addf %32, %31 : vector<128x128xf32>
    %34 = arith.divf %32, %33 : vector<128x128xf32>
    %c0_24 = arith.constant 0 : index
    %c0_25 = arith.constant 0 : index
    %35 = vector.load %arg10[%c0_24, %c0_25] : memref<128x128xf32, #tpu.memory_space<vmem>>, vector<128x128xf32>
    tpu.vector_store %arg10[%c0_24, %c0_25], %34 {strides = array<i32>} : memref<128x128xf32, #tpu.memory_space<vmem>>, vector<128x128xf32>,
    return
  }
  func.func @transform_0(%arg0: i32) -> (i32, i32) {
    %c0_i32 = arith.constant 0 : i32
    %c0_i32_0 = arith.constant 0 : i32
    return %arg0, %c0_i32 : i32, i32
  }
  func.func @transform_1(%arg0: i32) -> (i32, i32) {
    %c0_i32 = arith.constant 0 : i32
    %c0_i32_0 = arith.constant 0 : i32
    %c0_i32_1 = arith.constant 0 : i32
    return %c0_i32, %c0_i32_0 : i32, i32
  }
  func.func @transform_2(%arg0: i32) -> (i32, i32) {
    %c0_i32 = arith.constant 0 : i32
    %c0_i32_0 = arith.constant 0 : i32
    %c0_i32_1 = arith.constant 0 : i32
    return %c0_i32, %c0_i32_0 : i32, i32
  }
  func.func @transform_3(%arg0: i32) -> (i32, i32) {
    %c0_i32 = arith.constant 0 : i32
    %c0_i32_0 = arith.constant 0 : i32
    %c0_i32_1 = arith.constant 0 : i32
    return %c0_i32, %c0_i32_0 : i32, i32
  }
  func.func @transform_4(%arg0: i32) -> (i32, i32) {
    %c0_i32 = arith.constant 0 : i32
    %c0_i32_0 = arith.constant 0 : i32
    %c0_i32_1 = arith.constant 0 : i32
    return %c0_i32, %c0_i32_0 : i32, i32
  }
  func.func @transform_5(%arg0: i32) -> (i32, i32) {
    %c0_i32 = arith.constant 0 : i32
    %c0_i32_0 = arith.constant 0 : i32
    %c0_i32_1 = arith.constant 0 : i32
    return %c0_i32, %c0_i32_0 : i32, i32
  }
  func.func @transform_6(%arg0: i32) -> (i32, i32) {
    %c0_i32 = arith.constant 0 : i32
    %c0_i32_0 = arith.constant 0 : i32
    %c0_i32_1 = arith.constant 0 : i32
    return %c0_i32, %c0_i32_0 : i32, i32
  }
  func.func @transform_7(%arg0: i32) -> (i32, i32) {
    %c0_i32 = arith.constant 0 : i32
    %c0_i32_0 = arith.constant 0 : i32
    %c0_i32_1 = arith.constant 0 : i32
    return %c0_i32, %c0_i32_0 : i32, i32
  }
  func.func @transform_8(%arg0: i32) -> (i32, i32) {
    %c0_i32 = arith.constant 0 : i32
    %c0_i32_0 = arith.constant 0 : i32
    %c0_i32_1 = arith.constant 0 : i32
    return %c0_i32, %c0_i32_0 : i32, i32
  }
  func.func @transform_9(%arg0: i32) -> (i32, i32) {
    %c0_i32 = arith.constant 0 : i32
    %c0_i32_0 = arith.constant 0 : i32
    return %arg0, %c0_i32 : i32, i32
  }
}

</mosaic_0001>

<bundles_post_ra>
// kernel: regressor_forward.1
= control target key start
LH: loop header
LB: loop body
LE: loop exit
PB: predicated region body
PF: predicated region fallthrough
CT: control target
= control target key end

     0   :  { %14 = vsyncpa [#allocation3], 0  ;;  %s5729_s0 = inlined_call_operand.vmem [shape: bf16[128,32], index: 0, kind: input, shape index: {}]   ;;  %s5730_s1 = inlined_call_operand.vmem [shape: bf16[32,512], index: 1, kind: input, shape index: {}]   ;;  %s5731_s2 = inlined_call_operand.vmem [shape: f32[1,512], index: 2, kind: input, shape index: {}]   ;;  %s5732_s3 = inlined_call_operand.hbm [shape: bf16[512,512], index: 3, kind: input, shape index: {}]   ;;  %s5733_s4 = inlined_call_operand.vmem [shape: f32[1,512], index: 4, kind: input, shape index: {}]   ;;  %s5734_s5 = inlined_call_operand.hbm [shape: bf16[512,512], index: 5, kind: input, shape index: {}]   ;;  %s5735_s6 = inlined_call_operand.vmem [shape: f32[1,512], index: 6, kind: input, shape index: {}]   ;;  %s5736_s7 = inlined_call_operand.hbm [shape: bf16[512,128], index: 7, kind: input, shape index: {}]   ;;  %s5737_s8 = inlined_call_operand.vmem [shape: f32[1,128], index: 8, kind: input, shape index: {}]   ;;  %s5738_s9 = inlined_call_operand.vmem [shape: f32[128,128], index: 9, kind: output, shape index: {}]  }
   0x1   :  { %15 = vsyncpa [#allocation5], 0  ;;  %s4835_s30 = smov [#allocation4]   ;;  %s4836_s11 = smov [#allocation2]  }
   0x2   :  { %s41_s10 = sshll.u32 %s4835_s30, 4  ;;  %s27_s12 = sshll.u32 %s4836_s11, 4  ;;  %s42_s10 = int_to_ptr.vmem [resolvable:$true] %s41_s10  ;;  %s28_s12 = int_to_ptr.vmem [resolvable:$true] %s27_s12 }
   0x3   :  { %s4779_s13 = scalar_lea.vmem %s42_s10, 16384  ;;  %p4784_p1 = scmp.lt.s32.totalorder %s42_s10, %s42_s10 }
   0x4   :  { %p4780_p0 = scmp.ne.s32.totalorder %s42_s10, %s4779_s13  ;;  %p4785_p2 = scmp.lt.s32.totalorder %s4779_s13, %s4779_s13 }
   0x6   :  { %p4786_p3 = por %p4785_p2, %p4784_p1 }
   0x8   :  { %p4787_p4 = pnand %p4786_p3, %p4780_p0 }
   0xa   :  { %4790 = shalt.err (!%p4787_p4)
}
   0xb   :  { %s4837_s14 = smov 256   ;;  %s4838_s15 = smov 16  }
   0xc   :  { %47 = dma.hbm_to_vmem [thread:$0]  %s5734_s5, 16384, %s42_s10, [#allocation5], %s4837_s14, %s4837_s14, %s4838_s15  }
   0xd   :  { %s4799_s18 = scalar_lea.vmem %s28_s12, 16384  ;;  %p4804_p6 = scmp.lt.s32.totalorder %s28_s12, %s28_s12 }
   0xe   :  { %p4800_p5 = scmp.ne.s32.totalorder %s28_s12, %s4799_s18  ;;  %p4805_p7 = scmp.lt.s32.totalorder %s4799_s18, %s4799_s18 }
  0x10   :  { %p4806_p8 = por %p4805_p7, %p4804_p6 }
  0x12   :  { %p4807_p9 = pnand %p4806_p8, %p4800_p5 }
  0x14   :  { %4810 = shalt.err (!%p4807_p9)
}
  0x15   :  { %33 = dma.hbm_to_vmem [thread:$0]  %s5732_s3, 16384, %s28_s12, [#allocation3], %s4837_s14, %s4837_s14, %s4838_s15  }
  0x16   :  { %s4839_s21 = smov [#allocation6]  }
  0x17   :  { %s55_s22 = sshll.u32 %s4839_s21, 4  ;;  %s56_s22 = int_to_ptr.vmem [resolvable:$true] %s55_s22 }
  0x18   :  { %s4819_s23 = scalar_lea.vmem %s56_s22, 4096  ;;  %p4824_p11 = scmp.lt.s32.totalorder %s56_s22, %s56_s22 }
  0x19   :  { %p4820_p10 = scmp.ne.s32.totalorder %s56_s22, %s4819_s23  ;;  %p4825_p12 = scmp.lt.s32.totalorder %s4819_s23, %s4819_s23 }
  0x1b   :  { %p4826_p13 = por %p4825_p12, %p4824_p11 }
  0x1d   :  { %p4827_p0 = pnand %p4826_p13, %p4820_p10 }
  0x1f   :  { %4830 = shalt.err (!%p4827_p0)
}
  0x20   :  { %s4840_s5 = smov 64   ;;  %s4841_s24 = smov 4  }
  0x21   :  { %61 = dma.hbm_to_vmem [thread:$0]  %s5736_s7, 4096, %s56_s22, [#allocation5], %s4840_s5, %s4840_s5, %s4841_s24  }
  0x22   :  { %4831 = dma.done.wait [#allocation3], 16384  }
  0x23   :  { %4832 = vsyncadd [#allocation3], 4294950912 }
  0x24   :  { %4833 = dma.done.wait [#allocation5], 20480  }
  0x25   :  { %4834 = vsyncadd [#allocation5], 4294946816  ;;  %v4842_v0 = vmov 0   ;;  %v4271_v1 = vld [vmem:[%s5730_s1 + $0x24] ss:$16 sps:$4 sm:$0xff]   ;;  %vm200_vm0 = vcmask 261120  }
  0x26   :  { %257 = vmatprep.mubr.bf16.mxu0 %v4842_v0  ;;  %370 = vmatprep.mubr.bf16.mxu1 %v4842_v0  ;;  %v4273_v2 = vld [vmem:[%s5730_s1 + $0x2c] ss:$16 sps:$4 sm:$0xff]   ;;  %v4275_v3 = vld [vmem:[%s5730_s1 + $0x20] ss:$16 sps:$4 sm:$0xff]   ;;  %v4276_v4 = vld [vmem:[%s5730_s1 + $0x28] ss:$16 sps:$4 sm:$0xff]  }
  0x27   :  { %237 = vmatprep.subr.bf16.mxu0 %v4271_v1  ;;  %350 = vmatprep.subr.bf16.mxu1 %v4273_v2  ;;  %v4277_v5 = vld [vmem:[%s5730_s1 + $0x4] ss:$16 sps:$4 sm:$0xff]   ;;  %v4279_v6 = vld [vmem:[%s5730_s1 + $0xc] ss:$16 sps:$4 sm:$0xff]   ;;  %v4281_v7 = vld [vmem:[%s5730_s1] ss:$16 sps:$4 sm:$0xff]  }
  0x28   :  { %238 = vmatpush1.bf16.msra.mxu0 %v4275_v3  ;;  %351 = vmatpush1.bf16.msra.mxu1 %v4276_v4  ;;  %v4282_v8 = vld [vmem:[%s5730_s1 + $0x8] ss:$16 sps:$4 sm:$0xff]   ;;  %v4283_v9 = vld [vmem:[%s5729_s0] sm:$0xff]   ;;  %v4285_v23 = vld [vmem:[%s5729_s0 + $0x10] sm:$0xff]  }
  0x29   :  { %239 = vmatprep.subr.bf16.mxu0 %v4277_v5  ;;  %352 = vmatprep.subr.bf16.mxu1 %v4279_v6  ;;  %v4284_v10 = vld [vmem:[%s5729_s0 + $0x8] sm:$0xff]   ;;  %v4291_v11 = vld [vmem:[#allocation2 + $0xe0] ss:$16 sps:$4 sm:$0xff]   ;;  %v4293_v12 = vld [vmem:[#allocation2 + $0xe4] ss:$16 sps:$4 sm:$0xff]  }
  0x2a   :  { %v4294_v13 = vld [vmem:[#allocation2 + $0x2e0] ss:$16 sps:$4 sm:$0xff]   ;;  %v4296_v14 = vld [vmem:[#allocation2 + $0x2e4] ss:$16 sps:$4 sm:$0xff]   ;;  %v4286_v32 = vld [vmem:[%s5729_s0 + $0x18] sm:$0xff]  }
  0x2b   :  { %v4297_v15 = vld [vmem:[#allocation2 + $0xc0] ss:$16 sps:$4 sm:$0xff]   ;;  %v4299_v16 = vld [vmem:[#allocation2 + $0xc4] ss:$16 sps:$4 sm:$0xff]   ;;  %v4288_v50 = vld [vmem:[%s5729_s0 + $0x28] sm:$0xff]  }
  0x2c   :  { %240 = vmatpush1.bf16.msra.mxu0 %v4281_v7  ;;  %353 = vmatpush1.bf16.msra.mxu1 %v4282_v8  ;;  %v4300_v17 = vld [vmem:[#allocation2 + $0x2c0] ss:$16 sps:$4 sm:$0xff]   ;;  %v4302_v18 = vld [vmem:[#allocation2 + $0x2c4] ss:$16 sps:$4 sm:$0xff]   ;;  %v4290_v5 = vld [vmem:[%s5729_s0 + $0x38] sm:$0xff]  }
  0x2d   :  { %1337 = vmatprep.subr.bf16.mxu0 %v4293_v12  ;;  %1450 = vmatprep.subr.bf16.mxu1 %v4296_v14  ;;  %v4305_v19 = vld [vmem:[#allocation2 + $0xa4] ss:$16 sps:$4 sm:$0xff]   ;;  %v4303_v21 = vld [vmem:[#allocation2 + $0xa0] ss:$16 sps:$4 sm:$0xff]  }
  0x2e   :  { %v4308_v20 = vld [vmem:[#allocation2 + $0x2a4] ss:$16 sps:$4 sm:$0xff]   ;;  %v4306_v22 = vld [vmem:[#allocation2 + $0x2a0] ss:$16 sps:$4 sm:$0xff]  }
  0x2f   :  { %3814 = vmatmul.mubr.msk.bf16.vlgmr.msra.gmra.mxu0 %vm200_vm0, %v4283_v9  ;;  %3822 = vmatmul.mubr.msk.bf16.vlgmr.msra.gmra.mxu1 %vm200_vm0, %v4283_v9  ;;  %v4311_v24 = vld [vmem:[#allocation2 + $0x84] ss:$16 sps:$4 sm:$0xff]   ;;  %v4309_v26 = vld [vmem:[#allocation2 + $0x80] ss:$16 sps:$4 sm:$0xff]  }
  0x30   :  { %267 = vmatprep.mubr.bf16.mxu0 %v4842_v0  ;;  %380 = vmatprep.mubr.bf16.mxu1 %v4842_v0  ;;  %v4314_v25 = vld [vmem:[#allocation2 + $0x284] ss:$16 sps:$4 sm:$0xff]   ;;  %v4312_v27 = vld [vmem:[#allocation2 + $0x280] ss:$16 sps:$4 sm:$0xff]  }
  0x31   :  { %1338 = vmatpush1.bf16.msra.mxu0 %v4291_v11  ;;  %1451 = vmatpush1.bf16.msra.mxu1 %v4294_v13  ;;  %v4317_v28 = vld [vmem:[#allocation2 + $0x64] ss:$16 sps:$4 sm:$0xff]   ;;  %v4315_v30 = vld [vmem:[#allocation2 + $0x60] ss:$16 sps:$4 sm:$0xff]  }
  0x32   :  { %1339 = vmatprep.subr.bf16.mxu0 %v4299_v16  ;;  %1452 = vmatprep.subr.bf16.mxu1 %v4302_v18  ;;  %v4320_v29 = vld [vmem:[#allocation2 + $0x264] ss:$16 sps:$4 sm:$0xff]   ;;  %v4318_v31 = vld [vmem:[#allocation2 + $0x260] ss:$16 sps:$4 sm:$0xff]   ;;  %v4392_v18 = vld [vmem:[#allocation2 + $0x2ec] ss:$16 sps:$4 sm:$0xff]  }
  0x33   :  { %v4323_v33 = vld [vmem:[#allocation2 + $0x44] ss:$16 sps:$4 sm:$0xff]   ;;  %v4321_v35 = vld [vmem:[#allocation2 + $0x40] ss:$16 sps:$4 sm:$0xff]  }
  0x34   :  { %v4326_v34 = vld [vmem:[#allocation2 + $0x244] ss:$16 sps:$4 sm:$0xff]   ;;  %v4324_v36 = vld [vmem:[#allocation2 + $0x240] ss:$16 sps:$4 sm:$0xff]  }
  0x35   :  { %1340 = vmatpush1.bf16.msra.mxu0 %v4297_v15  ;;  %1453 = vmatpush1.bf16.msra.mxu1 %v4300_v17  ;;  %v4329_v37 = vld [vmem:[#allocation2 + $0x24] ss:$16 sps:$4 sm:$0xff]   ;;  %v4327_v39 = vld [vmem:[#allocation2 + $0x20] ss:$16 sps:$4 sm:$0xff]   ;;  %v4389_v17 = vld [vmem:[#allocation2 + $0xec] ss:$16 sps:$4 sm:$0xff]  }
  0x36   :  { %1341 = vmatprep.subr.bf16.mxu0 %v4305_v19  ;;  %1454 = vmatprep.subr.bf16.mxu1 %v4308_v20  ;;  %v4332_v38 = vld [vmem:[#allocation2 + $0x224] ss:$16 sps:$4 sm:$0xff]   ;;  %v4330_v40 = vld [vmem:[#allocation2 + $0x220] ss:$16 sps:$4 sm:$0xff]   ;;  %v100_v19 = vlaneseq }
  0x37   :  { %3815 = vmatmul.mubr.msk.bf16.gmra.mxu0 %vm200_vm0, %v4284_v10  ;;  %3823 = vmatmul.mubr.msk.bf16.gmra.mxu1 %vm200_vm0, %v4284_v10  ;;  %v4287_v41 = vld [vmem:[%s5729_s0 + $0x20] sm:$0xff]   ;;  %v4289_v59 = vld [vmem:[%s5729_s0 + $0x30] sm:$0xff]  }
  0x38   :  { %277 = vmatprep.mubr.bf16.mxu0 %v4842_v0  ;;  %390 = vmatprep.mubr.bf16.mxu1 %v4842_v0  ;;  %v4335_v42 = vld [vmem:[#allocation2 + $0x4] ss:$16 sps:$4 sm:$0xff]   ;;  %v4333_v44 = vld [vmem:[#allocation2] ss:$16 sps:$4 sm:$0xff]   ;;  %v101_v20 = vshrl.u32 %v100_v19, 7 }
  0x39   :  { %1342 = vmatpush1.bf16.msra.mxu0 %v4303_v21  ;;  %1455 = vmatpush1.bf16.msra.mxu1 %v4306_v22  ;;  %v4338_v43 = vld [vmem:[#allocation2 + $0x204] ss:$16 sps:$4 sm:$0xff]   ;;  %v4336_v45 = vld [vmem:[#allocation2 + $0x200] ss:$16 sps:$4 sm:$0xff]  }
  0x3a   :  { %1343 = vmatprep.subr.bf16.mxu0 %v4311_v24  ;;  %1456 = vmatprep.subr.bf16.mxu1 %v4314_v25  ;;  %v4341_v46 = vld [vmem:[#allocation2 + $0x1e4] ss:$16 sps:$4 sm:$0xff]   ;;  %v4339_v48 = vld [vmem:[#allocation2 + $0x1e0] ss:$16 sps:$4 sm:$0xff]   ;;  %v4982_v21 = vsub.s32 1, %v101_v20  ;;  %v4984_v22 = vsub.s32 3, %v101_v20 }
  0x3b   :  { %v4344_v47 = vld [vmem:[#allocation2 + $0x3e4] ss:$16 sps:$4 sm:$0xff]   ;;  %v4342_v49 = vld [vmem:[#allocation2 + $0x3e0] ss:$16 sps:$4 sm:$0xff]   ;;  %v4988_v24 = vsub.s32 2, %v101_v20 }
  0x3c   :  { %v4347_v51 = vld [vmem:[#allocation2 + $0x1c4] ss:$16 sps:$4 sm:$0xff]   ;;  %v4345_v52 = vld [vmem:[#allocation2 + $0x1c0] ss:$16 sps:$4 sm:$0xff]  }
  0x3d   :  { %1344 = vmatpush1.bf16.msra.mxu0 %v4309_v26  ;;  %1457 = vmatpush1.bf16.msra.mxu1 %v4312_v27  ;;  %v4348_v53 = vld [vmem:[#allocation2 + $0x3c0] ss:$16 sps:$4 sm:$0xff]   ;;  %v4350_v54 = vld [vmem:[#allocation2 + $0x3c4] ss:$16 sps:$4 sm:$0xff]  }
  0x3e   :  { %1345 = vmatprep.subr.bf16.mxu0 %v4317_v28  ;;  %1458 = vmatprep.subr.bf16.mxu1 %v4320_v29  ;;  %v4353_v55 = vld [vmem:[#allocation2 + $0x1a4] ss:$16 sps:$4 sm:$0xff]   ;;  %v4351_v57 = vld [vmem:[#allocation2 + $0x1a0] ss:$16 sps:$4 sm:$0xff]  }
  0x3f   :  { %3816 = vmatmul.mubr.msk.bf16.gmra.mxu0 %vm200_vm0, %v4285_v23  ;;  %3824 = vmatmul.mubr.msk.bf16.gmra.mxu1 %vm200_vm0, %v4285_v23  ;;  %v4356_v56 = vld [vmem:[#allocation2 + $0x3a4] ss:$16 sps:$4 sm:$0xff]   ;;  %v4354_v58 = vld [vmem:[#allocation2 + $0x3a0] ss:$16 sps:$4 sm:$0xff]   ;;  %v4986_v23 = vsub.s32 0, %v101_v20 }
  0x40   :  { %287 = vmatprep.mubr.bf16.mxu0 %v4842_v0  ;;  %400 = vmatprep.mubr.bf16.mxu1 %v4842_v0  ;;  %v4359_v60 = vld [vmem:[#allocation2 + $0x184] ss:$16 sps:$4 sm:$0xff]   ;;  %v4357_v62 = vld [vmem:[#allocation2 + $0x180] ss:$16 sps:$4 sm:$0xff]   ;;  %v4401_v20 = vld [vmem:[#allocation2 + $0xac] ss:$16 sps:$4 sm:$0xff]  }
  0x41   :  { %1346 = vmatpush1.bf16.msra.mxu0 %v4315_v30  ;;  %1459 = vmatpush1.bf16.msra.mxu1 %v4318_v31  ;;  %v4362_v61 = vld [vmem:[#allocation2 + $0x384] ss:$16 sps:$4 sm:$0xff]   ;;  %v4360_v63 = vld [vmem:[#allocation2 + $0x380] ss:$16 sps:$4 sm:$0xff]  }
  0x42   :  { %1347 = vmatprep.subr.bf16.mxu0 %v4323_v33  ;;  %1460 = vmatprep.subr.bf16.mxu1 %v4326_v34  ;;  %v4365_v1 = vld [vmem:[#allocation2 + $0x164] ss:$16 sps:$4 sm:$0xff]   ;;  %v4363_v3 = vld [vmem:[#allocation2 + $0x160] ss:$16 sps:$4 sm:$0xff]  }
  0x43   :  { %v4368_v2 = vld [vmem:[#allocation2 + $0x364] ss:$16 sps:$4 sm:$0xff]   ;;  %v4366_v4 = vld [vmem:[#allocation2 + $0x360] ss:$16 sps:$4 sm:$0xff]  }
  0x44   :  { %v4371_v6 = vld [vmem:[#allocation2 + $0x144] ss:$16 sps:$4 sm:$0xff]   ;;  %v4369_v7 = vld [vmem:[#allocation2 + $0x140] ss:$16 sps:$4 sm:$0xff]  }
  0x45   :  { %1348 = vmatpush1.bf16.msra.mxu0 %v4321_v35  ;;  %1461 = vmatpush1.bf16.msra.mxu1 %v4324_v36  ;;  %v4372_v8 = vld [vmem:[#allocation2 + $0x340] ss:$16 sps:$4 sm:$0xff]   ;;  %v4377_v9 = vld [vmem:[#allocation2 + $0x124] ss:$16 sps:$4 sm:$0xff]  }
  0x46   :  { %1349 = vmatprep.subr.bf16.mxu0 %v4329_v37  ;;  %1462 = vmatprep.subr.bf16.mxu1 %v4332_v38  ;;  %v4380_v10 = vld [vmem:[#allocation2 + $0x324] ss:$16 sps:$4 sm:$0xff]   ;;  %v4375_v11 = vld [vmem:[#allocation2 + $0x120] ss:$16 sps:$4 sm:$0xff]  }
  0x47   :  { %3817 = vmatmul.mubr.msk.bf16.gmra.mxu0 %vm200_vm0, %v4286_v32  ;;  %3825 = vmatmul.mubr.msk.bf16.gmra.mxu1 %vm200_vm0, %v4286_v32  ;;  %v4378_v12 = vld [vmem:[#allocation2 + $0x320] ss:$16 sps:$4 sm:$0xff]   ;;  %v4383_v13 = vld [vmem:[#allocation2 + $0x104] ss:$16 sps:$4 sm:$0xff]  }
  0x48   :  { %297 = vmatprep.mubr.bf16.mxu0 %v4842_v0  ;;  %410 = vmatprep.mubr.bf16.mxu1 %v4842_v0  ;;  %v4386_v14 = vld [vmem:[#allocation2 + $0x304] ss:$16 sps:$4 sm:$0xff]   ;;  %v4381_v15 = vld [vmem:[#allocation2 + $0x100] ss:$16 sps:$4 sm:$0xff]  }
  0x49   :  { %1350 = vmatpush1.bf16.msra.mxu0 %v4327_v39  ;;  %1463 = vmatpush1.bf16.msra.mxu1 %v4330_v40  ;;  %v4384_v16 = vld [vmem:[#allocation2 + $0x300] ss:$16 sps:$4 sm:$0xff]  }
  0x4a   :  { %1351 = vmatprep.subr.bf16.mxu0 %v4335_v42  ;;  %1464 = vmatprep.subr.bf16.mxu1 %v4338_v43  ;;  %v98_v25 = vld [vmem:[%s5731_s2] sm:$0xf] }
  0x4b   :  { %v4994_v28 = vrot.slane %v98_v25, %v4982_v21  ;;  %v4997_v29 = vrot.slane %v98_v25, %v4984_v22  ;;  %v5000_v30 = vrot.slane %v98_v25, %v4986_v23  ;;  %v5003_v31 = vrot.slane %v98_v25, %v4988_v24  ;;  %v4404_v25 = vld [vmem:[#allocation2 + $0x2ac] ss:$16 sps:$4 sm:$0xff]  }
  0x4d   :  { %1352 = vmatpush1.bf16.msra.mxu0 %v4333_v44  ;;  %1465 = vmatpush1.bf16.msra.mxu1 %v4336_v45 }
  0x4e   :  { %1353 = vmatprep.subr.bf16.mxu0 %v4341_v46  ;;  %1466 = vmatprep.subr.bf16.mxu1 %v4344_v47 }
  0x4f   :  { %3818 = vmatmul.mubr.msk.bf16.gmra.mxu0 %vm200_vm0, %v4287_v41  ;;  %3826 = vmatmul.mubr.msk.bf16.gmra.mxu1 %vm200_vm0, %v4287_v41 }
  0x50   :  { %307 = vmatprep.mubr.bf16.mxu0 %v4842_v0  ;;  %420 = vmatprep.mubr.bf16.mxu1 %v4842_v0 }
  0x51   :  { %1354 = vmatpush2.bf16.msra.mxu0 %v4339_v48  ;;  %1467 = vmatpush2.bf16.msra.mxu1 %v4342_v49 }
  0x52   :  { %1355 = vmatprep.subr.bf16.mxu0 %v4347_v51  ;;  %1468 = vmatprep.subr.bf16.mxu1 %v4350_v54 }
  0x55   :  { %1356 = vmatpush2.bf16.msra.mxu0 %v4345_v52  ;;  %1469 = vmatpush2.bf16.msra.mxu1 %v4348_v53 }
  0x56   :  { %1357 = vmatprep.subr.bf16.mxu0 %v4353_v55  ;;  %1470 = vmatprep.subr.bf16.mxu1 %v4356_v56 }
  0x57   :  { %3819 = vmatmul.mubr.msk.bf16.gmra.mxu0 %vm200_vm0, %v4288_v50  ;;  %3827 = vmatmul.mubr.msk.bf16.gmra.mxu1 %vm200_vm0, %v4288_v50 }
  0x58   :  { %317 = vmatprep.mubr.bf16.mxu0 %v4842_v0  ;;  %430 = vmatprep.mubr.bf16.mxu1 %v4842_v0 }
  0x59   :  { %1358 = vmatpush2.bf16.msra.mxu0 %v4351_v57  ;;  %1471 = vmatpush2.bf16.msra.mxu1 %v4354_v58 }
  0x5a   :  { %1359 = vmatprep.subr.bf16.mxu0 %v4359_v60  ;;  %1472 = vmatprep.subr.bf16.mxu1 %v4362_v61  ;;  %v4387_v60 = vld [vmem:[#allocation2 + $0xe8] ss:$16 sps:$4 sm:$0xff]  }
  0x5b   :  { %v4390_v61 = vld [vmem:[#allocation2 + $0x2e8] ss:$16 sps:$4 sm:$0xff]  }
  0x5d   :  { %1360 = vmatpush2.bf16.msra.mxu0 %v4357_v62  ;;  %1473 = vmatpush2.bf16.msra.mxu1 %v4360_v63 }
  0x5e   :  { %1361 = vmatprep.subr.bf16.mxu0 %v4365_v1  ;;  %1474 = vmatprep.subr.bf16.mxu1 %v4368_v2 }
  0x5f   :  { %3820 = vmatmul.mubr.msk.bf16.gmra.mxu0 %vm200_vm0, %v4289_v59  ;;  %3828 = vmatmul.mubr.msk.bf16.gmra.mxu1 %vm200_vm0, %v4289_v59 }
  0x60   :  { %327 = vmatprep.mubr.bf16.mxu0 %v4842_v0  ;;  %440 = vmatprep.mubr.bf16.mxu1 %v4842_v0  ;;  %v4374_v0 = vld [vmem:[#allocation2 + $0x344] ss:$16 sps:$4 sm:$0xff]  }
  0x61   :  { %1362 = vmatpush2.bf16.msra.mxu0 %v4363_v3  ;;  %1475 = vmatpush2.bf16.msra.mxu1 %v4366_v4  ;;  %v4395_v3 = vld [vmem:[#allocation2 + $0xcc] ss:$16 sps:$4 sm:$0xff]  }
  0x62   :  { %1363 = vmatprep.subr.bf16.mxu0 %v4371_v6  ;;  %1476 = vmatprep.subr.bf16.mxu1 %v4374_v0  ;;  %v4398_v4 = vld [vmem:[#allocation2 + $0x2cc] ss:$16 sps:$4 sm:$0xff]  }
  0x65   :  { %1364 = vmatpush2.bf16.msra.mxu0 %v4369_v7  ;;  %1477 = vmatpush2.bf16.msra.mxu1 %v4372_v8 }
  0x66   :  { %1365 = vmatprep.subr.bf16.mxu0 %v4377_v9  ;;  %1478 = vmatprep.subr.bf16.mxu1 %v4380_v10 }
  0x67   :  { %3821 = vmatmul.mubr.msk.bf16.gmra.mxu0 %vm200_vm0, %v4290_v5  ;;  %3829 = vmatmul.mubr.msk.bf16.gmra.mxu1 %vm200_vm0, %v4290_v5 }
  0x69   :  { %1366 = vmatpush2.bf16.msra.mxu0 %v4375_v11  ;;  %1479 = vmatpush2.bf16.msra.mxu1 %v4378_v12 }
  0x6a   :  { %1367 = vmatprep.subr.bf16.mxu0 %v4383_v13  ;;  %1480 = vmatprep.subr.bf16.mxu1 %v4386_v14  ;;  %v4393_v14 = vld [vmem:[#allocation2 + $0xc8] ss:$16 sps:$4 sm:$0xff]  }
  0x6d   :  { %1368 = vmatpush2.bf16.msra.mxu0 %v4381_v15  ;;  %1481 = vmatpush2.bf16.msra.mxu1 %v4384_v16  ;;  %v4396_v15 = vld [vmem:[#allocation2 + $0x2c8] ss:$16 sps:$4 sm:$0xff]  }
  0x6e   :  { %1563 = vmatprep.subr.bf16.mxu0 %v4389_v17  ;;  %1676 = vmatprep.subr.bf16.mxu1 %v4392_v18 }
  0xef   :  { %v259_v26 = vpop.f32.mrf.mxu0  ;;  %v372_v27 = vpop.f32.mrf.mxu1 }
  0xf0   :  { %v260_v40 = vadd.f32 %v259_v26, %v5000_v30  ;;  %v373_v41 = vadd.f32 %v372_v27, %v5003_v31 }
  0xf1   :  { %v261_v32 = vpop.f32.mrf.mxu0  ;;  %v374_v33 = vpop.f32.mrf.mxu1 }
  0xf2   :  { %v262_v36 = vadd.f32 %v261_v32, %v4994_v28  ;;  %v375_v37 = vadd.f32 %v374_v33, %v4997_v29  ;;  %v451_v54 = vmax.f32 %v260_v40, 0.0  ;;  %v453_v55 = vmax.f32 %v373_v41, 0.0 }
  0xf3   :  { %v263_v34 = vpop.f32.mrf.mxu0  ;;  %v376_v35 = vpop.f32.mrf.mxu1 }
  0xf4   :  { %v264_v38 = vadd.f32 %v263_v34, %v5000_v30  ;;  %v377_v39 = vadd.f32 %v376_v35, %v5003_v31  ;;  %v452_v50 = vmax.f32 %v262_v36, 0.0  ;;  %v454_v51 = vmax.f32 %v375_v37, 0.0 }
  0xf5   :  { %v265_v42 = vpop.f32.mrf.mxu0  ;;  %v378_v43 = vpop.f32.mrf.mxu1 }
  0xf6   :  { %v266_v44 = vadd.f32 %v265_v42, %v4994_v28  ;;  %v379_v45 = vadd.f32 %v378_v43, %v4997_v29  ;;  %v455_v46 = vmax.f32 %v264_v38, 0.0  ;;  %v457_v47 = vmax.f32 %v377_v39, 0.0  ;;  %v4399_v39 = vld [vmem:[#allocation2 + $0xa8] ss:$16 sps:$4 sm:$0xff]  }
  0xf7   :  { %v269_v48 = vpop.f32.mrf.mxu0  ;;  %v382_v49 = vpop.f32.mrf.mxu1 }
  0xf8   :  { %v456_v52 = vmax.f32 %v266_v44, 0.0  ;;  %v458_v53 = vmax.f32 %v379_v45, 0.0  ;;  %v5017_v62 = vpack.c.bf16 %v455_v46, %v451_v54  ;;  %v5019_v63 = vpack.c.bf16 %v457_v47, %v453_v55  ;;  %v4402_v45 = vld [vmem:[#allocation2 + $0x2a8] ss:$16 sps:$4 sm:$0xff]   ;;  %v4407_v46 = vld [vmem:[#allocation2 + $0x8c] ss:$16 sps:$4 sm:$0xff]  }
  0xf9   :  { %v271_v56 = vpop.f32.mrf.mxu0  ;;  %v384_v57 = vpop.f32.mrf.mxu1  ;;  %v270_v7 = vadd.f32 %v269_v48, %v5000_v30  ;;  %v383_v8 = vadd.f32 %v382_v49, %v5003_v31 }
  0xfa   :  { %v5013_v58 = vpack.c.bf16 %v456_v52, %v452_v50  ;;  %v5015_v59 = vpack.c.bf16 %v458_v53, %v454_v51  ;;  %v272_v5 = vadd.f32 %v271_v56, %v4994_v28  ;;  %v385_v9 = vadd.f32 %v384_v57, %v4997_v29  ;;  %v4410_v51 = vld [vmem:[#allocation2 + $0x28c] ss:$16 sps:$4 sm:$0xff]  }
  0xfb   :  { %v273_v1 = vpop.f32.mrf.mxu0  ;;  %v386_v2 = vpop.f32.mrf.mxu1  ;;  %v459_v33 = vmax.f32 %v270_v7, 0.0  ;;  %v461_v34 = vmax.f32 %v383_v8, 0.0 }
  0xfc   :  { %v274_v6 = vadd.f32 %v273_v1, %v5000_v30  ;;  %v387_v0 = vadd.f32 %v386_v2, %v5003_v31  ;;  %1369 = vmatprep.mubr.bf16.mxu0 %v5013_v58  ;;  %1482 = vmatprep.mubr.bf16.mxu1 %v5015_v59  ;;  %v460_v26 = vmax.f32 %v272_v5, 0.0  ;;  %v462_v35 = vmax.f32 %v385_v9, 0.0  ;;  %v4413_v5 = vld [vmem:[#allocation2 + $0x6c] ss:$16 sps:$4 sm:$0xff]  }
  0xfd   :  { %v275_v10 = vpop.f32.mrf.mxu0  ;;  %v388_v11 = vpop.f32.mrf.mxu1  ;;  %1370 = vmatmul.mubr.bf16.vlgmr.msra.gmra.mxu0 %v5017_v62  ;;  %1483 = vmatmul.mubr.bf16.vlgmr.msra.gmra.mxu1 %v5019_v63 }
  0xfe   :  { %v276_v12 = vadd.f32 %v275_v10, %v4994_v28  ;;  %v389_v13 = vadd.f32 %v388_v11, %v4997_v29  ;;  %1564 = vmatpush1.bf16.msra.mxu0 %v4387_v60  ;;  %1677 = vmatpush1.bf16.msra.mxu1 %v4390_v61  ;;  %v463_v16 = vmax.f32 %v274_v6, 0.0  ;;  %v465_v17 = vmax.f32 %v387_v0, 0.0  ;;  %v4405_v60 = vld [vmem:[#allocation2 + $0x88] ss:$16 sps:$4 sm:$0xff]  }
  0xff   :  { %v279_v18 = vpop.f32.mrf.mxu0  ;;  %v392_v19 = vpop.f32.mrf.mxu1  ;;  %1565 = vmatprep.subr.bf16.mxu0 %v4395_v3  ;;  %1678 = vmatprep.subr.bf16.mxu1 %v4398_v4  ;;  %v4408_v4 = vld [vmem:[#allocation2 + $0x288] ss:$16 sps:$4 sm:$0xff]  }
 0x100   :  { %v464_v27 = vmax.f32 %v276_v12, 0.0  ;;  %v466_v32 = vmax.f32 %v389_v13, 0.0  ;;  %v5035_v40 = vpack.c.bf16 %v463_v16, %v459_v33  ;;  %v5037_v41 = vpack.c.bf16 %v465_v17, %v461_v34  ;;  %v4416_v13 = vld [vmem:[#allocation2 + $0x26c] ss:$16 sps:$4 sm:$0xff]   ;;  %v4411_v16 = vld [vmem:[#allocation2 + $0x68] ss:$16 sps:$4 sm:$0xff]  }
 0x101   :  { %v281_v36 = vpop.f32.mrf.mxu0  ;;  %v394_v37 = vpop.f32.mrf.mxu1  ;;  %v280_v52 = vadd.f32 %v279_v18, %v5000_v30  ;;  %v393_v53 = vadd.f32 %v392_v19, %v5003_v31 }
 0x102   :  { %1566 = vmatpush1.bf16.msra.mxu0 %v4393_v14  ;;  %1679 = vmatpush1.bf16.msra.mxu1 %v4396_v15  ;;  %v5033_v38 = vpack.c.bf16 %v464_v27, %v460_v26  ;;  %v5039_v44 = vpack.c.bf16 %v466_v32, %v462_v35  ;;  %v282_v47 = vadd.f32 %v281_v36, %v4994_v28  ;;  %v4414_v26 = vld [vmem:[#allocation2 + $0x268] ss:$16 sps:$4 sm:$0xff]   ;;  %v4419_v27 = vld [vmem:[#allocation2 + $0x4c] ss:$16 sps:$4 sm:$0xff]  }
 0x103   :  { %v283_v42 = vpop.f32.mrf.mxu0  ;;  %v396_v43 = vpop.f32.mrf.mxu1  ;;  %1567 = vmatprep.subr.bf16.mxu0 %v4401_v20  ;;  %1680 = vmatprep.subr.bf16.mxu1 %v4404_v25  ;;  %v395_v48 = vadd.f32 %v394_v37, %v4997_v29  ;;  %v467_v9 = vmax.f32 %v280_v52, 0.0  ;;  %v469_v10 = vmax.f32 %v393_v53, 0.0  ;;  %v4422_v35 = vld [vmem:[#allocation2 + $0x24c] ss:$16 sps:$4 sm:$0xff]  }
 0x104   :  { %v284_v49 = vadd.f32 %v283_v42, %v5000_v30  ;;  %v397_v50 = vadd.f32 %v396_v43, %v5003_v31  ;;  %1379 = vmatprep.mubr.bf16.mxu0 %v5033_v38  ;;  %1492 = vmatprep.mubr.bf16.mxu1 %v5039_v44  ;;  %v468_v6 = vmax.f32 %v282_v47, 0.0  ;;  %v4425_v52 = vld [vmem:[#allocation2 + $0x2c] ss:$16 sps:$4 sm:$0xff]  }
 0x105   :  { %v285_v54 = vpop.f32.mrf.mxu0  ;;  %v398_v55 = vpop.f32.mrf.mxu1  ;;  %1380 = vmatmul.mubr.bf16.gmra.mxu0 %v5035_v40  ;;  %1493 = vmatmul.mubr.bf16.gmra.mxu1 %v5037_v41  ;;  %v470_v0 = vmax.f32 %v395_v48, 0.0 }
 0x106   :  { %v286_v56 = vadd.f32 %v285_v54, %v4994_v28  ;;  %v399_v57 = vadd.f32 %v398_v55, %v4997_v29  ;;  %1568 = vmatpush1.bf16.msra.mxu0 %v4399_v39  ;;  %v471_v61 = vmax.f32 %v284_v49, 0.0  ;;  %v473_v1 = vmax.f32 %v397_v50, 0.0  ;;  %1681 = vmatpush1.bf16.msra.mxu1 %v4402_v45 }
 0x107   :  { %v289_v2 = vpop.f32.mrf.mxu0  ;;  %v402_v3 = vpop.f32.mrf.mxu1  ;;  %1569 = vmatprep.subr.bf16.mxu0 %v4407_v46  ;;  %1682 = vmatprep.subr.bf16.mxu1 %v4410_v51  ;;  %v4417_v46 = vld [vmem:[#allocation2 + $0x48] ss:$16 sps:$4 sm:$0xff]  }
 0x108   :  { %v472_v7 = vmax.f32 %v286_v56, 0.0  ;;  %v474_v8 = vmax.f32 %v399_v57, 0.0  ;;  %v5057_v17 = vpack.c.bf16 %v471_v61, %v467_v9  ;;  %v5059_v18 = vpack.c.bf16 %v473_v1, %v469_v10  ;;  %v4420_v51 = vld [vmem:[#allocation2 + $0x248] ss:$16 sps:$4 sm:$0xff]  }
 0x109   :  { %v291_v11 = vpop.f32.mrf.mxu0  ;;  %v404_v12 = vpop.f32.mrf.mxu1  ;;  %v290_v36 = vadd.f32 %v289_v2, %v5000_v30  ;;  %v403_v37 = vadd.f32 %v402_v3, %v5003_v31  ;;  %v4428_v2 = vld [vmem:[#allocation2 + $0x22c] ss:$16 sps:$4 sm:$0xff]   ;;  %v4426_v10 = vld [vmem:[#allocation2 + $0x228] ss:$16 sps:$4 sm:$0xff]  }
 0x10a   :  { %1570 = vmatpush1.bf16.msra.mxu0 %v4405_v60  ;;  %v5053_v14 = vpack.c.bf16 %v472_v7, %v468_v6  ;;  %v5055_v15 = vpack.c.bf16 %v474_v8, %v470_v0  ;;  %v292_v19 = vadd.f32 %v291_v11, %v4994_v28  ;;  %1683 = vmatpush1.bf16.msra.mxu1 %v4408_v4  ;;  %v4431_v11 = vld [vmem:[#allocation2 + $0xc] ss:$16 sps:$4 sm:$0xff]  }
 0x10b   :  { %v293_v20 = vpop.f32.mrf.mxu0  ;;  %v406_v25 = vpop.f32.mrf.mxu1  ;;  %1571 = vmatprep.subr.bf16.mxu0 %v4413_v5  ;;  %v405_v32 = vadd.f32 %v404_v12, %v4997_v29  ;;  %1684 = vmatprep.subr.bf16.mxu1 %v4416_v13  ;;  %v475_v57 = vmax.f32 %v290_v36, 0.0  ;;  %v477_v60 = vmax.f32 %v403_v37, 0.0  ;;  %v4423_v5 = vld [vmem:[#allocation2 + $0x28] ss:$16 sps:$4 sm:$0xff]  }
 0x10c   :  { %v294_v33 = vadd.f32 %v293_v20, %v5000_v30  ;;  %v407_v34 = vadd.f32 %v406_v25, %v5003_v31  ;;  %1389 = vmatprep.mubr.bf16.mxu0 %v5053_v14  ;;  %1502 = vmatprep.mubr.bf16.mxu1 %v5055_v15  ;;  %v476_v53 = vmax.f32 %v292_v19, 0.0  ;;  %v4434_v19 = vld [vmem:[#allocation2 + $0x20c] ss:$16 sps:$4 sm:$0xff]  }
 0x10d   :  { %v295_v39 = vpop.f32.mrf.mxu0  ;;  %v408_v42 = vpop.f32.mrf.mxu1  ;;  %1390 = vmatmul.mubr.bf16.gmra.mxu0 %v5057_v17  ;;  %1503 = vmatmul.mubr.bf16.gmra.mxu1 %v5059_v18  ;;  %v478_v54 = vmax.f32 %v405_v32, 0.0 }
 0x10e   :  { %v296_v43 = vadd.f32 %v295_v39, %v4994_v28  ;;  %v409_v45 = vadd.f32 %v408_v42, %v4997_v29  ;;  %1572 = vmatpush1.bf16.msra.mxu0 %v4411_v16  ;;  %v479_v47 = vmax.f32 %v294_v33, 0.0  ;;  %v481_v48 = vmax.f32 %v407_v34, 0.0  ;;  %1685 = vmatpush1.bf16.msra.mxu1 %v4414_v26  ;;  %v4429_v34 = vld [vmem:[#allocation2 + $0x8] ss:$16 sps:$4 sm:$0xff]  }
 0x10f   :  { %v299_v49 = vpop.f32.mrf.mxu0  ;;  %v412_v50 = vpop.f32.mrf.mxu1  ;;  %1573 = vmatprep.subr.bf16.mxu0 %v4419_v27  ;;  %1686 = vmatprep.subr.bf16.mxu1 %v4422_v35  ;;  %v4432_v42 = vld [vmem:[#allocation2 + $0x208] ss:$16 sps:$4 sm:$0xff]  }
 0x110   :  { %v480_v55 = vmax.f32 %v296_v43, 0.0  ;;  %v482_v56 = vmax.f32 %v409_v45, 0.0  ;;  %v5077_v6 = vpack.c.bf16 %v479_v47, %v475_v57  ;;  %v5079_v0 = vpack.c.bf16 %v481_v48, %v477_v60  ;;  %v4437_v43 = vld [vmem:[#allocation2 + $0x1ec] ss:$16 sps:$4 sm:$0xff]  }
 0x111   :  { %v301_v61 = vpop.f32.mrf.mxu0  ;;  %v414_v1 = vpop.f32.mrf.mxu1  ;;  %v300_v20 = vadd.f32 %v299_v49, %v5000_v30  ;;  %v413_v25 = vadd.f32 %v412_v50, %v5003_v31 }
 0x112   :  { %1574 = vmatpush1.bf16.msra.mxu0 %v4417_v46  ;;  %v5073_v3 = vpack.c.bf16 %v480_v55, %v476_v53  ;;  %v5075_v4 = vpack.c.bf16 %v482_v56, %v478_v54  ;;  %v302_v7 = vadd.f32 %v301_v61, %v4994_v28  ;;  %1687 = vmatpush1.bf16.msra.mxu1 %v4420_v51  ;;  %v4440_v53 = vld [vmem:[#allocation2 + $0x3ec] ss:$16 sps:$4 sm:$0xff]   ;;  %v4435_v56 = vld [vmem:[#allocation2 + $0x1e8] ss:$16 sps:$4 sm:$0xff]  }
 0x113   :  { %v303_v8 = vpop.f32.mrf.mxu0  ;;  %v416_v9 = vpop.f32.mrf.mxu1  ;;  %1575 = vmatprep.subr.bf16.mxu0 %v4425_v52  ;;  %v415_v12 = vadd.f32 %v414_v1, %v4997_v29  ;;  %1688 = vmatprep.subr.bf16.mxu1 %v4428_v2  ;;  %v483_v49 = vmax.f32 %v300_v20, 0.0  ;;  %v485_v50 = vmax.f32 %v413_v25, 0.0 }
 0x114   :  { %v304_v13 = vadd.f32 %v303_v8, %v5000_v30  ;;  %v417_v16 = vadd.f32 %v416_v9, %v5003_v31  ;;  %1399 = vmatprep.mubr.bf16.mxu0 %v5073_v3  ;;  %1512 = vmatprep.mubr.bf16.mxu1 %v5075_v4  ;;  %v484_v45 = vmax.f32 %v302_v7, 0.0  ;;  %v4443_v7 = vld [vmem:[#allocation2 + $0x1cc] ss:$16 sps:$4 sm:$0xff]  }
 0x115   :  { %v305_v26 = vpop.f32.mrf.mxu0  ;;  %v418_v27 = vpop.f32.mrf.mxu1  ;;  %1400 = vmatmul.mubr.bf16.gmra.mxu0 %v5077_v6  ;;  %1513 = vmatmul.mubr.bf16.gmra.mxu1 %v5079_v0  ;;  %v486_v46 = vmax.f32 %v415_v12, 0.0 }
 0x116   :  { %v306_v32 = vadd.f32 %v305_v26, %v4994_v28  ;;  %v419_v33 = vadd.f32 %v418_v27, %v4997_v29  ;;  %1576 = vmatpush1.bf16.msra.mxu0 %v4423_v5  ;;  %v487_v35 = vmax.f32 %v304_v13, 0.0  ;;  %v489_v36 = vmax.f32 %v417_v16, 0.0  ;;  %1689 = vmatpush1.bf16.msra.mxu1 %v4426_v10  ;;  %v4438_v5 = vld [vmem:[#allocation2 + $0x3e8] ss:$16 sps:$4 sm:$0xff]  }
 0x117   :  { %v309_v37 = vpop.f32.mrf.mxu0  ;;  %v422_v39 = vpop.f32.mrf.mxu1  ;;  %1577 = vmatprep.subr.bf16.mxu0 %v4431_v11  ;;  %1690 = vmatprep.subr.bf16.mxu1 %v4434_v19  ;;  %v4446_v11 = vld [vmem:[#allocation2 + $0x3cc] ss:$16 sps:$4 sm:$0xff]   ;;  %v4441_v26 = vld [vmem:[#allocation2 + $0x1c8] ss:$16 sps:$4 sm:$0xff]  }
 0x118   :  { %v488_v47 = vmax.f32 %v306_v32, 0.0  ;;  %v490_v48 = vmax.f32 %v419_v33, 0.0  ;;  %v5097_v57 = vpack.c.bf16 %v487_v35, %v483_v49  ;;  %v5099_v60 = vpack.c.bf16 %v489_v36, %v485_v50  ;;  %v4444_v35 = vld [vmem:[#allocation2 + $0x3c8] ss:$16 sps:$4 sm:$0xff]   ;;  %v4449_v36 = vld [vmem:[#allocation2 + $0x1ac] ss:$16 sps:$4 sm:$0xff]  }
 0x119   :  { %v311_v51 = vpop.f32.mrf.mxu0  ;;  %v424_v52 = vpop.f32.mrf.mxu1  ;;  %v310_v12 = vadd.f32 %v309_v37, %v5000_v30  ;;  %v423_v13 = vadd.f32 %v422_v39, %v5003_v31  ;;  %v4452_v49 = vld [vmem:[#allocation2 + $0x3ac] ss:$16 sps:$4 sm:$0xff]  }
 0x11a   :  { %1578 = vmatpush1.bf16.msra.mxu0 %v4429_v34  ;;  %v5093_v54 = vpack.c.bf16 %v488_v47, %v484_v45  ;;  %v5095_v55 = vpack.c.bf16 %v490_v48, %v486_v46  ;;  %v312_v61 = vadd.f32 %v311_v51, %v4994_v28  ;;  %1691 = vmatpush1.bf16.msra.mxu1 %v4432_v42 }
 0x11b   :  { %v313_v1 = vpop.f32.mrf.mxu0  ;;  %v426_v2 = vpop.f32.mrf.mxu1  ;;  %1579 = vmatprep.subr.bf16.mxu0 %v4437_v43  ;;  %v425_v8 = vadd.f32 %v424_v52, %v4997_v29  ;;  %1692 = vmatprep.subr.bf16.mxu1 %v4440_v53  ;;  %v491_v45 = vmax.f32 %v310_v12, 0.0  ;;  %v493_v46 = vmax.f32 %v423_v13, 0.0  ;;  %v4447_v52 = vld [vmem:[#allocation2 + $0x1a8] ss:$16 sps:$4 sm:$0xff]  }
 0x11c   :  { %v314_v9 = vadd.f32 %v313_v1, %v5000_v30  ;;  %v427_v10 = vadd.f32 %v426_v2, %v5003_v31  ;;  %1409 = vmatprep.mubr.bf16.mxu0 %v5093_v54  ;;  %1522 = vmatprep.mubr.bf16.mxu1 %v5095_v55  ;;  %v492_v37 = vmax.f32 %v312_v61, 0.0 }
 0x11d   :  { %v315_v16 = vpop.f32.mrf.mxu0  ;;  %v428_v19 = vpop.f32.mrf.mxu1  ;;  %1410 = vmatmul.mubr.bf16.gmra.mxu0 %v5097_v57  ;;  %1523 = vmatmul.mubr.bf16.gmra.mxu1 %v5099_v60  ;;  %v494_v39 = vmax.f32 %v425_v8, 0.0 }
 0x11e   :  { %v316_v20 = vadd.f32 %v315_v16, %v4994_v28  ;;  %v429_v25 = vadd.f32 %v428_v19, %v4997_v29  ;;  %1580 = vmatpush2.bf16.msra.mxu0 %v4435_v56  ;;  %v495_v27 = vmax.f32 %v314_v9, 0.0  ;;  %v497_v32 = vmax.f32 %v427_v10, 0.0  ;;  %1693 = vmatpush2.bf16.msra.mxu1 %v4438_v5  ;;  %v4450_v5 = vld [vmem:[#allocation2 + $0x3a8] ss:$16 sps:$4 sm:$0xff]  }
 0x11f   :  { %v319_v33 = vpop.f32.mrf.mxu0  ;;  %v432_v34 = vpop.f32.mrf.mxu1  ;;  %1581 = vmatprep.subr.bf16.mxu0 %v4443_v7  ;;  %1694 = vmatprep.subr.bf16.mxu1 %v4446_v11  ;;  %v4455_v7 = vld [vmem:[#allocation2 + $0x18c] ss:$16 sps:$4 sm:$0xff]  }
 0x120   :  { %v496_v42 = vmax.f32 %v316_v20, 0.0  ;;  %v498_v43 = vmax.f32 %v429_v25, 0.0  ;;  %v5117_v53 = vpack.c.bf16 %v495_v27, %v491_v45  ;;  %v5119_v56 = vpack.c.bf16 %v497_v32, %v493_v46  ;;  %v4458_v11 = vld [vmem:[#allocation2 + $0x38c] ss:$16 sps:$4 sm:$0xff]  }
 0x121   :  { %v321_v47 = vpop.f32.mrf.mxu0  ;;  %v434_v48 = vpop.f32.mrf.mxu1  ;;  %v320_v12 = vadd.f32 %v319_v33, %v5000_v30  ;;  %v433_v13 = vadd.f32 %v432_v34, %v5003_v31  ;;  %v4456_v34 = vld [vmem:[#allocation2 + $0x388] ss:$16 sps:$4 sm:$0xff]  }
 0x122   :  { %1582 = vmatpush2.bf16.msra.mxu0 %v4441_v26  ;;  %v5113_v50 = vpack.c.bf16 %v496_v42, %v492_v37  ;;  %v5115_v51 = vpack.c.bf16 %v498_v43, %v494_v39  ;;  %v322_v61 = vadd.f32 %v321_v47, %v4994_v28  ;;  %1695 = vmatpush2.bf16.msra.mxu1 %v4444_v35  ;;  %v4453_v26 = vld [vmem:[#allocation2 + $0x188] ss:$16 sps:$4 sm:$0xff]  }
 0x123   :  { %v323_v1 = vpop.f32.mrf.mxu0  ;;  %v436_v2 = vpop.f32.mrf.mxu1  ;;  %1583 = vmatprep.subr.bf16.mxu0 %v4449_v36  ;;  %v435_v8 = vadd.f32 %v434_v48, %v4997_v29  ;;  %1696 = vmatprep.subr.bf16.mxu1 %v4452_v49  ;;  %v4461_v36 = vld [vmem:[#allocation2 + $0x16c] ss:$16 sps:$4 sm:$0xff]   ;;  %v499_v45 = vmax.f32 %v320_v12, 0.0  ;;  %v501_v46 = vmax.f32 %v433_v13, 0.0 }
 0x124   :  { %v324_v9 = vadd.f32 %v323_v1, %v5000_v30  ;;  %v437_v10 = vadd.f32 %v436_v2, %v5003_v31  ;;  %1419 = vmatprep.mubr.bf16.mxu0 %v5113_v50  ;;  %1532 = vmatprep.mubr.bf16.mxu1 %v5115_v51  ;;  %v500_v37 = vmax.f32 %v322_v61, 0.0  ;;  %v4464_v49 = vld [vmem:[#allocation2 + $0x36c] ss:$16 sps:$4 sm:$0xff]   ;;  %v4459_v2 = vld [vmem:[#allocation2 + $0x168] ss:$16 sps:$4 sm:$0xff]  }
 0x125   :  { %v325_v16 = vpop.f32.mrf.mxu0  ;;  %v438_v19 = vpop.f32.mrf.mxu1  ;;  %1420 = vmatmul.mubr.bf16.gmra.mxu0 %v5117_v53  ;;  %1533 = vmatmul.mubr.bf16.gmra.mxu1 %v5119_v56  ;;  %v502_v39 = vmax.f32 %v435_v8, 0.0 }
 0x126   :  { %v326_v20 = vadd.f32 %v325_v16, %v4994_v28  ;;  %v439_v25 = vadd.f32 %v438_v19, %v4997_v29  ;;  %1584 = vmatpush2.bf16.msra.mxu0 %v4447_v52  ;;  %v503_v27 = vmax.f32 %v324_v9, 0.0  ;;  %v505_v32 = vmax.f32 %v437_v10, 0.0  ;;  %1697 = vmatpush2.bf16.msra.mxu1 %v4450_v5  ;;  %v4462_v10 = vld [vmem:[#allocation2 + $0x368] ss:$16 sps:$4 sm:$0xff]   ;;  %v4470_v19 = vld [vmem:[#allocation2 + $0x34c] ss:$16 sps:$4 sm:$0xff]  }
 0x127   :  { %v329_v35 = vpop.f32.mrf.mxu0  ;;  %v442_v33 = vpop.f32.mrf.mxu1  ;;  %1585 = vmatprep.subr.bf16.mxu0 %v4455_v7  ;;  %1698 = vmatprep.subr.bf16.mxu1 %v4458_v11  ;;  %v4467_v11 = vld [vmem:[#allocation2 + $0x14c] ss:$16 sps:$4 sm:$0xff]  }
 0x128   :  { %v504_v42 = vmax.f32 %v326_v20, 0.0  ;;  %v506_v43 = vmax.f32 %v439_v25, 0.0  ;;  %v5137_v5 = vpack.c.bf16 %v503_v27, %v499_v45  ;;  %v5139_v7 = vpack.c.bf16 %v505_v32, %v501_v46 }
 0x129   :  { %v331_v47 = vpop.f32.mrf.mxu0  ;;  %v444_v48 = vpop.f32.mrf.mxu1  ;;  %v330_v20 = vadd.f32 %v329_v35, %v5000_v30  ;;  %v443_v27 = vadd.f32 %v442_v33, %v5003_v31  ;;  %v4473_v35 = vld [vmem:[#allocation2 + $0x12c] ss:$16 sps:$4 sm:$0xff]  }
 0x12a   :  { %1586 = vmatpush2.bf16.msra.mxu0 %v4453_v26  ;;  %v5133_v52 = vpack.c.bf16 %v504_v42, %v500_v37  ;;  %v5135_v1 = vpack.c.bf16 %v506_v43, %v502_v39  ;;  %v332_v61 = vadd.f32 %v331_v47, %v4994_v28  ;;  %1699 = vmatpush2.bf16.msra.mxu1 %v4456_v34  ;;  %v4476_v33 = vld [vmem:[#allocation2 + $0x32c] ss:$16 sps:$4 sm:$0xff]  }
 0x12b   :  { %v333_v8 = vpop.f32.mrf.mxu0  ;;  %v446_v9 = vpop.f32.mrf.mxu1  ;;  %1587 = vmatprep.subr.bf16.mxu0 %v4461_v36  ;;  %v445_v12 = vadd.f32 %v444_v48, %v4997_v29  ;;  %1700 = vmatprep.subr.bf16.mxu1 %v4464_v49  ;;  %v4465_v36 = vld [vmem:[#allocation2 + $0x148] ss:$16 sps:$4 sm:$0xff]  }
 0x12c   :  { %v334_v13 = vadd.f32 %v333_v8, %v5000_v30  ;;  %v447_v16 = vadd.f32 %v446_v9, %v5003_v31  ;;  %1429 = vmatprep.mubr.bf16.mxu0 %v5133_v52  ;;  %1542 = vmatprep.mubr.bf16.mxu1 %v5135_v1  ;;  %v508_v37 = vmax.f32 %v332_v61, 0.0  ;;  %v4468_v30 = vld [vmem:[#allocation2 + $0x348] ss:$16 sps:$4 sm:$0xff]   ;;  %v507_v31 = vmax.f32 %v330_v20, 0.0  ;;  %v4479_v8 = vld [vmem:[#allocation2 + $0x10c] ss:$16 sps:$4 sm:$0xff]  }
 0x12d   :  { %v335_v25 = vpop.f32.mrf.mxu0  ;;  %v448_v26 = vpop.f32.mrf.mxu1  ;;  %1430 = vmatmul.mubr.bf16.gmra.mxu0 %v5137_v5  ;;  %1543 = vmatmul.mubr.bf16.gmra.mxu1 %v5139_v7  ;;  %v510_v42 = vmax.f32 %v445_v12, 0.0  ;;  %v4471_v48 = vld [vmem:[#allocation2 + $0x128] ss:$16 sps:$4 sm:$0xff]   ;;  %v4482_v9 = vld [vmem:[#allocation2 + $0x30c] ss:$16 sps:$4 sm:$0xff]  }
 0x12e   :  { %v336_v32 = vadd.f32 %v335_v25, %v4994_v28  ;;  %v449_v34 = vadd.f32 %v448_v26, %v4997_v29  ;;  %1588 = vmatpush2.bf16.msra.mxu0 %v4459_v2  ;;  %v511_v39 = vmax.f32 %v334_v13, 0.0  ;;  %1701 = vmatpush2.bf16.msra.mxu1 %v4462_v10  ;;  %v513_v43 = vmax.f32 %v447_v16, 0.0  ;;  %v4474_v2 = vld [vmem:[#allocation2 + $0x328] ss:$16 sps:$4 sm:$0xff]   ;;  %v4485_v12 = vld [vmem:[#allocation4 + $0xe4] ss:$16 sps:$4 sm:$0xff]  }
 0x12f   :  { %1589 = vmatprep.subr.bf16.mxu0 %v4467_v11  ;;  %1702 = vmatprep.subr.bf16.mxu1 %v4470_v19  ;;  %v509_v28 = vmax.f32 %v443_v27, 0.0  ;;  %v4477_v10 = vld [vmem:[#allocation2 + $0x108] ss:$16 sps:$4 sm:$0xff]   ;;  %v4483_v13 = vld [vmem:[#allocation4 + $0xe0] ss:$16 sps:$4 sm:$0xff]  }
 0x130   :  { %v512_v45 = vmax.f32 %v336_v32, 0.0  ;;  %v514_v46 = vmax.f32 %v449_v34, 0.0  ;;  %v5157_v49 = vpack.c.bf16 %v511_v39, %v507_v31  ;;  %v4480_v11 = vld [vmem:[#allocation2 + $0x308] ss:$16 sps:$4 sm:$0xff]   ;;  %v4488_v16 = vld [vmem:[#allocation4 + $0xc4] ss:$16 sps:$4 sm:$0xff]  }
 0x131   :  { %v5159_v61 = vpack.c.bf16 %v513_v43, %v509_v28  ;;  %v4491_v19 = vld [vmem:[#allocation4 + $0xa4] ss:$16 sps:$4 sm:$0xff]   ;;  %v4537_v26 = vld [vmem:[#allocation4 + $0x2c0] ss:$16 sps:$4 sm:$0xff]  }
 0x132   :  { %1590 = vmatpush2.bf16.msra.mxu0 %v4465_v36  ;;  %v5153_v29 = vpack.c.bf16 %v512_v45, %v508_v37  ;;  %v5155_v47 = vpack.c.bf16 %v514_v46, %v510_v42  ;;  %1703 = vmatpush2.bf16.msra.mxu1 %v4468_v30  ;;  %v4494_v20 = vld [vmem:[#allocation4 + $0x84] ss:$16 sps:$4 sm:$0xff]   ;;  %v4501_v27 = vld [vmem:[#allocation4 + $0x20] ss:$16 sps:$4 sm:$0xff]  }
 0x133   :  { %1591 = vmatprep.subr.bf16.mxu0 %v4473_v35  ;;  %1704 = vmatprep.subr.bf16.mxu1 %v4476_v33  ;;  %v4533_v25 = vld [vmem:[#allocation4 + $0x2e4] ss:$16 sps:$4 sm:$0xff]   ;;  %v4549_v36 = vld [vmem:[#allocation4 + $0x280] ss:$16 sps:$4 sm:$0xff]  }
 0x134   :  { %1439 = vmatprep.mubr.bf16.mxu0 %v5153_v29  ;;  %1552 = vmatprep.mubr.bf16.mxu1 %v5155_v47  ;;  %v4509_v32 = vld [vmem:[#allocation4 + $0x1e4] ss:$16 sps:$4 sm:$0xff]   ;;  %v4507_v37 = vld [vmem:[#allocation4 + $0x1e0] ss:$16 sps:$4 sm:$0xff]  }
 0x135   :  { %1440 = vmatmul.mubr.bf16.gmra.mxu0 %v5157_v49  ;;  %1553 = vmatmul.mubr.bf16.gmra.mxu1 %v5159_v61  ;;  %v4551_v34 = vld [vmem:[#allocation4 + $0x284] ss:$16 sps:$4 sm:$0xff]   ;;  %v4561_v35 = vld [vmem:[#allocation4 + $0x240] ss:$16 sps:$4 sm:$0xff]  }
 0x136   :  { %1592 = vmatpush2.bf16.msra.mxu0 %v4471_v48  ;;  %1595 = vmatprep.mubr.bf16.mxu0 %v5013_v58  ;;  %v4486_v58 = vld [vmem:[#allocation4 + $0xc0] ss:$16 sps:$4 sm:$0xff]   ;;  %v4515_v39 = vld [vmem:[#allocation4 + $0x1a4] ss:$16 sps:$4 sm:$0xff]  }
 0x137   :  { %1705 = vmatpush2.bf16.msra.mxu1 %v4474_v2  ;;  %1708 = vmatprep.mubr.bf16.mxu1 %v5015_v59  ;;  %v4489_v59 = vld [vmem:[#allocation4 + $0xa0] ss:$16 sps:$4 sm:$0xff]   ;;  %v4563_v30 = vld [vmem:[#allocation4 + $0x244] ss:$16 sps:$4 sm:$0xff]  }
 0x138   :  { %1593 = vmatprep.subr.bf16.mxu0 %v4479_v8  ;;  %1706 = vmatprep.subr.bf16.mxu1 %v4482_v9  ;;  %v4513_v42 = vld [vmem:[#allocation4 + $0x1a0] ss:$16 sps:$4 sm:$0xff]   ;;  %v4521_v43 = vld [vmem:[#allocation4 + $0x164] ss:$16 sps:$4 sm:$0xff]   ;;  %v4536_v8 = vld [vmem:[#allocation4 + $0xec] ss:$16 sps:$4 sm:$0xff]  }
 0x139   :  { %v4575_v45 = vld [vmem:[#allocation4 + $0x204] ss:$16 sps:$4 sm:$0xff]   ;;  %v4573_v46 = vld [vmem:[#allocation4 + $0x200] ss:$16 sps:$4 sm:$0xff]  }
 0x13a   :  { %1594 = vmatpush2.bf16.msra.mxu0 %v4477_v10  ;;  %v4519_v31 = vld [vmem:[#allocation4 + $0x160] ss:$16 sps:$4 sm:$0xff]   ;;  %v4527_v33 = vld [vmem:[#allocation4 + $0x124] ss:$16 sps:$4 sm:$0xff]  }
 0x13b   :  { %1707 = vmatpush2.bf16.msra.mxu1 %v4480_v11  ;;  %2675 = vmatprep.subr.bf16.mxu0 %v4485_v12  ;;  %v4587_v28 = vld [vmem:[#allocation4 + $0x3c4] ss:$16 sps:$4 sm:$0xff]   ;;  %v4585_v48 = vld [vmem:[#allocation4 + $0x3c0] ss:$16 sps:$4 sm:$0xff]  }
 0x13c   :  { %2788 = vmatprep.subr.bf16.mxu1 %v4533_v25  ;;  %v4525_v2 = vld [vmem:[#allocation4 + $0x120] ss:$16 sps:$4 sm:$0xff]   ;;  %v4599_v9 = vld [vmem:[#allocation4 + $0x384] ss:$16 sps:$4 sm:$0xff]  }
 0x13d   :  { %1596 = vmatmul.mubr.bf16.vlgmr.msra.gmra.mxu0 %v5017_v62  ;;  %v4492_v62 = vld [vmem:[#allocation4 + $0x80] ss:$16 sps:$4 sm:$0xff]   ;;  %v4605_v11 = vld [vmem:[#allocation4 + $0x364] ss:$16 sps:$4 sm:$0xff]  }
 0x13e   :  { %1709 = vmatmul.mubr.bf16.vlgmr.msra.gmra.mxu1 %v5019_v63  ;;  %1605 = vmatprep.mubr.bf16.mxu0 %v5033_v38  ;;  %v4497_v63 = vld [vmem:[#allocation4 + $0x64] ss:$16 sps:$4 sm:$0xff]   ;;  %v4495_v38 = vld [vmem:[#allocation4 + $0x60] ss:$16 sps:$4 sm:$0xff]  }
 0x13f   :  { %1718 = vmatprep.mubr.bf16.mxu1 %v5039_v44  ;;  %2676 = vmatpush1.bf16.msra.mxu0 %v4483_v13  ;;  %v4500_v44 = vld [vmem:[#allocation4 + $0x44] ss:$16 sps:$4 sm:$0xff]   ;;  %v4597_v10 = vld [vmem:[#allocation4 + $0x380] ss:$16 sps:$4 sm:$0xff]  }
 0x140   :  { %2677 = vmatprep.subr.bf16.mxu0 %v4488_v16  ;;  %v4603_v12 = vld [vmem:[#allocation4 + $0x360] ss:$16 sps:$4 sm:$0xff]  }
 0x141   :  { %v4609_v13 = vld [vmem:[#allocation4 + $0x340] ss:$16 sps:$4 sm:$0xff]  }
 0x142   :  { %v4615_v16 = vld [vmem:[#allocation4 + $0x320] ss:$16 sps:$4 sm:$0xff]  }
 0x143   :  { %2678 = vmatpush1.bf16.msra.mxu0 %v4486_v58  ;;  %v4623_v58 = vld [vmem:[#allocation4 + $0x304] ss:$16 sps:$4 sm:$0xff]  }
 0x144   :  { %2679 = vmatprep.subr.bf16.mxu0 %v4491_v19  ;;  %v4621_v19 = vld [vmem:[#allocation4 + $0x300] ss:$16 sps:$4 sm:$0xff]  }
 0x145   :  { %1606 = vmatmul.mubr.bf16.gmra.mxu0 %v5035_v40  ;;  %v4531_v40 = vld [vmem:[#allocation4 + $0x2e0] ss:$16 sps:$4 sm:$0xff]  }
 0x146   :  { %1719 = vmatmul.mubr.bf16.gmra.mxu1 %v5037_v41  ;;  %1615 = vmatprep.mubr.bf16.mxu0 %v5053_v14  ;;  %v4498_v41 = vld [vmem:[#allocation4 + $0x40] ss:$16 sps:$4 sm:$0xff]   ;;  %v4503_v14 = vld [vmem:[#allocation4 + $0x24] ss:$16 sps:$4 sm:$0xff]  }
 0x147   :  { %1728 = vmatprep.mubr.bf16.mxu1 %v5055_v15  ;;  %2680 = vmatpush1.bf16.msra.mxu0 %v4489_v59  ;;  %v4539_v15 = vld [vmem:[#allocation4 + $0x2c4] ss:$16 sps:$4 sm:$0xff]   ;;  %v4629_v59 = vld [vmem:[#allocation4 + $0x2ec] ss:$16 sps:$4 sm:$0xff]  }
 0x148   :  { %2681 = vmatprep.subr.bf16.mxu0 %v4494_v20  ;;  %2789 = vmatpush1.bf16.msra.mxu1 %v4531_v40  ;;  %v5200_v20 = vld [vmem:[%s5733_s4] sm:$0xf] }
 0x149   :  { %2790 = vmatprep.subr.bf16.mxu1 %v4539_v15 }
 0x14b   :  { %2682 = vmatpush1.bf16.msra.mxu0 %v4492_v62  ;;  %v5204_v62 = vrot.slane %v5200_v20, %v4982_v21 }
 0x14c   :  { %2683 = vmatprep.subr.bf16.mxu0 %v4497_v63  ;;  %2791 = vmatpush1.bf16.msra.mxu1 %v4537_v26  ;;  %v5208_v63 = vrot.slane %v5200_v20, %v4986_v23 }
 0x14d   :  { %1616 = vmatmul.mubr.bf16.gmra.mxu0 %v5057_v17  ;;  %v4506_v17 = vld [vmem:[#allocation4 + $0x4] ss:$16 sps:$4 sm:$0xff]  }
 0x14e   :  { %1729 = vmatmul.mubr.bf16.gmra.mxu1 %v5059_v18  ;;  %1625 = vmatprep.mubr.bf16.mxu0 %v5073_v3  ;;  %v4545_v18 = vld [vmem:[#allocation4 + $0x2a4] ss:$16 sps:$4 sm:$0xff]   ;;  %v4543_v3 = vld [vmem:[#allocation4 + $0x2a0] ss:$16 sps:$4 sm:$0xff]  }
 0x14f   :  { %1738 = vmatprep.mubr.bf16.mxu1 %v5075_v4  ;;  %2684 = vmatpush1.bf16.msra.mxu0 %v4495_v38  ;;  %v4504_v4 = vld [vmem:[#allocation4] ss:$16 sps:$4 sm:$0xff]  }
 0x150   :  { %2685 = vmatprep.subr.bf16.mxu0 %v4500_v44  ;;  %2792 = vmatprep.subr.bf16.mxu1 %v4545_v18 }
 0x151   :  { %2793 = vmatpush1.bf16.msra.mxu1 %v4543_v3 }
 0x152   :  { %2794 = vmatprep.subr.bf16.mxu1 %v4551_v34 }
 0x153   :  { %2686 = vmatpush1.bf16.msra.mxu0 %v4498_v41 }
 0x154   :  { %2687 = vmatprep.subr.bf16.mxu0 %v4503_v14 }
 0x155   :  { %1626 = vmatmul.mubr.bf16.gmra.mxu0 %v5077_v6  ;;  %v4512_v6 = vld [vmem:[#allocation4 + $0x1c4] ss:$16 sps:$4 sm:$0xff]   ;;  %2795 = vmatpush1.bf16.msra.mxu1 %v4549_v36 }
 0x156   :  { %1739 = vmatmul.mubr.bf16.gmra.mxu1 %v5079_v0  ;;  %1635 = vmatprep.mubr.bf16.mxu0 %v5093_v54  ;;  %v4557_v0 = vld [vmem:[#allocation4 + $0x264] ss:$16 sps:$4 sm:$0xff]   ;;  %v4555_v54 = vld [vmem:[#allocation4 + $0x260] ss:$16 sps:$4 sm:$0xff]  }
 0x157   :  { %1748 = vmatprep.mubr.bf16.mxu1 %v5095_v55  ;;  %2688 = vmatpush1.bf16.msra.mxu0 %v4501_v27  ;;  %v4510_v55 = vld [vmem:[#allocation4 + $0x1c0] ss:$16 sps:$4 sm:$0xff]  }
 0x158   :  { %2689 = vmatprep.subr.bf16.mxu0 %v4506_v17  ;;  %2796 = vmatprep.subr.bf16.mxu1 %v4557_v0 }
 0x159   :  { %2797 = vmatpush1.bf16.msra.mxu1 %v4555_v54 }
 0x15a   :  { %2798 = vmatprep.subr.bf16.mxu1 %v4563_v30 }
 0x15b   :  { %2690 = vmatpush1.bf16.msra.mxu0 %v4504_v4 }
 0x15c   :  { %2691 = vmatprep.subr.bf16.mxu0 %v4509_v32 }
 0x15d   :  { %1636 = vmatmul.mubr.bf16.gmra.mxu0 %v5097_v57  ;;  %v4518_v57 = vld [vmem:[#allocation4 + $0x184] ss:$16 sps:$4 sm:$0xff]   ;;  %2799 = vmatpush1.bf16.msra.mxu1 %v4561_v35 }
 0x15e   :  { %1749 = vmatmul.mubr.bf16.gmra.mxu1 %v5099_v60  ;;  %1645 = vmatprep.mubr.bf16.mxu0 %v5113_v50  ;;  %v4569_v60 = vld [vmem:[#allocation4 + $0x224] ss:$16 sps:$4 sm:$0xff]   ;;  %v4567_v50 = vld [vmem:[#allocation4 + $0x220] ss:$16 sps:$4 sm:$0xff]  }
 0x15f   :  { %1758 = vmatprep.mubr.bf16.mxu1 %v5115_v51  ;;  %2692 = vmatpush2.bf16.msra.mxu0 %v4507_v37  ;;  %v4516_v51 = vld [vmem:[#allocation4 + $0x180] ss:$16 sps:$4 sm:$0xff]  }
 0x160   :  { %2693 = vmatprep.subr.bf16.mxu0 %v4512_v6  ;;  %2800 = vmatprep.subr.bf16.mxu1 %v4569_v60 }
 0x161   :  { %2801 = vmatpush1.bf16.msra.mxu1 %v4567_v50 }
 0x162   :  { %2802 = vmatprep.subr.bf16.mxu1 %v4575_v45  ;;  %v4534_v45 = vld [vmem:[#allocation4 + $0xe8] ss:$16 sps:$4 sm:$0xff]  }
 0x163   :  { %2694 = vmatpush2.bf16.msra.mxu0 %v4510_v55 }
 0x164   :  { %2695 = vmatprep.subr.bf16.mxu0 %v4515_v39 }
 0x165   :  { %1646 = vmatmul.mubr.bf16.gmra.mxu0 %v5117_v53  ;;  %v4524_v53 = vld [vmem:[#allocation4 + $0x144] ss:$16 sps:$4 sm:$0xff]   ;;  %2803 = vmatpush1.bf16.msra.mxu1 %v4573_v46 }
 0x166   :  { %1759 = vmatmul.mubr.bf16.gmra.mxu1 %v5119_v56  ;;  %1655 = vmatprep.mubr.bf16.mxu0 %v5133_v52  ;;  %v4581_v56 = vld [vmem:[#allocation4 + $0x3e4] ss:$16 sps:$4 sm:$0xff]   ;;  %v4579_v52 = vld [vmem:[#allocation4 + $0x3e0] ss:$16 sps:$4 sm:$0xff]  }
 0x167   :  { %1768 = vmatprep.mubr.bf16.mxu1 %v5135_v1  ;;  %2696 = vmatpush2.bf16.msra.mxu0 %v4513_v42  ;;  %v4522_v1 = vld [vmem:[#allocation4 + $0x140] ss:$16 sps:$4 sm:$0xff]  }
 0x168   :  { %2697 = vmatprep.subr.bf16.mxu0 %v4518_v57  ;;  %2804 = vmatprep.subr.bf16.mxu1 %v4581_v56 }
 0x169   :  { %2805 = vmatpush2.bf16.msra.mxu1 %v4579_v52 }
 0x16a   :  { %2806 = vmatprep.subr.bf16.mxu1 %v4587_v28 }
 0x16b   :  { %2698 = vmatpush2.bf16.msra.mxu0 %v4516_v51 }
 0x16c   :  { %2699 = vmatprep.subr.bf16.mxu0 %v4521_v43 }
 0x16d   :  { %1656 = vmatmul.mubr.bf16.gmra.mxu0 %v5137_v5  ;;  %v4530_v5 = vld [vmem:[#allocation4 + $0x104] ss:$16 sps:$4 sm:$0xff]   ;;  %2807 = vmatpush2.bf16.msra.mxu1 %v4585_v48 }
 0x16e   :  { %1769 = vmatmul.mubr.bf16.gmra.mxu1 %v5139_v7  ;;  %1665 = vmatprep.mubr.bf16.mxu0 %v5153_v29  ;;  %v4593_v7 = vld [vmem:[#allocation4 + $0x3a4] ss:$16 sps:$4 sm:$0xff]   ;;  %v4591_v29 = vld [vmem:[#allocation4 + $0x3a0] ss:$16 sps:$4 sm:$0xff]  }
 0x16f   :  { %1778 = vmatprep.mubr.bf16.mxu1 %v5155_v47  ;;  %2700 = vmatpush2.bf16.msra.mxu0 %v4519_v31  ;;  %v4528_v47 = vld [vmem:[#allocation4 + $0x100] ss:$16 sps:$4 sm:$0xff]  }
 0x170   :  { %2701 = vmatprep.subr.bf16.mxu0 %v4524_v53  ;;  %2808 = vmatprep.subr.bf16.mxu1 %v4593_v7  ;;  %v4542_v53 = vld [vmem:[#allocation4 + $0xcc] ss:$16 sps:$4 sm:$0xff]   ;;  %v4540_v7 = vld [vmem:[#allocation4 + $0xc8] ss:$16 sps:$4 sm:$0xff]  }
 0x171   :  { %2809 = vmatpush2.bf16.msra.mxu1 %v4591_v29 }
 0x172   :  { %2810 = vmatprep.subr.bf16.mxu1 %v4599_v9 }
 0x173   :  { %2702 = vmatpush2.bf16.msra.mxu0 %v4522_v1 }
 0x174   :  { %2703 = vmatprep.subr.bf16.mxu0 %v4527_v33 }
 0x175   :  { %1666 = vmatmul.mubr.bf16.gmra.mxu0 %v5157_v49  ;;  %2811 = vmatpush2.bf16.msra.mxu1 %v4597_v10  ;;  %v4611_v49 = vld [vmem:[#allocation4 + $0x344] ss:$16 sps:$4 sm:$0xff]  }
 0x176   :  { %1779 = vmatmul.mubr.bf16.gmra.mxu1 %v5159_v61  ;;  %2812 = vmatprep.subr.bf16.mxu1 %v4605_v11  ;;  %v4617_v61 = vld [vmem:[#allocation4 + $0x324] ss:$16 sps:$4 sm:$0xff]  }
 0x177   :  { %2704 = vmatpush2.bf16.msra.mxu0 %v4525_v2 }
 0x178   :  { %2705 = vmatprep.subr.bf16.mxu0 %v4530_v5 }
 0x179   :  { %2813 = vmatpush2.bf16.msra.mxu1 %v4603_v12 }
 0x17a   :  { %2814 = vmatprep.subr.bf16.mxu1 %v4611_v49 }
 0x17b   :  { %2706 = vmatpush2.bf16.msra.mxu0 %v4528_v47 }
 0x17c   :  { %2901 = vmatprep.subr.bf16.mxu0 %v4536_v8  ;;  %v4548_v8 = vld [vmem:[#allocation4 + $0xac] ss:$16 sps:$4 sm:$0xff]  }
 0x17d   :  { %2815 = vmatpush2.bf16.msra.mxu1 %v4609_v13 }
 0x17e   :  { %2816 = vmatprep.subr.bf16.mxu1 %v4617_v61 }
 0x181   :  { %2817 = vmatpush2.bf16.msra.mxu1 %v4615_v16 }
 0x182   :  { %2818 = vmatprep.subr.bf16.mxu1 %v4623_v58 }
 0x185   :  { %2819 = vmatpush2.bf16.msra.mxu1 %v4621_v19 }
 0x186   :  { %3014 = vmatprep.subr.bf16.mxu1 %v4629_v59  ;;  %v4546_v59 = vld [vmem:[#allocation4 + $0xa8] ss:$16 sps:$4 sm:$0xff]  }
 0x1bd   :  { %v1371_v38 = vpop.f32.mrf.mxu0  ;;  %v1484_v44 = vpop.f32.mrf.mxu1 }
 0x1be   :  { %v1372_v14 = vadd.f32 %v1371_v38, %v5208_v63 }
 0x1bf   :  { %v1373_v25 = vpop.f32.mrf.mxu0  ;;  %v1486_v40 = vpop.f32.mrf.mxu1 }
 0x1c0   :  { %v1374_v41 = vadd.f32 %v1373_v25, %v5204_v62  ;;  %v1485_v34 = vadd.f32 %v1484_v44, %v1372_v14  ;;  %v4554_v25 = vld [vmem:[#allocation4 + $0x8c] ss:$16 sps:$4 sm:$0xff]  }
 0x1c1   :  { %v1375_v15 = vpop.f32.mrf.mxu0  ;;  %v1488_v26 = vpop.f32.mrf.mxu1 }
 0x1c2   :  { %v1376_v27 = vadd.f32 %v1375_v15, %v5208_v63  ;;  %v1487_v3 = vadd.f32 %v1486_v40, %v1374_v41  ;;  %v1789_v42 = vmax.f32 %v1485_v34, 0.0  ;;  %v4560_v34 = vld [vmem:[#allocation4 + $0x6c] ss:$16 sps:$4 sm:$0xff]  }
 0x1c3   :  { %v1377_v17 = vpop.f32.mrf.mxu0  ;;  %v1490_v18 = vpop.f32.mrf.mxu1 }
 0x1c4   :  { %v1489_v4 = vadd.f32 %v1488_v26, %v1376_v27  ;;  %v1378_v32 = vadd.f32 %v1377_v17, %v5204_v62  ;;  %v1790_v55 = vmax.f32 %v1487_v3, 0.0  ;;  %v4552_v3 = vld [vmem:[#allocation4 + $0x88] ss:$16 sps:$4 sm:$0xff]  }
 0x1c5   :  { %v1381_v36 = vpop.f32.mrf.mxu0  ;;  %v1494_v6 = vpop.f32.mrf.mxu1 }
 0x1c6   :  { %v1491_v37 = vadd.f32 %v1490_v18, %v1378_v32  ;;  %v1793_v0 = vmax.f32 %v1489_v4, 0.0  ;;  %v1382_v57 = vadd.f32 %v1381_v36, %v5208_v63 }
 0x1c7   :  { %v1383_v54 = vpop.f32.mrf.mxu0  ;;  %v1496_v35 = vpop.f32.mrf.mxu1 }
 0x1c8   :  { %v1794_v39 = vmax.f32 %v1491_v37, 0.0  ;;  %v1384_v30 = vadd.f32 %v1383_v54, %v5204_v62  ;;  %v5219_v46 = vpack.c.bf16 %v1793_v0, %v1789_v42  ;;  %v1495_v28 = vadd.f32 %v1494_v6, %v1382_v57  ;;  %v4558_v57 = vld [vmem:[#allocation4 + $0x68] ss:$16 sps:$4 sm:$0xff]  }
 0x1c9   :  { %v1385_v60 = vpop.f32.mrf.mxu0  ;;  %v1498_v51 = vpop.f32.mrf.mxu1 }
 0x1ca   :  { %v1386_v50 = vadd.f32 %v1385_v60, %v5208_v63  ;;  %v5217_v43 = vpack.c.bf16 %v1794_v39, %v1790_v55  ;;  %v1497_v56 = vadd.f32 %v1496_v35, %v1384_v30  ;;  %v1797_v49 = vmax.f32 %v1495_v28, 0.0 }
 0x1cb   :  { %v1387_v31 = vpop.f32.mrf.mxu0  ;;  %v1500_v33 = vpop.f32.mrf.mxu1 }
 0x1cc   :  { %v1499_v52 = vadd.f32 %v1498_v51, %v1386_v50  ;;  %v1388_v1 = vadd.f32 %v1387_v31, %v5204_v62  ;;  %2707 = vmatprep.mubr.bf16.mxu0 %v5217_v43  ;;  %v1798_v9 = vmax.f32 %v1497_v56, 0.0  ;;  %v4566_v51 = vld [vmem:[#allocation4 + $0x4c] ss:$16 sps:$4 sm:$0xff]  }
 0x1cd   :  { %v1391_v48 = vpop.f32.mrf.mxu0  ;;  %2708 = vmatmul.mubr.bf16.vlgmr.msra.gmra.mxu0 %v5219_v46  ;;  %v1504_v5 = vpop.f32.mrf.mxu1 }
 0x1ce   :  { %v1501_v2 = vadd.f32 %v1500_v33, %v1388_v1  ;;  %2902 = vmatpush1.bf16.msra.mxu0 %v4534_v45  ;;  %v1801_v29 = vmax.f32 %v1499_v52, 0.0  ;;  %v1392_v13 = vadd.f32 %v1391_v48, %v5208_v63  ;;  %v4564_v48 = vld [vmem:[#allocation4 + $0x48] ss:$16 sps:$4 sm:$0xff]  }
 0x1cf   :  { %v1393_v47 = vpop.f32.mrf.mxu0  ;;  %2903 = vmatprep.subr.bf16.mxu0 %v4542_v53  ;;  %v1506_v12 = vpop.f32.mrf.mxu1 }
 0x1d0   :  { %v1802_v10 = vmax.f32 %v1501_v2, 0.0  ;;  %v1394_v11 = vadd.f32 %v1393_v47, %v5204_v62  ;;  %v5229_v38 = vpack.c.bf16 %v1801_v29, %v1797_v49  ;;  %v1505_v26 = vadd.f32 %v1504_v5, %v1392_v13 }
 0x1d1   :  { %v1395_v61 = vpop.f32.mrf.mxu0  ;;  %v1508_v58 = vpop.f32.mrf.mxu1 }
 0x1d2   :  { %v1396_v16 = vadd.f32 %v1395_v61, %v5208_v63  ;;  %2904 = vmatpush1.bf16.msra.mxu0 %v4540_v7  ;;  %v5227_v19 = vpack.c.bf16 %v1802_v10, %v1798_v9  ;;  %v1507_v40 = vadd.f32 %v1506_v12, %v1394_v11  ;;  %v1805_v54 = vmax.f32 %v1505_v26, 0.0  ;;  %v4572_v7 = vld [vmem:[#allocation4 + $0x2c] ss:$16 sps:$4 sm:$0xff]  }
 0x1d3   :  { %v1397_v44 = vpop.f32.mrf.mxu0  ;;  %2905 = vmatprep.subr.bf16.mxu0 %v4548_v8  ;;  %v1510_v15 = vpop.f32.mrf.mxu1 }
 0x1d4   :  { %v1509_v41 = vadd.f32 %v1508_v58, %v1396_v16  ;;  %v1398_v14 = vadd.f32 %v1397_v44, %v5204_v62  ;;  %2717 = vmatprep.mubr.bf16.mxu0 %v5227_v19  ;;  %v1806_v36 = vmax.f32 %v1507_v40, 0.0  ;;  %v4570_v16 = vld [vmem:[#allocation4 + $0x28] ss:$16 sps:$4 sm:$0xff]   ;;  %v4578_v44 = vld [vmem:[#allocation4 + $0xc] ss:$16 sps:$4 sm:$0xff]  }
 0x1d5   :  { %v1401_v27 = vpop.f32.mrf.mxu0  ;;  %2718 = vmatmul.mubr.bf16.gmra.mxu0 %v5229_v38  ;;  %v1514_v18 = vpop.f32.mrf.mxu1 }
 0x1d6   :  { %v1511_v17 = vadd.f32 %v1510_v15, %v1398_v14  ;;  %2906 = vmatpush1.bf16.msra.mxu0 %v4546_v59  ;;  %v1809_v4 = vmax.f32 %v1509_v41, 0.0  ;;  %v1402_v55 = vadd.f32 %v1401_v27, %v5208_v63 }
 0x1d7   :  { %v1403_v32 = vpop.f32.mrf.mxu0  ;;  %2907 = vmatprep.subr.bf16.mxu0 %v4554_v25  ;;  %v1516_v0 = vpop.f32.mrf.mxu1 }
 0x1d8   :  { %v1810_v37 = vmax.f32 %v1511_v17, 0.0  ;;  %v1404_v6 = vadd.f32 %v1403_v32, %v5204_v62  ;;  %v5239_v60 = vpack.c.bf16 %v1809_v4, %v1805_v54  ;;  %v1515_v52 = vadd.f32 %v1514_v18, %v1402_v55  ;;  %v4576_v18 = vld [vmem:[#allocation4 + $0x8] ss:$16 sps:$4 sm:$0xff]   ;;  %v4584_v32 = vld [vmem:[#allocation4 + $0x1ec] ss:$16 sps:$4 sm:$0xff]  }
 0x1d9   :  { %v1405_v39 = vpop.f32.mrf.mxu0  ;;  %v1518_v35 = vpop.f32.mrf.mxu1 }
 0x1da   :  { %v1406_v30 = vadd.f32 %v1405_v39, %v5208_v63  ;;  %2908 = vmatpush1.bf16.msra.mxu0 %v4552_v3  ;;  %v5237_v42 = vpack.c.bf16 %v1810_v37, %v1806_v36  ;;  %v1517_v45 = vadd.f32 %v1516_v0, %v1404_v6  ;;  %v1813_v10 = vmax.f32 %v1515_v52, 0.0 }
 0x1db   :  { %v1407_v50 = vpop.f32.mrf.mxu0  ;;  %2909 = vmatprep.subr.bf16.mxu0 %v4560_v34  ;;  %v1520_v56 = vpop.f32.mrf.mxu1 }
 0x1dc   :  { %v1519_v31 = vadd.f32 %v1518_v35, %v1406_v30  ;;  %v1408_v53 = vadd.f32 %v1407_v50, %v5204_v62  ;;  %2727 = vmatprep.mubr.bf16.mxu0 %v5237_v42  ;;  %v1814_v29 = vmax.f32 %v1517_v45, 0.0  ;;  %v4590_v45 = vld [vmem:[#allocation4 + $0x1cc] ss:$16 sps:$4 sm:$0xff]  }
 0x1dd   :  { %v1411_v1 = vpop.f32.mrf.mxu0  ;;  %2728 = vmatmul.mubr.bf16.gmra.mxu0 %v5239_v60  ;;  %v1524_v28 = vpop.f32.mrf.mxu1 }
 0x1de   :  { %v1521_v33 = vadd.f32 %v1520_v56, %v1408_v53  ;;  %2910 = vmatpush1.bf16.msra.mxu0 %v4558_v57  ;;  %v1817_v2 = vmax.f32 %v1519_v31, 0.0  ;;  %v1412_v11 = vadd.f32 %v1411_v1, %v5208_v63  ;;  %v4582_v57 = vld [vmem:[#allocation4 + $0x1e8] ss:$16 sps:$4 sm:$0xff]  }
 0x1df   :  { %v1413_v5 = vpop.f32.mrf.mxu0  ;;  %2911 = vmatprep.subr.bf16.mxu0 %v4566_v51  ;;  %v1526_v9 = vpop.f32.mrf.mxu1 }
 0x1e0   :  { %v1818_v47 = vmax.f32 %v1521_v33, 0.0  ;;  %v1414_v8 = vadd.f32 %v1413_v5, %v5204_v62  ;;  %v5249_v58 = vpack.c.bf16 %v1817_v2, %v1813_v10  ;;  %v1525_v15 = vadd.f32 %v1524_v28, %v1412_v11  ;;  %v4588_v2 = vld [vmem:[#allocation4 + $0x1c8] ss:$16 sps:$4 sm:$0xff]  }
 0x1e1   :  { %v1415_v12 = vpop.f32.mrf.mxu0  ;;  %v1528_v13 = vpop.f32.mrf.mxu1 }
 0x1e2   :  { %v1416_v49 = vadd.f32 %v1415_v12, %v5208_v63  ;;  %2912 = vmatpush1.bf16.msra.mxu0 %v4564_v48  ;;  %v5247_v61 = vpack.c.bf16 %v1818_v47, %v1814_v29  ;;  %v1527_v25 = vadd.f32 %v1526_v9, %v1414_v8  ;;  %v1821_v0 = vmax.f32 %v1525_v15, 0.0  ;;  %v4596_v29 = vld [vmem:[#allocation4 + $0x1ac] ss:$16 sps:$4 sm:$0xff]  }
 0x1e3   :  { %v1417_v59 = vpop.f32.mrf.mxu0  ;;  %2913 = vmatprep.subr.bf16.mxu0 %v4572_v7  ;;  %v1530_v14 = vpop.f32.mrf.mxu1 }
 0x1e4   :  { %v1529_v40 = vadd.f32 %v1528_v13, %v1416_v49  ;;  %v1418_v41 = vadd.f32 %v1417_v59, %v5204_v62  ;;  %2737 = vmatprep.mubr.bf16.mxu0 %v5247_v61  ;;  %v1822_v34 = vmax.f32 %v1527_v25, 0.0 }
 0x1e5   :  { %v1421_v26 = vpop.f32.mrf.mxu0  ;;  %2738 = vmatmul.mubr.bf16.gmra.mxu0 %v5249_v58  ;;  %v1534_v17 = vpop.f32.mrf.mxu1 }
 0x1e6   :  { %v1531_v27 = vadd.f32 %v1530_v14, %v1418_v41  ;;  %2914 = vmatpush1.bf16.msra.mxu0 %v4570_v16  ;;  %v1825_v3 = vmax.f32 %v1529_v40, 0.0  ;;  %v1422_v54 = vadd.f32 %v1421_v26, %v5208_v63  ;;  %v4602_v41 = vld [vmem:[#allocation4 + $0x18c] ss:$16 sps:$4 sm:$0xff]  }
 0x1e7   :  { %v1423_v4 = vpop.f32.mrf.mxu0  ;;  %2915 = vmatprep.subr.bf16.mxu0 %v4578_v44  ;;  %v1536_v6 = vpop.f32.mrf.mxu1  ;;  %v4594_v44 = vld [vmem:[#allocation4 + $0x1a8] ss:$16 sps:$4 sm:$0xff]  }
 0x1e8   :  { %v1826_v36 = vmax.f32 %v1531_v27, 0.0  ;;  %v1424_v37 = vadd.f32 %v1423_v4, %v5204_v62  ;;  %v5259_v50 = vpack.c.bf16 %v1825_v3, %v1821_v0  ;;  %v1535_v1 = vadd.f32 %v1534_v17, %v1422_v54 }
 0x1e9   :  { %v1425_v55 = vpop.f32.mrf.mxu0  ;;  %v1538_v30 = vpop.f32.mrf.mxu1 }
 0x1ea   :  { %v1426_v39 = vadd.f32 %v1425_v55, %v5208_v63  ;;  %2916 = vmatpush1.bf16.msra.mxu0 %v4576_v18  ;;  %v5257_v35 = vpack.c.bf16 %v1826_v36, %v1822_v34  ;;  %v1537_v31 = vadd.f32 %v1536_v6, %v1424_v37  ;;  %v1829_v11 = vmax.f32 %v1535_v1, 0.0  ;;  %v4608_v37 = vld [vmem:[#allocation4 + $0x16c] ss:$16 sps:$4 sm:$0xff]  }
 0x1eb   :  { %v1427_v51 = vpop.f32.mrf.mxu0  ;;  %2917 = vmatprep.subr.bf16.mxu0 %v4584_v32  ;;  %v1540_v52 = vpop.f32.mrf.mxu1  ;;  %v4600_v32 = vld [vmem:[#allocation4 + $0x188] ss:$16 sps:$4 sm:$0xff]   ;;  %v4614_v1 = vld [vmem:[#allocation4 + $0x14c] ss:$16 sps:$4 sm:$0xff]  }
 0x1ec   :  { %v1539_v53 = vadd.f32 %v1538_v30, %v1426_v39  ;;  %v1428_v56 = vadd.f32 %v1427_v51, %v5204_v62  ;;  %2747 = vmatprep.mubr.bf16.mxu0 %v5257_v35  ;;  %v1830_v47 = vmax.f32 %v1537_v31, 0.0 }
 0x1ed   :  { %v1431_v33 = vpop.f32.mrf.mxu0  ;;  %2748 = vmatmul.mubr.bf16.gmra.mxu0 %v5259_v50  ;;  %v1544_v48 = vpop.f32.mrf.mxu1 }
 0x1ee   :  { %v1541_v28 = vadd.f32 %v1540_v52, %v1428_v56  ;;  %2918 = vmatpush2.bf16.msra.mxu0 %v4582_v57  ;;  %v1833_v5 = vmax.f32 %v1539_v53, 0.0  ;;  %v1432_v12 = vadd.f32 %v1431_v33, %v5208_v63  ;;  %v4606_v53 = vld [vmem:[#allocation4 + $0x168] ss:$16 sps:$4 sm:$0xff]  }
 0x1ef   :  { %v1433_v7 = vpop.f32.mrf.mxu0  ;;  %2919 = vmatprep.subr.bf16.mxu0 %v4590_v45  ;;  %v1546_v10 = vpop.f32.mrf.mxu1 }
 0x1f0   :  { %v1834_v8 = vmax.f32 %v1541_v28, 0.0  ;;  %v1434_v9 = vadd.f32 %v1433_v7, %v5204_v62  ;;  %v5269_v25 = vpack.c.bf16 %v1833_v5, %v1829_v11  ;;  %v1545_v17 = vadd.f32 %v1544_v48, %v1432_v12  ;;  %v4620_v11 = vld [vmem:[#allocation4 + $0x12c] ss:$16 sps:$4 sm:$0xff]  }
 0x1f1   :  { %v1435_v49 = vpop.f32.mrf.mxu0  ;;  %v1548_v16 = vpop.f32.mrf.mxu1  ;;  %v5289_v7 = vrot.slane %v5200_v20, %v4988_v24 }
 0x1f2   :  { %v1436_v13 = vadd.f32 %v1435_v49, %v5208_v63  ;;  %2920 = vmatpush2.bf16.msra.mxu0 %v4588_v2  ;;  %v5267_v59 = vpack.c.bf16 %v1834_v8, %v1830_v47  ;;  %v1547_v14 = vadd.f32 %v1546_v10, %v1434_v9  ;;  %v1837_v39 = vmax.f32 %v1545_v17, 0.0  ;;  %v4612_v9 = vld [vmem:[#allocation4 + $0x148] ss:$16 sps:$4 sm:$0xff]  }
 0x1f3   :  { %v1437_v40 = vpop.f32.mrf.mxu0  ;;  %2921 = vmatprep.subr.bf16.mxu0 %v4596_v29  ;;  %v1550_v27 = vpop.f32.mrf.mxu1 }
 0x1f4   :  { %v1549_v15 = vadd.f32 %v1548_v16, %v1436_v13  ;;  %v1438_v26 = vadd.f32 %v1437_v40, %v5204_v62  ;;  %2757 = vmatprep.mubr.bf16.mxu0 %v5267_v59  ;;  %v1838_v6 = vmax.f32 %v1547_v14, 0.0 }
 0x1f5   :  { %v1441_v18 = vpop.f32.mrf.mxu0  ;;  %2758 = vmatmul.mubr.bf16.gmra.mxu0 %v5269_v25  ;;  %v1554_v4 = vpop.f32.mrf.mxu1 }
 0x1f6   :  { %v1551_v3 = vadd.f32 %v1550_v27, %v1438_v26  ;;  %2922 = vmatpush2.bf16.msra.mxu0 %v4594_v44  ;;  %v1841_v34 = vmax.f32 %v1549_v15, 0.0  ;;  %v1442_v30 = vadd.f32 %v1441_v18, %v5208_v63  ;;  %v4618_v26 = vld [vmem:[#allocation4 + $0x128] ss:$16 sps:$4 sm:$0xff]   ;;  %v4626_v18 = vld [vmem:[#allocation4 + $0x10c] ss:$16 sps:$4 sm:$0xff]  }
 0x1f7   :  { %v1443_v36 = vpop.f32.mrf.mxu0  ;;  %2923 = vmatprep.subr.bf16.mxu0 %v4602_v41  ;;  %v1556_v55 = vpop.f32.mrf.mxu1 }
 0x1f8   :  { %v1842_v0 = vmax.f32 %v1551_v3, 0.0  ;;  %v1444_v54 = vadd.f32 %v1443_v36, %v5204_v62  ;;  %v5279_v56 = vpack.c.bf16 %v1841_v34, %v1837_v39  ;;  %v1555_v5 = vadd.f32 %v1554_v4, %v1442_v30 }
 0x1f9   :  { %v1445_v57 = vpop.f32.mrf.mxu0  ;;  %v1558_v45 = vpop.f32.mrf.mxu1 }
 0x1fa   :  { %v1446_v51 = vadd.f32 %v1445_v57, %v5208_v63  ;;  %2924 = vmatpush2.bf16.msra.mxu0 %v4600_v32  ;;  %v5277_v31 = vpack.c.bf16 %v1842_v0, %v1838_v6  ;;  %v1557_v33 = vadd.f32 %v1556_v55, %v1444_v54  ;;  %v5285_v63 = vrot.slane %v5200_v20, %v4984_v22  ;;  %v4624_v54 = vld [vmem:[#allocation4 + $0x108] ss:$16 sps:$4 sm:$0xff]  }
 0x1fb   :  { %v1447_v52 = vpop.f32.mrf.mxu0  ;;  %2925 = vmatprep.subr.bf16.mxu0 %v4608_v37  ;;  %v1560_v2 = vpop.f32.mrf.mxu1  ;;  %v1845_v44 = vmax.f32 %v1555_v5, 0.0 }
 0x1fc   :  { %v1559_v28 = vadd.f32 %v1558_v45, %v1446_v51  ;;  %v1448_v48 = vadd.f32 %v1447_v52, %v5204_v62  ;;  %2767 = vmatprep.mubr.bf16.mxu0 %v5277_v31  ;;  %v1846_v12 = vmax.f32 %v1557_v33, 0.0 }
 0x1fd   :  { %v1597_v29 = vpop.f32.mrf.mxu0  ;;  %2768 = vmatmul.mubr.bf16.gmra.mxu0 %v5279_v56 }
 0x1fe   :  { %v1561_v47 = vadd.f32 %v1560_v2, %v1448_v48  ;;  %v1710_v8 = vpop.f32.mrf.mxu1  ;;  %2926 = vmatpush2.bf16.msra.mxu0 %v4606_v53  ;;  %v1849_v62 = vmax.f32 %v1559_v28, 0.0  ;;  %v1598_v20 = vadd.f32 %v1597_v29, %v5289_v7  ;;  %v4632_v29 = vld [vmem:[#allocation4 + $0x2cc] ss:$16 sps:$4 sm:$0xff]  }
 0x1ff   :  { %v1599_v10 = vpop.f32.mrf.mxu0  ;;  %2927 = vmatprep.subr.bf16.mxu0 %v4614_v1 }
 0x200   :  { %v1850_v49 = vmax.f32 %v1561_v47, 0.0  ;;  %v1600_v13 = vadd.f32 %v1599_v10, %v5285_v63  ;;  %v1712_v16 = vpop.f32.mrf.mxu1  ;;  %v5297_v27 = vpack.c.bf16 %v1849_v62, %v1845_v44  ;;  %v1711_v36 = vadd.f32 %v1710_v8, %v1598_v20  ;;  %v4635_v20 = vld [vmem:[#allocation4 + $0x2ac] ss:$16 sps:$4 sm:$0xff]  }
 0x201   :  { %v1601_v40 = vpop.f32.mrf.mxu0 }
 0x202   :  { %v1602_v41 = vadd.f32 %v1601_v40, %v5289_v7  ;;  %v1714_v14 = vpop.f32.mrf.mxu1  ;;  %2928 = vmatpush2.bf16.msra.mxu0 %v4612_v9  ;;  %v5295_v15 = vpack.c.bf16 %v1850_v49, %v1846_v12  ;;  %v1713_v3 = vadd.f32 %v1712_v16, %v1600_v13  ;;  %v1791_v53 = vmax.f32 %v1711_v36, 0.0  ;;  %v4630_v13 = vld [vmem:[#allocation4 + $0x2c8] ss:$16 sps:$4 sm:$0xff]  }
 0x203   :  { %v1603_v17 = vpop.f32.mrf.mxu0  ;;  %2929 = vmatprep.subr.bf16.mxu0 %v4620_v11 }
 0x204   :  { %v1715_v4 = vadd.f32 %v1714_v14, %v1602_v41  ;;  %v1604_v32 = vadd.f32 %v1603_v17, %v5285_v63  ;;  %v1716_v34 = vpop.f32.mrf.mxu1  ;;  %2777 = vmatprep.mubr.bf16.mxu0 %v5295_v15  ;;  %v1792_v30 = vmax.f32 %v1713_v3, 0.0 }
 0x205   :  { %v1607_v37 = vpop.f32.mrf.mxu0  ;;  %2778 = vmatmul.mubr.bf16.gmra.mxu0 %v5297_v27 }
 0x206   :  { %v1717_v6 = vadd.f32 %v1716_v34, %v1604_v32  ;;  %v1720_v0 = vpop.f32.mrf.mxu1  ;;  %2930 = vmatpush2.bf16.msra.mxu0 %v4618_v26  ;;  %2933 = vmatprep.mubr.bf16.mxu0 %v5217_v43  ;;  %v1795_v55 = vmax.f32 %v1715_v4, 0.0  ;;  %v1608_v52 = vadd.f32 %v1607_v37, %v5289_v7  ;;  %v4627_v43 = vld [vmem:[#allocation4 + $0x2e8] ss:$16 sps:$4 sm:$0xff]   ;;  %v4638_v37 = vld [vmem:[#allocation4 + $0x28c] ss:$16 sps:$4 sm:$0xff]  }
 0x207   :  { %v1609_v39 = vpop.f32.mrf.mxu0  ;;  %2931 = vmatprep.subr.bf16.mxu0 %v4626_v18 }
 0x208   :  { %v1796_v57 = vmax.f32 %v1717_v6, 0.0  ;;  %v1610_v51 = vadd.f32 %v1609_v39, %v5285_v63  ;;  %v1722_v45 = vpop.f32.mrf.mxu1  ;;  %v5308_v2 = vpack.c.bf16 %v1795_v55, %v1791_v53  ;;  %v1721_v10 = vadd.f32 %v1720_v0, %v1608_v52 }
 0x209   :  { %v1611_v1 = vpop.f32.mrf.mxu0 }
 0x20a   :  { %v1612_v33 = vadd.f32 %v1611_v1, %v5289_v7  ;;  %v1724_v28 = vpop.f32.mrf.mxu1  ;;  %2932 = vmatpush2.bf16.msra.mxu0 %v4624_v54  ;;  %v5306_v48 = vpack.c.bf16 %v1796_v57, %v1792_v30  ;;  %v1723_v47 = vadd.f32 %v1722_v45, %v1610_v51  ;;  %v1799_v17 = vmax.f32 %v1721_v10, 0.0  ;;  %v4636_v45 = vld [vmem:[#allocation4 + $0x288] ss:$16 sps:$4 sm:$0xff]   ;;  %v4641_v1 = vld [vmem:[#allocation4 + $0x26c] ss:$16 sps:$4 sm:$0xff]  }
 0x20b   :  { %v1613_v5 = vpop.f32.mrf.mxu0 }
 0x20c   :  { %v1725_v8 = vadd.f32 %v1724_v28, %v1612_v33  ;;  %v1614_v9 = vadd.f32 %v1613_v5, %v5285_v63  ;;  %v1726_v62 = vpop.f32.mrf.mxu1  ;;  %2820 = vmatprep.mubr.bf16.mxu1 %v5306_v48  ;;  %v1800_v40 = vmax.f32 %v1723_v47, 0.0 }
 0x20d   :  { %v1617_v11 = vpop.f32.mrf.mxu0  ;;  %2821 = vmatmul.mubr.bf16.vlgmr.msra.gmra.mxu1 %v5308_v2  ;;  %2934 = vmatmul.mubr.bf16.vlgmr.msra.gmra.mxu0 %v5219_v46 }
 0x20e   :  { %v1727_v12 = vadd.f32 %v1726_v62, %v1614_v9  ;;  %v1730_v49 = vpop.f32.mrf.mxu1  ;;  %3015 = vmatpush1.bf16.msra.mxu1 %v4627_v43  ;;  %2943 = vmatprep.mubr.bf16.mxu0 %v5227_v19  ;;  %v1803_v16 = vmax.f32 %v1725_v8, 0.0  ;;  %v1618_v18 = vadd.f32 %v1617_v11, %v5289_v7  ;;  %v4633_v19 = vld [vmem:[#allocation4 + $0x2a8] ss:$16 sps:$4 sm:$0xff]  }
 0x20f   :  { %v1619_v44 = vpop.f32.mrf.mxu0  ;;  %3016 = vmatprep.subr.bf16.mxu1 %v4632_v29 }
 0x210   :  { %v1804_v41 = vmax.f32 %v1727_v12, 0.0  ;;  %v1620_v14 = vadd.f32 %v1619_v44, %v5285_v63  ;;  %v1732_v26 = vpop.f32.mrf.mxu1  ;;  %v5320_v34 = vpack.c.bf16 %v1803_v16, %v1799_v17  ;;  %v1731_v39 = vadd.f32 %v1730_v49, %v1618_v18  ;;  %v4644_v12 = vld [vmem:[#allocation4 + $0x24c] ss:$16 sps:$4 sm:$0xff]  }
 0x211   :  { %v1621_v3 = vpop.f32.mrf.mxu0 }
 0x212   :  { %v1622_v46 = vadd.f32 %v1621_v3, %v5289_v7  ;;  %v1734_v4 = vpop.f32.mrf.mxu1  ;;  %3017 = vmatpush1.bf16.msra.mxu1 %v4630_v13  ;;  %v5318_v32 = vpack.c.bf16 %v1804_v41, %v1800_v40  ;;  %v1733_v6 = vadd.f32 %v1732_v26, %v1620_v14  ;;  %v1807_v29 = vmax.f32 %v1731_v39, 0.0  ;;  %v4642_v26 = vld [vmem:[#allocation4 + $0x248] ss:$16 sps:$4 sm:$0xff]   ;;  %v4647_v3 = vld [vmem:[#allocation4 + $0x22c] ss:$16 sps:$4 sm:$0xff]  }
 0x213   :  { %v1623_v36 = vpop.f32.mrf.mxu0  ;;  %3018 = vmatprep.subr.bf16.mxu1 %v4635_v20 }
 0x214   :  { %v1735_v0 = vadd.f32 %v1734_v4, %v1622_v46  ;;  %v1624_v54 = vadd.f32 %v1623_v36, %v5285_v63  ;;  %v1736_v55 = vpop.f32.mrf.mxu1  ;;  %2830 = vmatprep.mubr.bf16.mxu1 %v5318_v32  ;;  %v1808_v33 = vmax.f32 %v1733_v6, 0.0 }
 0x215   :  { %v1627_v30 = vpop.f32.mrf.mxu0  ;;  %2831 = vmatmul.mubr.bf16.gmra.mxu1 %v5320_v34  ;;  %2944 = vmatmul.mubr.bf16.gmra.mxu0 %v5229_v38 }
 0x216   :  { %v1737_v57 = vadd.f32 %v1736_v55, %v1624_v54  ;;  %v1740_v51 = vpop.f32.mrf.mxu1  ;;  %3019 = vmatpush1.bf16.msra.mxu1 %v4633_v19  ;;  %2953 = vmatprep.mubr.bf16.mxu0 %v5237_v42  ;;  %v1811_v53 = vmax.f32 %v1735_v0, 0.0  ;;  %v1628_v47 = vadd.f32 %v1627_v30, %v5289_v7  ;;  %v4639_v42 = vld [vmem:[#allocation4 + $0x268] ss:$16 sps:$4 sm:$0xff]  }
 0x217   :  { %v1629_v52 = vpop.f32.mrf.mxu0  ;;  %3020 = vmatprep.subr.bf16.mxu1 %v4638_v37 }
 0x218   :  { %v1812_v28 = vmax.f32 %v1737_v57, 0.0  ;;  %v1630_v43 = vadd.f32 %v1629_v52, %v5285_v63  ;;  %v1742_v5 = vpop.f32.mrf.mxu1  ;;  %v5332_v10 = vpack.c.bf16 %v1811_v53, %v1807_v29  ;;  %v1741_v20 = vadd.f32 %v1740_v51, %v1628_v47  ;;  %v4650_v57 = vld [vmem:[#allocation4 + $0x20c] ss:$16 sps:$4 sm:$0xff]  }
 0x219   :  { %v1631_v8 = vpop.f32.mrf.mxu0 }
 0x21a   :  { %v1632_v38 = vadd.f32 %v1631_v8, %v5289_v7  ;;  %v1744_v9 = vpop.f32.mrf.mxu1  ;;  %3021 = vmatpush1.bf16.msra.mxu1 %v4636_v45  ;;  %v5330_v62 = vpack.c.bf16 %v1812_v28, %v1808_v33  ;;  %v1743_v49 = vadd.f32 %v1742_v5, %v1630_v43  ;;  %v1815_v37 = vmax.f32 %v1741_v20, 0.0  ;;  %v4648_v5 = vld [vmem:[#allocation4 + $0x208] ss:$16 sps:$4 sm:$0xff]   ;;  %v4653_v8 = vld [vmem:[#allocation4 + $0x3ec] ss:$16 sps:$4 sm:$0xff]  }
 0x21b   :  { %v1633_v11 = vpop.f32.mrf.mxu0  ;;  %3022 = vmatprep.subr.bf16.mxu1 %v4641_v1 }
 0x21c   :  { %v1745_v13 = vadd.f32 %v1744_v9, %v1632_v38  ;;  %v1634_v16 = vadd.f32 %v1633_v11, %v5285_v63  ;;  %v1746_v44 = vpop.f32.mrf.mxu1  ;;  %2840 = vmatprep.mubr.bf16.mxu1 %v5330_v62  ;;  %v1816_v46 = vmax.f32 %v1743_v49, 0.0 }
 0x21d   :  { %v1637_v40 = vpop.f32.mrf.mxu0  ;;  %2841 = vmatmul.mubr.bf16.gmra.mxu1 %v5332_v10  ;;  %2954 = vmatmul.mubr.bf16.gmra.mxu0 %v5239_v60 }
 0x21e   :  { %v1747_v41 = vadd.f32 %v1746_v44, %v1634_v16  ;;  %v1750_v14 = vpop.f32.mrf.mxu1  ;;  %3023 = vmatpush1.bf16.msra.mxu1 %v4639_v42  ;;  %2963 = vmatprep.mubr.bf16.mxu0 %v5247_v61  ;;  %v1819_v17 = vmax.f32 %v1745_v13, 0.0  ;;  %v1638_v6 = vadd.f32 %v1637_v40, %v5289_v7  ;;  %v4645_v61 = vld [vmem:[#allocation4 + $0x228] ss:$16 sps:$4 sm:$0xff]  }
 0x21f   :  { %v1639_v18 = vpop.f32.mrf.mxu0  ;;  %3024 = vmatprep.subr.bf16.mxu1 %v4644_v12 }
 0x220   :  { %v1820_v4 = vmax.f32 %v1747_v41, 0.0  ;;  %v1640_v19 = vadd.f32 %v1639_v18, %v5285_v63  ;;  %v1752_v36 = vpop.f32.mrf.mxu1  ;;  %v5344_v39 = vpack.c.bf16 %v1819_v17, %v1815_v37  ;;  %v1751_v1 = vadd.f32 %v1750_v14, %v1638_v6  ;;  %v4656_v41 = vld [vmem:[#allocation4 + $0x3cc] ss:$16 sps:$4 sm:$0xff]  }
 0x221   :  { %v1641_v0 = vpop.f32.mrf.mxu0 }
 0x222   :  { %v1642_v60 = vadd.f32 %v1641_v0, %v5289_v7  ;;  %v1754_v54 = vpop.f32.mrf.mxu1  ;;  %3025 = vmatpush1.bf16.msra.mxu1 %v4642_v26  ;;  %v5342_v55 = vpack.c.bf16 %v1820_v4, %v1816_v46  ;;  %v1753_v51 = vadd.f32 %v1752_v36, %v1640_v19  ;;  %v1823_v12 = vmax.f32 %v1751_v1, 0.0  ;;  %v4654_v36 = vld [vmem:[#allocation4 + $0x3c8] ss:$16 sps:$4 sm:$0xff]   ;;  %v4659_v0 = vld [vmem:[#allocation4 + $0x3ac] ss:$16 sps:$4 sm:$0xff]  }
 0x223   :  { %v1643_v30 = vpop.f32.mrf.mxu0  ;;  %3026 = vmatprep.subr.bf16.mxu1 %v4647_v3 }
 0x224   :  { %v1755_v45 = vadd.f32 %v1754_v54, %v1642_v60  ;;  %v1644_v53 = vadd.f32 %v1643_v30, %v5285_v63  ;;  %v1756_v52 = vpop.f32.mrf.mxu1  ;;  %2850 = vmatprep.mubr.bf16.mxu1 %v5342_v55  ;;  %v1824_v38 = vmax.f32 %v1753_v51, 0.0 }
 0x225   :  { %v1647_v33 = vpop.f32.mrf.mxu0  ;;  %2851 = vmatmul.mubr.bf16.gmra.mxu1 %v5344_v39  ;;  %2964 = vmatmul.mubr.bf16.gmra.mxu0 %v5249_v58 }
 0x226   :  { %v1757_v28 = vadd.f32 %v1756_v52, %v1644_v53  ;;  %v1760_v43 = vpop.f32.mrf.mxu1  ;;  %3027 = vmatpush1.bf16.msra.mxu1 %v4645_v61  ;;  %2973 = vmatprep.mubr.bf16.mxu0 %v5257_v35  ;;  %v1827_v29 = vmax.f32 %v1755_v45, 0.0  ;;  %v1648_v49 = vadd.f32 %v1647_v33, %v5289_v7  ;;  %v4651_v35 = vld [vmem:[#allocation4 + $0x3e8] ss:$16 sps:$4 sm:$0xff]  }
 0x227   :  { %v1649_v47 = vpop.f32.mrf.mxu0  ;;  %3028 = vmatprep.subr.bf16.mxu1 %v4650_v57 }
 0x228   :  { %v1828_v9 = vmax.f32 %v1757_v28, 0.0  ;;  %v1650_v42 = vadd.f32 %v1649_v47, %v5285_v63  ;;  %v1762_v11 = vpop.f32.mrf.mxu1  ;;  %v5356_v20 = vpack.c.bf16 %v1827_v29, %v1823_v12  ;;  %v1761_v3 = vadd.f32 %v1760_v43, %v1648_v49  ;;  %v4662_v28 = vld [vmem:[#allocation4 + $0x38c] ss:$16 sps:$4 sm:$0xff]  }
 0x229   :  { %v1651_v13 = vpop.f32.mrf.mxu0 }
 0x22a   :  { %v5353_v58 = vpack.c.bf16 %v1828_v9, %v1824_v38  ;;  %v1652_v16 = vadd.f32 %v1651_v13, %v5289_v7  ;;  %v1764_v44 = vpop.f32.mrf.mxu1  ;;  %3029 = vmatpush1.bf16.msra.mxu1 %v4648_v5  ;;  %v1763_v14 = vadd.f32 %v1762_v11, %v1650_v42  ;;  %v1831_v57 = vmax.f32 %v1761_v3, 0.0  ;;  %v4660_v11 = vld [vmem:[#allocation4 + $0x388] ss:$16 sps:$4 sm:$0xff]   ;;  %v4665_v13 = vld [vmem:[#allocation4 + $0x36c] ss:$16 sps:$4 sm:$0xff]  }
 0x22b   :  { %v1653_v40 = vpop.f32.mrf.mxu0  ;;  %3030 = vmatprep.subr.bf16.mxu1 %v4653_v8 }
 0x22c   :  { %v1765_v26 = vadd.f32 %v1764_v44, %v1652_v16  ;;  %v1654_v17 = vadd.f32 %v1653_v40, %v5285_v63  ;;  %v1766_v18 = vpop.f32.mrf.mxu1  ;;  %2860 = vmatprep.mubr.bf16.mxu1 %v5353_v58  ;;  %v1832_v60 = vmax.f32 %v1763_v14, 0.0 }
 0x22d   :  { %v1657_v46 = vpop.f32.mrf.mxu0  ;;  %2861 = vmatmul.mubr.bf16.gmra.mxu1 %v5356_v20  ;;  %2974 = vmatmul.mubr.bf16.gmra.mxu0 %v5259_v50 }
 0x22e   :  { %v1767_v4 = vadd.f32 %v1766_v18, %v1654_v17  ;;  %v1770_v19 = vpop.f32.mrf.mxu1  ;;  %3031 = vmatpush2.bf16.msra.mxu1 %v4651_v35  ;;  %2983 = vmatprep.mubr.bf16.mxu0 %v5267_v59  ;;  %v1835_v37 = vmax.f32 %v1765_v26, 0.0  ;;  %v1658_v51 = vadd.f32 %v1657_v46, %v5289_v7  ;;  %v4657_v59 = vld [vmem:[#allocation4 + $0x3a8] ss:$16 sps:$4 sm:$0xff]  }
 0x22f   :  { %v1659_v6 = vpop.f32.mrf.mxu0  ;;  %3032 = vmatprep.subr.bf16.mxu1 %v4656_v41 }
 0x230   :  { %v1836_v54 = vmax.f32 %v1767_v4, 0.0  ;;  %v1660_v61 = vadd.f32 %v1659_v6, %v5285_v63  ;;  %v1772_v30 = vpop.f32.mrf.mxu1  ;;  %v5368_v1 = vpack.c.bf16 %v1835_v37, %v1831_v57  ;;  %v1771_v8 = vadd.f32 %v1770_v19, %v1658_v51  ;;  %v4668_v4 = vld [vmem:[#allocation4 + $0x34c] ss:$16 sps:$4 sm:$0xff]   ;;  %v4677_v51 = vld [vmem:[#allocation6 + $0x70] sm:$0xff]  }
 0x231   :  { %v1661_v45 = vpop.f32.mrf.mxu0  ;;  %v4675_v19 = vld [vmem:[#allocation6 + $0x78] sm:$0xff]  }
 0x232   :  { %v5365_v50 = vpack.c.bf16 %v1836_v54, %v1832_v60  ;;  %v1662_v53 = vadd.f32 %v1661_v45, %v5289_v7  ;;  %v1774_v52 = vpop.f32.mrf.mxu1  ;;  %3033 = vmatpush2.bf16.msra.mxu1 %v4654_v36  ;;  %v1773_v43 = vadd.f32 %v1772_v30, %v1660_v61  ;;  %v1839_v41 = vmax.f32 %v1771_v8, 0.0  ;;  %v4666_v61 = vld [vmem:[#allocation4 + $0x348] ss:$16 sps:$4 sm:$0xff]   ;;  %v4671_v57 = vld [vmem:[#allocation4 + $0x32c] ss:$16 sps:$4 sm:$0xff]   ;;  %4135 = vmatprep.subr.bf16.mxu0 %v4675_v19 }
 0x233   :  { %v1663_v33 = vpop.f32.mrf.mxu0  ;;  %3034 = vmatprep.subr.bf16.mxu1 %v4659_v0  ;;  %v4676_v0 = vld [vmem:[#allocation6 + $0x38] sm:$0xff]  }
 0x234   :  { %v1775_v5 = vadd.f32 %v1774_v52, %v1662_v53  ;;  %v1664_v29 = vadd.f32 %v1663_v33, %v5285_v63  ;;  %v1776_v47 = vpop.f32.mrf.mxu1  ;;  %2870 = vmatprep.mubr.bf16.mxu1 %v5365_v50  ;;  %v1840_v16 = vmax.f32 %v1773_v43, 0.0  ;;  %4136 = vmatpush3.bf16.msra.mxu0 %v4676_v0  ;;  %v4678_v53 = vld [vmem:[#allocation6 + $0x30] sm:$0xff]   ;;  %v4680_v43 = vld [vmem:[#allocation6 + $0x28] sm:$0xff]   ;;  %v4683_v8 = vld [vmem:[#allocation6 + $0x58] sm:$0xff]  }
 0x235   :  { %v1667_v38 = vpop.f32.mrf.mxu0  ;;  %2871 = vmatmul.mubr.bf16.gmra.mxu1 %v5368_v1  ;;  %2984 = vmatmul.mubr.bf16.gmra.mxu0 %v5269_v25 }
 0x236   :  { %v1777_v9 = vadd.f32 %v1776_v47, %v1664_v29  ;;  %v1780_v42 = vpop.f32.mrf.mxu1  ;;  %3035 = vmatpush2.bf16.msra.mxu1 %v4657_v59  ;;  %2993 = vmatprep.mubr.bf16.mxu0 %v5277_v31  ;;  %v1843_v12 = vmax.f32 %v1775_v5, 0.0  ;;  %v1668_v14 = vadd.f32 %v1667_v38, %v5289_v7  ;;  %v4663_v31 = vld [vmem:[#allocation4 + $0x368] ss:$16 sps:$4 sm:$0xff]   ;;  %v4681_v29 = vld [vmem:[#allocation6 + $0x60] sm:$0xff]  }
 0x237   :  { %v1669_v49 = vpop.f32.mrf.mxu0  ;;  %3036 = vmatprep.subr.bf16.mxu1 %v4662_v28  ;;  %4137 = vmatprep.subr.bf16.mxu0 %v4677_v51  ;;  %v4679_v28 = vld [vmem:[#allocation6 + $0x68] sm:$0xff]   ;;  %v4682_v47 = vld [vmem:[#allocation6 + $0x20] sm:$0xff]   ;;  %v4684_v38 = vld [vmem:[#allocation6 + $0x18] sm:$0xff]  }
 0x238   :  { %v1844_v44 = vmax.f32 %v1777_v9, 0.0  ;;  %v1670_v35 = vadd.f32 %v1669_v49, %v5285_v63  ;;  %v1782_v40 = vpop.f32.mrf.mxu1  ;;  %v5380_v3 = vpack.c.bf16 %v1843_v12, %v1839_v41  ;;  %v1781_v60 = vadd.f32 %v1780_v42, %v1668_v14  ;;  %4138 = vmatpush3.bf16.msra.mxu0 %v4678_v53  ;;  %v4672_v5 = vld [vmem:[#allocation4 + $0x308] ss:$16 sps:$4 sm:$0xff]   ;;  %v4686_v9 = vld [vmem:[#allocation6 + $0x10] sm:$0xff]   ;;  %v4690_v12 = vld [vmem:[#allocation6] sm:$0xff]  }
 0x239   :  { %v1671_v26 = vpop.f32.mrf.mxu0  ;;  %4139 = vmatprep.subr.bf16.mxu0 %v4679_v28  ;;  %v4688_v42 = vld [vmem:[#allocation6 + $0x8] sm:$0xff]   ;;  %v5459_v28 = vld [vmem:[%s5735_s6] sm:$0xf] }
 0x23a   :  { %v5377_v25 = vpack.c.bf16 %v1844_v44, %v1840_v16  ;;  %v1672_v17 = vadd.f32 %v1671_v26, %v5289_v7  ;;  %v1784_v18 = vpop.f32.mrf.mxu1  ;;  %3037 = vmatpush2.bf16.msra.mxu1 %v4660_v11  ;;  %v1783_v36 = vadd.f32 %v1782_v40, %v1670_v35  ;;  %v1847_v52 = vmax.f32 %v1781_v60, 0.0  ;;  %v4689_v11 = vld [vmem:[#allocation6 + $0x40] sm:$0xff]   ;;  %v4695_v49 = vld [vmem:[#allocation6 + $0xe8] sm:$0xff]  }
 0x23b   :  { %v1673_v46 = vpop.f32.mrf.mxu0  ;;  %3038 = vmatprep.subr.bf16.mxu1 %v4665_v13  ;;  %v4702_v13 = vld [vmem:[#allocation6 + $0x90] sm:$0xff]   ;;  %v4703_v16 = vld [vmem:[#allocation6 + $0xc8] sm:$0xff]   ;;  %v4705_v26 = vld [vmem:[#allocation6 + $0xc0] sm:$0xff]  }
 0x23c   :  { %v1785_v37 = vadd.f32 %v1784_v18, %v1672_v17  ;;  %v1674_v6 = vadd.f32 %v1673_v46, %v5285_v63  ;;  %2880 = vmatprep.mubr.bf16.mxu1 %v5377_v25  ;;  %v1786_v54 = vpop.f32.mrf.mxu1  ;;  %v1848_v63 = vmax.f32 %v1783_v36, 0.0  ;;  %4140 = vmatpush3.bf16.msra.mxu0 %v4680_v43  ;;  %v4704_v35 = vld [vmem:[#allocation6 + $0x88] sm:$0xff]   ;;  %v4706_v17 = vld [vmem:[#allocation6 + $0x80] sm:$0xff]  }
 0x23d   :  { %2881 = vmatmul.mubr.bf16.gmra.mxu1 %v5380_v3  ;;  %2994 = vmatmul.mubr.bf16.gmra.mxu0 %v5279_v56  ;;  %v4669_v56 = vld [vmem:[#allocation4 + $0x328] ss:$16 sps:$4 sm:$0xff]  }
 0x23e   :  { %v1787_v7 = vadd.f32 %v1786_v54, %v1674_v6  ;;  %3039 = vmatpush2.bf16.msra.mxu1 %v4663_v31  ;;  %3003 = vmatprep.mubr.bf16.mxu0 %v5295_v15  ;;  %v1851_v30 = vmax.f32 %v1785_v37, 0.0  ;;  %v4674_v15 = vld [vmem:[#allocation4 + $0x30c] ss:$16 sps:$4 sm:$0xff]  }
 0x23f   :  { %3040 = vmatprep.subr.bf16.mxu1 %v4668_v4  ;;  %4141 = vmatprep.subr.bf16.mxu0 %v4681_v29  ;;  %v5469_v29 = vrot.slane %v5459_v28, %v4986_v23 }
 0x240   :  { %v1852_v45 = vmax.f32 %v1787_v7, 0.0  ;;  %v5389_v33 = vpack.c.bf16 %v1851_v30, %v1847_v52  ;;  %4142 = vmatpush3.bf16.msra.mxu0 %v4682_v47 }
 0x241   :  { %4143 = vmatprep.subr.bf16.mxu0 %v4683_v8 }
 0x242   :  { %v5387_v59 = vpack.c.bf16 %v1852_v45, %v1848_v63  ;;  %3041 = vmatpush2.bf16.msra.mxu1 %v4666_v61 }
 0x243   :  { %3042 = vmatprep.subr.bf16.mxu1 %v4671_v57 }
 0x244   :  { %2890 = vmatprep.mubr.bf16.mxu1 %v5387_v59  ;;  %4144 = vmatpush3.bf16.msra.mxu0 %v4684_v38 }
 0x245   :  { %2891 = vmatmul.mubr.bf16.gmra.mxu1 %v5389_v33  ;;  %3004 = vmatmul.mubr.bf16.gmra.mxu0 %v5297_v27  ;;  %v4685_v27 = vld [vmem:[#allocation6 + $0x50] sm:$0xff]  }
 0x246   :  { %3043 = vmatpush2.bf16.msra.mxu1 %v4669_v56  ;;  %3046 = vmatprep.mubr.bf16.mxu1 %v5306_v48  ;;  %v4687_v48 = vld [vmem:[#allocation6 + $0x48] sm:$0xff]  }
 0x247   :  { %3044 = vmatprep.subr.bf16.mxu1 %v4674_v15  ;;  %4145 = vmatprep.subr.bf16.mxu0 %v4685_v27 }
 0x248   :  { %4146 = vmatpush3.bf16.msra.mxu0 %v4686_v9 }
 0x249   :  { %4147 = vmatprep.subr.bf16.mxu0 %v4687_v48 }
 0x24a   :  { %3045 = vmatpush2.bf16.msra.mxu1 %v4672_v5  ;;  %v5465_v5 = vrot.slane %v5459_v28, %v4982_v21 }
 0x24c   :  { %4148 = vmatpush3.bf16.msra.mxu0 %v4688_v42 }
 0x24d   :  { %3047 = vmatmul.mubr.bf16.vlgmr.msra.gmra.mxu1 %v5308_v2  ;;  %4149 = vmatprep.subr.bf16.mxu0 %v4689_v11  ;;  %v4691_v2 = vld [vmem:[#allocation6 + $0xf8] sm:$0xff]  }
 0x24e   :  { %3056 = vmatprep.mubr.bf16.mxu1 %v5318_v32  ;;  %4199 = vmatprep.subr.bf16.mxu1 %v4691_v2  ;;  %v4692_v32 = vld [vmem:[#allocation6 + $0xb8] sm:$0xff]  }
 0x24f   :  { %4200 = vmatpush3.bf16.msra.mxu1 %v4692_v32 }
 0x250   :  { %4150 = vmatpush3.bf16.msra.mxu0 %v4690_v12 }
 0x255   :  { %3057 = vmatmul.mubr.bf16.gmra.mxu1 %v5320_v34  ;;  %v4693_v34 = vld [vmem:[#allocation6 + $0xf0] sm:$0xff]  }
 0x256   :  { %3066 = vmatprep.mubr.bf16.mxu1 %v5330_v62  ;;  %4201 = vmatprep.subr.bf16.mxu1 %v4693_v34  ;;  %v4694_v62 = vld [vmem:[#allocation6 + $0xb0] sm:$0xff]  }
 0x257   :  { %4202 = vmatpush3.bf16.msra.mxu1 %v4694_v62 }
 0x258   :  { %4203 = vmatprep.subr.bf16.mxu1 %v4695_v49 }
 0x25d   :  { %3067 = vmatmul.mubr.bf16.gmra.mxu1 %v5332_v10  ;;  %v4696_v10 = vld [vmem:[#allocation6 + $0xa8] sm:$0xff]  }
 0x25e   :  { %3076 = vmatprep.mubr.bf16.mxu1 %v5342_v55  ;;  %4204 = vmatpush3.bf16.msra.mxu1 %v4696_v10  ;;  %v4697_v55 = vld [vmem:[#allocation6 + $0xe0] sm:$0xff]  }
 0x25f   :  { %4205 = vmatprep.subr.bf16.mxu1 %v4697_v55 }
 0x265   :  { %3077 = vmatmul.mubr.bf16.gmra.mxu1 %v5344_v39  ;;  %v4698_v39 = vld [vmem:[#allocation6 + $0xa0] sm:$0xff]  }
 0x266   :  { %3086 = vmatprep.mubr.bf16.mxu1 %v5353_v58  ;;  %4206 = vmatpush3.bf16.msra.mxu1 %v4698_v39  ;;  %v4699_v58 = vld [vmem:[#allocation6 + $0xd8] sm:$0xff]  }
 0x267   :  { %4207 = vmatprep.subr.bf16.mxu1 %v4699_v58 }
 0x26d   :  { %3087 = vmatmul.mubr.bf16.gmra.mxu1 %v5356_v20  ;;  %v4700_v20 = vld [vmem:[#allocation6 + $0x98] sm:$0xff]  }
 0x26e   :  { %3096 = vmatprep.mubr.bf16.mxu1 %v5365_v50  ;;  %4208 = vmatpush3.bf16.msra.mxu1 %v4700_v20  ;;  %v4701_v50 = vld [vmem:[#allocation6 + $0xd0] sm:$0xff]  }
 0x26f   :  { %4209 = vmatprep.subr.bf16.mxu1 %v4701_v50 }
 0x272   :  { %4210 = vmatpush3.bf16.msra.mxu1 %v4702_v13 }
 0x273   :  { %4211 = vmatprep.subr.bf16.mxu1 %v4703_v16 }
 0x275   :  { %3097 = vmatmul.mubr.bf16.gmra.mxu1 %v5368_v1 }
 0x276   :  { %3106 = vmatprep.mubr.bf16.mxu1 %v5377_v25  ;;  %4212 = vmatpush3.bf16.msra.mxu1 %v4704_v35 }
 0x277   :  { %4213 = vmatprep.subr.bf16.mxu1 %v4705_v26 }
 0x27a   :  { %4214 = vmatpush3.bf16.msra.mxu1 %v4706_v17 }
 0x27d   :  { %3107 = vmatmul.mubr.bf16.gmra.mxu1 %v5380_v3 }
 0x27e   :  { %3116 = vmatprep.mubr.bf16.mxu1 %v5387_v59 }
 0x285   :  { %3117 = vmatmul.mubr.bf16.gmra.mxu1 %v5389_v33 }
 0x28d   :  { %v2709_v1 = vpop.f32.mrf.mxu0 }
 0x28e   :  { %v2710_v42 = vadd.f32 %v2709_v1, %v5469_v29 }
 0x28f   :  { %v2711_v44 = vpop.f32.mrf.mxu0 }
 0x290   :  { %v2712_v9 = vadd.f32 %v2711_v44, %v5465_v5 }
 0x291   :  { %v2713_v40 = vpop.f32.mrf.mxu0 }
 0x292   :  { %v2714_v48 = vadd.f32 %v2713_v40, %v5469_v29 }
 0x293   :  { %v2715_v41 = vpop.f32.mrf.mxu0 }
 0x294   :  { %v2716_v21 = vadd.f32 %v2715_v41, %v5465_v5 }
 0x295   :  { %v2719_v14 = vpop.f32.mrf.mxu0 }
 0x296   :  { %v2720_v44 = vadd.f32 %v2719_v14, %v5469_v29 }
 0x297   :  { %v2721_v25 = vpop.f32.mrf.mxu0 }
 0x298   :  { %v2722_v13 = vadd.f32 %v2721_v25, %v5465_v5 }
 0x299   :  { %v2723_v18 = vpop.f32.mrf.mxu0 }
 0x29a   :  { %v2724_v1 = vadd.f32 %v2723_v18, %v5469_v29 }
 0x29b   :  { %v2725_v31 = vpop.f32.mrf.mxu0 }
 0x29c   :  { %v2726_v41 = vadd.f32 %v2725_v31, %v5465_v5 }
 0x29d   :  { %v5410_v3 = vpop.f32.mrf.mxu0 }
 0x29f   :  { %v5412_v46 = vpop.f32.mrf.mxu0 }
 0x2a0   :  { %v2732_v31 = vadd.f32 %v5412_v46, %v5465_v5 }
 0x2a1   :  { %v5414_v4 = vpop.f32.mrf.mxu0 }
 0x2a3   :  { %v5416_v19 = vpop.f32.mrf.mxu0 }
 0x2a5   :  { %v5418_v36 = vpop.f32.mrf.mxu0 }
 0x2a7   :  { %v5420_v37 = vpop.f32.mrf.mxu0 }
 0x2a9   :  { %v5422_v6 = vpop.f32.mrf.mxu0 }
 0x2ab   :  { %v5424_v0 = vpop.f32.mrf.mxu0 }
 0x2ad   :  { %v5426_v60 = vpop.f32.mrf.mxu0 }
 0x2af   :  { %v5428_v54 = vpop.f32.mrf.mxu0 }
 0x2b1   :  { %v5430_v7 = vpop.f32.mrf.mxu0 }
 0x2b3   :  { %v5432_v61 = vpop.f32.mrf.mxu0 }
 0x2b5   :  { %v5434_v30 = vpop.f32.mrf.mxu0 }
 0x2b7   :  { %v5436_v57 = vpop.f32.mrf.mxu0 }
 0x2b9   :  { %v5438_v51 = vpop.f32.mrf.mxu0 }
 0x2bb   :  { %v5440_v63 = vpop.f32.mrf.mxu0 }
 0x2bd   :  { %v5442_v45 = vpop.f32.mrf.mxu0 }
 0x2bf   :  { %v5444_v53 = vpop.f32.mrf.mxu0 }
 0x2c1   :  { %v5446_v52 = vpop.f32.mrf.mxu0 }
 0x2c3   :  { %v5448_v59 = vpop.f32.mrf.mxu0 }
 0x2c5   :  { %v5450_v56 = vpop.f32.mrf.mxu0 }
 0x2c7   :  { %v5452_v33 = vpop.f32.mrf.mxu0 }
 0x2c9   :  { %v5454_v15 = vpop.f32.mrf.mxu0 }
 0x2cb   :  { %v5461_v43 = vpop.f32.mrf.mxu0 }
 0x2cd   :  { %v2822_v47 = vpop.f32.mrf.mxu1  ;;  %v5471_v8 = vpop.f32.mrf.mxu0 }
 0x2ce   :  { %v2823_v32 = vadd.f32 %v2822_v47, %v2710_v42 }
 0x2cf   :  { %v2824_v38 = vpop.f32.mrf.mxu1  ;;  %v5473_v27 = vpop.f32.mrf.mxu0 }
 0x2d0   :  { %v2825_v12 = vadd.f32 %v2824_v38, %v2712_v9  ;;  %v3127_v58 = vmax.f32 %v2823_v32, 0.0 }
 0x2d1   :  { %v2826_v11 = vpop.f32.mrf.mxu1  ;;  %v5479_v23 = vpop.f32.mrf.mxu0 }
 0x2d2   :  { %v2827_v2 = vadd.f32 %v2826_v11, %v2714_v48  ;;  %v3128_v55 = vmax.f32 %v2825_v12, 0.0 }
 0x2d3   :  { %v2828_v34 = vpop.f32.mrf.mxu1  ;;  %v5481_v20 = vpop.f32.mrf.mxu0 }
 0x2d4   :  { %v2829_v62 = vadd.f32 %v2828_v34, %v2716_v21  ;;  %v3131_v49 = vmax.f32 %v2827_v2, 0.0  ;;  %v2734_v2 = vadd.f32 %v5414_v4, %v5469_v29  ;;  %v2730_v34 = vadd.f32 %v5410_v3, %v5469_v29 }
 0x2d5   :  { %v2832_v10 = vpop.f32.mrf.mxu1  ;;  %v5487_v38 = vpop.f32.mrf.mxu0 }
 0x2d6   :  { %v3132_v39 = vmax.f32 %v2829_v62, 0.0  ;;  %v3191_v35 = vpack.c.bf16 %v3131_v49, %v3127_v58  ;;  %v2833_v47 = vadd.f32 %v2832_v10, %v2720_v44  ;;  %v2736_v10 = vadd.f32 %v5416_v19, %v5465_v5 }
 0x2d7   :  { %v2834_v50 = vpop.f32.mrf.mxu1  ;;  %v5489_v12 = vpop.f32.mrf.mxu0  ;;  %v2742_v19 = vadd.f32 %v5420_v37, %v5465_v5 }
 0x2d8   :  { %v3192_v16 = vpack.c.bf16 %v3132_v39, %v3128_v55  ;;  %v2835_v26 = vadd.f32 %v2834_v50, %v2722_v13  ;;  %v3135_v21 = vmax.f32 %v2833_v47, 0.0 }
 0x2d9   :  { %v2836_v40 = vpop.f32.mrf.mxu1  ;;  %v5499_v58 = vpop.f32.mrf.mxu0 }
 0x2da   :  { %v2837_v17 = vadd.f32 %v2836_v40, %v2724_v1  ;;  %3518 = vmatprep.mubr.bf16.mxu0 %v3192_v16  ;;  %v3136_v11 = vmax.f32 %v2835_v26, 0.0 }
 0x2db   :  { %v2838_v9 = vpop.f32.mrf.mxu1  ;;  %3519 = vmatmul.mubr.bf16.vlgmr.msra.gmra.mxu0 %v3191_v35  ;;  %v5501_v35 = vpop.f32.mrf.mxu0 }
 0x2dc   :  { %v2839_v48 = vadd.f32 %v2838_v9, %v2726_v41  ;;  %v3139_v42 = vmax.f32 %v2837_v17, 0.0  ;;  %v2744_v41 = vadd.f32 %v5422_v6, %v5469_v29  ;;  %v2740_v17 = vadd.f32 %v5418_v36, %v5469_v29 }
 0x2dd   :  { %v2842_v25 = vpop.f32.mrf.mxu1 }
 0x2de   :  { %v3140_v18 = vmax.f32 %v2839_v48, 0.0  ;;  %v3195_v62 = vpack.c.bf16 %v3139_v42, %v3135_v21  ;;  %v2843_v50 = vadd.f32 %v2842_v25, %v2730_v34  ;;  %v2746_v48 = vadd.f32 %v5424_v0, %v5465_v5 }
 0x2df   :  { %v2844_v14 = vpop.f32.mrf.mxu1  ;;  %v2752_v0 = vadd.f32 %v5428_v54, %v5465_v5 }
 0x2e0   :  { %v3196_v32 = vpack.c.bf16 %v3140_v18, %v3136_v11  ;;  %v2845_v55 = vadd.f32 %v2844_v14, %v2732_v31  ;;  %v3143_v3 = vmax.f32 %v2843_v50, 0.0  ;;  %v5511_v11 = vpop.f32.mrf.mxu0  ;;  %v2756_v50 = vadd.f32 %v5432_v61, %v5465_v5 }
 0x2e1   :  { %v2846_v49 = vpop.f32.mrf.mxu1  ;;  %v2762_v61 = vadd.f32 %v5436_v57, %v5465_v5 }
 0x2e2   :  { %v2847_v39 = vadd.f32 %v2846_v49, %v2734_v2  ;;  %3526 = vmatprep.mubr.bf16.mxu0 %v3196_v32  ;;  %v3144_v16 = vmax.f32 %v2845_v55, 0.0  ;;  %v5513_v32 = vpop.f32.mrf.mxu0 }
 0x2e3   :  { %v2848_v13 = vpop.f32.mrf.mxu1  ;;  %3527 = vmatmul.mubr.bf16.gmra.mxu0 %v3195_v62  ;;  %v2754_v62 = vadd.f32 %v5430_v7, %v5469_v29 }
 0x2e4   :  { %v2849_v46 = vadd.f32 %v2848_v13, %v2736_v10  ;;  %v3147_v1 = vmax.f32 %v2847_v39, 0.0  ;;  %v2750_v10 = vadd.f32 %v5426_v60, %v5469_v29 }
 0x2e5   :  { %v2852_v4 = vpop.f32.mrf.mxu1 }
 0x2e6   :  { %v3148_v44 = vmax.f32 %v2849_v46, 0.0  ;;  %v3199_v47 = vpack.c.bf16 %v3147_v1, %v3143_v3  ;;  %v2853_v18 = vadd.f32 %v2852_v4, %v2740_v17  ;;  %v5523_v1 = vpop.f32.mrf.mxu0 }
 0x2e7   :  { %v2854_v40 = vpop.f32.mrf.mxu1 }
 0x2e8   :  { %v3200_v26 = vpack.c.bf16 %v3148_v44, %v3144_v16  ;;  %v2855_v42 = vadd.f32 %v2854_v40, %v2742_v19  ;;  %v3151_v36 = vmax.f32 %v2853_v18, 0.0  ;;  %v5525_v19 = vpop.f32.mrf.mxu0 }
 0x2e9   :  { %v2856_v9 = vpop.f32.mrf.mxu1 }
 0x2ea   :  { %v2857_v25 = vadd.f32 %v2856_v9, %v2744_v41  ;;  %3534 = vmatprep.mubr.bf16.mxu0 %v3200_v26  ;;  %v3152_v31 = vmax.f32 %v2855_v42, 0.0  ;;  %v2764_v26 = vadd.f32 %v5438_v51, %v5469_v29  ;;  %v2766_v42 = vadd.f32 %v5440_v63, %v5465_v5 }
 0x2eb   :  { %v2858_v21 = vpop.f32.mrf.mxu1  ;;  %3535 = vmatmul.mubr.bf16.gmra.mxu0 %v3199_v47  ;;  %v2760_v47 = vadd.f32 %v5434_v30, %v5469_v29  ;;  %v2772_v63 = vadd.f32 %v5444_v53, %v5465_v5 }
 0x2ec   :  { %v2859_v37 = vadd.f32 %v2858_v21, %v2746_v48  ;;  %v3155_v14 = vmax.f32 %v2857_v25, 0.0  ;;  %v5535_v21 = vpop.f32.mrf.mxu0 }
 0x2ed   :  { %v2862_v6 = vpop.f32.mrf.mxu1 }
 0x2ee   :  { %v3156_v2 = vmax.f32 %v2859_v37, 0.0  ;;  %v3203_v55 = vpack.c.bf16 %v3155_v14, %v3151_v36  ;;  %v2863_v4 = vadd.f32 %v2862_v6, %v2750_v10  ;;  %v5537_v36 = vpop.f32.mrf.mxu0 }
 0x2ef   :  { %v2864_v34 = vpop.f32.mrf.mxu1 }
 0x2f0   :  { %v3204_v49 = vpack.c.bf16 %v3156_v2, %v3152_v31  ;;  %v2865_v13 = vadd.f32 %v2864_v34, %v2752_v0  ;;  %v3159_v60 = vmax.f32 %v2863_v4, 0.0  ;;  %v2774_v0 = vadd.f32 %v5446_v52, %v5469_v29 }
 0x2f1   :  { %v2866_v39 = vpop.f32.mrf.mxu1 }
 0x2f2   :  { %v2867_v46 = vadd.f32 %v2866_v39, %v2754_v62  ;;  %3542 = vmatprep.mubr.bf16.mxu0 %v3204_v49  ;;  %v3160_v3 = vmax.f32 %v2865_v13, 0.0  ;;  %v2770_v49 = vadd.f32 %v5442_v45, %v5469_v29  ;;  %v2776_v39 = vadd.f32 %v5448_v59, %v5465_v5 }
 0x2f3   :  { %v2868_v16 = vpop.f32.mrf.mxu1  ;;  %3543 = vmatmul.mubr.bf16.gmra.mxu0 %v3203_v55  ;;  %v2782_v59 = vadd.f32 %v5452_v33, %v5465_v5  ;;  %v5563_v33 = vrot.slane %v5459_v28, %v4984_v22 }
 0x2f4   :  { %v2869_v54 = vadd.f32 %v2868_v16, %v2756_v50  ;;  %v3163_v44 = vmax.f32 %v2867_v46, 0.0  ;;  %v5547_v46 = vpop.f32.mrf.mxu0 }
 0x2f5   :  { %v2872_v7 = vpop.f32.mrf.mxu1 }
 0x2f6   :  { %v3164_v40 = vmax.f32 %v2869_v54, 0.0  ;;  %v3207_v9 = vpack.c.bf16 %v3163_v44, %v3159_v60  ;;  %v2873_v37 = vadd.f32 %v2872_v7, %v2760_v47  ;;  %v2784_v60 = vadd.f32 %v5454_v15, %v5469_v29 }
 0x2f7   :  { %v2874_v41 = vpop.f32.mrf.mxu1  ;;  %v2786_v47 = vadd.f32 %v5461_v43, %v5465_v5 }
 0x2f8   :  { %v3208_v17 = vpack.c.bf16 %v3164_v40, %v3160_v3  ;;  %v2875_v25 = vadd.f32 %v2874_v41, %v2762_v61  ;;  %v3167_v30 = vmax.f32 %v2873_v37, 0.0  ;;  %v5549_v3 = vpop.f32.mrf.mxu0  ;;  %v2780_v61 = vadd.f32 %v5450_v56, %v5469_v29 }
 0x2f9   :  { %v2876_v48 = vpop.f32.mrf.mxu1  ;;  %v5567_v56 = vrot.slane %v5459_v28, %v4988_v24 }
 0x2fa   :  { %v2877_v18 = vadd.f32 %v2876_v48, %v2764_v26  ;;  %3550 = vmatprep.mubr.bf16.mxu0 %v3208_v17  ;;  %v3168_v31 = vmax.f32 %v2875_v25, 0.0 }
 0x2fb   :  { %v2878_v14 = vpop.f32.mrf.mxu1  ;;  %3551 = vmatmul.mubr.bf16.gmra.mxu0 %v3207_v9  ;;  %v2940_v22 = vadd.f32 %v5479_v23, %v5567_v56 }
 0x2fc   :  { %v2879_v57 = vadd.f32 %v2878_v14, %v2766_v42  ;;  %v3171_v6 = vmax.f32 %v2877_v18, 0.0  ;;  %v5559_v42 = vpop.f32.mrf.mxu0 }
 0x2fd   :  { %v2882_v51 = vpop.f32.mrf.mxu1 }
 0x2fe   :  { %v3172_v2 = vmax.f32 %v2879_v57, 0.0  ;;  %v3211_v10 = vpack.c.bf16 %v3171_v6, %v3167_v30  ;;  %v2883_v4 = vadd.f32 %v2882_v51, %v2770_v49  ;;  %v5569_v14 = vpop.f32.mrf.mxu0  ;;  %v2938_v51 = vadd.f32 %v5473_v27, %v5563_v33 }
 0x2ff   :  { %v2884_v34 = vpop.f32.mrf.mxu1  ;;  %v2942_v30 = vadd.f32 %v5481_v20, %v5563_v33  ;;  %v2948_v20 = vadd.f32 %v5489_v12, %v5563_v33 }
 0x300   :  { %v3212_v62 = vpack.c.bf16 %v3172_v2, %v3168_v31  ;;  %v2885_v50 = vadd.f32 %v2884_v34, %v2772_v63  ;;  %v3175_v45 = vmax.f32 %v2883_v4, 0.0  ;;  %v2936_v2 = vadd.f32 %v5471_v8, %v5567_v56 }
 0x301   :  { %v2886_v55 = vpop.f32.mrf.mxu1  ;;  %v2950_v4 = vadd.f32 %v5499_v58, %v5567_v56 }
 0x302   :  { %v2887_v13 = vadd.f32 %v2886_v55, %v2774_v0  ;;  %3558 = vmatprep.mubr.bf16.mxu0 %v3212_v62  ;;  %v3176_v44 = vmax.f32 %v2885_v50, 0.0  ;;  %v5579_v0 = vpop.f32.mrf.mxu0 }
 0x303   :  { %v2888_v16 = vpop.f32.mrf.mxu1  ;;  %3559 = vmatmul.mubr.bf16.gmra.mxu0 %v3211_v10 }
 0x304   :  { %v2889_v53 = vadd.f32 %v2888_v16, %v2776_v39  ;;  %v3179_v54 = vmax.f32 %v2887_v13, 0.0  ;;  %v5581_v50 = vpop.f32.mrf.mxu0 }
 0x305   :  { %v2892_v52 = vpop.f32.mrf.mxu1 }
 0x306   :  { %v3180_v7 = vmax.f32 %v2889_v53, 0.0  ;;  %v3215_v26 = vpack.c.bf16 %v3179_v54, %v3175_v45  ;;  %v2893_v25 = vadd.f32 %v2892_v52, %v2780_v61  ;;  %v2946_v53 = vadd.f32 %v5487_v38, %v5567_v56 }
 0x307   :  { %v2894_v40 = vpop.f32.mrf.mxu1 }
 0x308   :  { %v3216_v41 = vpack.c.bf16 %v3180_v7, %v3176_v44  ;;  %v2895_v9 = vadd.f32 %v2894_v40, %v2782_v59  ;;  %v3183_v57 = vmax.f32 %v2893_v25, 0.0  ;;  %v2952_v44 = vadd.f32 %v5501_v35, %v5563_v33  ;;  %v5591_v40 = vpop.f32.mrf.mxu0 }
 0x309   :  { %v2896_v17 = vpop.f32.mrf.mxu1  ;;  %v2958_v35 = vadd.f32 %v5513_v32, %v5563_v33  ;;  %v2956_v25 = vadd.f32 %v5511_v11, %v5567_v56 }
 0x30a   :  { %v2897_v48 = vadd.f32 %v2896_v17, %v2784_v60  ;;  %3566 = vmatprep.mubr.bf16.mxu0 %v3216_v41  ;;  %v3184_v43 = vmax.f32 %v2895_v9, 0.0  ;;  %v5593_v17 = vpop.f32.mrf.mxu0  ;;  %v2960_v9 = vadd.f32 %v5523_v1, %v5567_v56 }
 0x30b   :  { %v2898_v18 = vpop.f32.mrf.mxu1  ;;  %3567 = vmatmul.mubr.bf16.gmra.mxu0 %v3215_v26 }
 0x30c   :  { %v2899_v15 = vadd.f32 %v2898_v18, %v2786_v47  ;;  %v3187_v29 = vmax.f32 %v2897_v48, 0.0 }
 0x30d   :  { %v3048_v37 = vpop.f32.mrf.mxu1 }
 0x30e   :  { %v3188_v5 = vmax.f32 %v2899_v15, 0.0  ;;  %v3219_v24 = vpack.c.bf16 %v3187_v29, %v3183_v57  ;;  %v3049_v62 = vadd.f32 %v3048_v37, %v2936_v2  ;;  %v2962_v29 = vadd.f32 %v5525_v19, %v5563_v33 }
 0x30f   :  { %v3050_v6 = vpop.f32.mrf.mxu1  ;;  %v2970_v19 = vadd.f32 %v5547_v46, %v5567_v56 }
 0x310   :  { %v3220_v31 = vpack.c.bf16 %v3188_v5, %v3184_v43  ;;  %v3051_v34 = vadd.f32 %v3050_v6, %v2938_v51  ;;  %v3129_v8 = vmax.f32 %v3049_v62, 0.0  ;;  %v2989_v5 = vpop.f32.mrf.mxu0 }
 0x311   :  { %v3052_v28 = vpop.f32.mrf.mxu1 }
 0x312   :  { %v3053_v63 = vadd.f32 %v3052_v28, %v2940_v22  ;;  %3574 = vmatprep.mubr.bf16.mxu0 %v3220_v31  ;;  %v3130_v55 = vmax.f32 %v3051_v34, 0.0  ;;  %v2991_v2 = vpop.f32.mrf.mxu0  ;;  %v2968_v28 = vadd.f32 %v5537_v36, %v5563_v33  ;;  %v2966_v34 = vadd.f32 %v5535_v21, %v5567_v56 }
 0x313   :  { %v3054_v49 = vpop.f32.mrf.mxu1  ;;  %3575 = vmatmul.mubr.bf16.gmra.mxu0 %v3219_v24 }
 0x314   :  { %v3055_v27 = vadd.f32 %v3054_v49, %v2942_v30  ;;  %v3133_v10 = vmax.f32 %v3053_v63, 0.0  ;;  %v2972_v49 = vadd.f32 %v5549_v3, %v5563_v33  ;;  %v2980_v3 = vadd.f32 %v5579_v0, %v5567_v56 }
 0x315   :  { %v3058_v23 = vpop.f32.mrf.mxu1 }
 0x316   :  { %v3134_v39 = vmax.f32 %v3055_v27, 0.0  ;;  %v3193_v54 = vpack.c.bf16 %v3133_v10, %v3129_v8  ;;  %v3059_v59 = vadd.f32 %v3058_v23, %v2946_v53  ;;  %v2995_v23 = vpop.f32.mrf.mxu0  ;;  %v2978_v53 = vadd.f32 %v5569_v14, %v5563_v33 }
 0x317   :  { %v3060_v13 = vpop.f32.mrf.mxu1 }
 0x318   :  { %v3194_v16 = vpack.c.bf16 %v3134_v39, %v3130_v55  ;;  %v3061_v7 = vadd.f32 %v3060_v13, %v2948_v20  ;;  %v3137_v38 = vmax.f32 %v3059_v59, 0.0 }
 0x319   :  { %v3062_v52 = vpop.f32.mrf.mxu1 }
 0x31a   :  { %v3063_v45 = vadd.f32 %v3062_v52, %v2950_v4  ;;  %3615 = vmatprep.mubr.bf16.mxu1 %v3194_v16  ;;  %v3138_v61 = vmax.f32 %v3061_v7, 0.0  ;;  %v2997_v4 = vpop.f32.mrf.mxu0  ;;  %v2976_v52 = vadd.f32 %v5559_v42, %v5567_v56 }
 0x31b   :  { %v3064_v60 = vpop.f32.mrf.mxu1  ;;  %3616 = vmatmul.mubr.bf16.vlgmr.msra.gmra.mxu1 %v3193_v54 }
 0x31c   :  { %v3065_v12 = vadd.f32 %v3064_v60, %v2952_v44  ;;  %v3141_v41 = vmax.f32 %v3063_v45, 0.0  ;;  %v2982_v45 = vadd.f32 %v5581_v50, %v5563_v33  ;;  %v2990_v50 = vadd.f32 %v2989_v5, %v5567_v56 }
 0x31d   :  { %v3068_v58 = vpop.f32.mrf.mxu1 }
 0x31e   :  { %v3142_v26 = vmax.f32 %v3065_v12, 0.0  ;;  %v3197_v18 = vpack.c.bf16 %v3141_v41, %v3137_v38  ;;  %v3069_v57 = vadd.f32 %v3068_v58, %v2956_v25  ;;  %v2999_v12 = vpop.f32.mrf.mxu0  ;;  %v2986_v25 = vadd.f32 %v5591_v40, %v5567_v56 }
 0x31f   :  { %v3070_v47 = vpop.f32.mrf.mxu1  ;;  %v2998_v40 = vadd.f32 %v2997_v4, %v5563_v33 }
 0x320   :  { %v3198_v48 = vpack.c.bf16 %v3142_v26, %v3138_v61  ;;  %v3071_v37 = vadd.f32 %v3070_v47, %v2958_v35  ;;  %v3145_v24 = vmax.f32 %v3069_v57, 0.0  ;;  %v3001_v47 = vpop.f32.mrf.mxu0 }
 0x321   :  { %v3072_v15 = vpop.f32.mrf.mxu1 }
 0x322   :  { %v3073_v43 = vadd.f32 %v3072_v15, %v2960_v9  ;;  %3623 = vmatprep.mubr.bf16.mxu1 %v3198_v48  ;;  %v3146_v1 = vmax.f32 %v3071_v37, 0.0  ;;  %v2988_v9 = vadd.f32 %v5593_v17, %v5563_v33  ;;  %v3005_v57 = vpop.f32.mrf.mxu0 }
 0x323   :  { %v3074_v6 = vpop.f32.mrf.mxu1  ;;  %3624 = vmatmul.mubr.bf16.gmra.mxu1 %v3197_v18 }
 0x324   :  { %v3075_v32 = vadd.f32 %v3074_v6, %v2962_v29  ;;  %v3149_v51 = vmax.f32 %v3073_v43, 0.0  ;;  %v2992_v29 = vadd.f32 %v2991_v2, %v5563_v33 }
 0x325   :  { %v3078_v22 = vpop.f32.mrf.mxu1 }
 0x326   :  { %v3150_v31 = vmax.f32 %v3075_v32, 0.0  ;;  %v3201_v63 = vpack.c.bf16 %v3149_v51, %v3145_v24  ;;  %v3079_v55 = vadd.f32 %v3078_v22, %v2966_v34 }
 0x327   :  { %v3080_v11 = vpop.f32.mrf.mxu1 }
 0x328   :  { %v3202_v30 = vpack.c.bf16 %v3150_v31, %v3146_v1  ;;  %v3081_v27 = vadd.f32 %v3080_v11, %v2968_v28  ;;  %v3153_v16 = vmax.f32 %v3079_v55, 0.0  ;;  %v3007_v31 = vpop.f32.mrf.mxu0  ;;  %v3000_v28 = vadd.f32 %v2999_v12, %v5567_v56 }
 0x329   :  { %v3082_v62 = vpop.f32.mrf.mxu1 }
 0x32a   :  { %v3083_v10 = vadd.f32 %v3082_v62, %v2970_v19  ;;  %3631 = vmatprep.mubr.bf16.mxu1 %v3202_v30  ;;  %v3154_v46 = vmax.f32 %v3081_v27, 0.0  ;;  %v2996_v19 = vadd.f32 %v2995_v23, %v5567_v56  ;;  %v3009_v27 = vpop.f32.mrf.mxu0  ;;  %v3008_v23 = vadd.f32 %v3007_v31, %v5563_v33 }
 0x32b   :  { %v3084_v39 = vpop.f32.mrf.mxu1  ;;  %3632 = vmatmul.mubr.bf16.gmra.mxu1 %v3201_v63  ;;  %v3002_v63 = vadd.f32 %v3001_v47, %v5563_v33 }
 0x32c   :  { %v3085_v36 = vadd.f32 %v3084_v39, %v2972_v49  ;;  %v3157_v8 = vmax.f32 %v3083_v10, 0.0 }
 0x32d   :  { %v3088_v13 = vpop.f32.mrf.mxu1 }
 0x32e   :  { %v3158_v20 = vmax.f32 %v3085_v36, 0.0  ;;  %v3205_v44 = vpack.c.bf16 %v3157_v8, %v3153_v16  ;;  %v3089_v41 = vadd.f32 %v3088_v13, %v2976_v52 }
 0x32f   :  { %v3090_v21 = vpop.f32.mrf.mxu1 }
 0x330   :  { %v3206_v54 = vpack.c.bf16 %v3158_v20, %v3154_v46  ;;  %v3091_v59 = vadd.f32 %v3090_v21, %v2978_v53  ;;  %v3161_v35 = vmax.f32 %v3089_v41, 0.0  ;;  %v3011_v20 = vpop.f32.mrf.mxu0  ;;  %v3010_v21 = vadd.f32 %v3009_v27, %v5567_v56 }
 0x331   :  { %v3092_v7 = vpop.f32.mrf.mxu1 }
 0x332   :  { %v3093_v60 = vadd.f32 %v3092_v7, %v2980_v3  ;;  %3639 = vmatprep.mubr.bf16.mxu1 %v3206_v54  ;;  %v3162_v0 = vmax.f32 %v3091_v59, 0.0  ;;  %v3006_v3 = vadd.f32 %v3005_v57, %v5567_v56 }
 0x333   :  { %v3094_v58 = vpop.f32.mrf.mxu1  ;;  %3640 = vmatmul.mubr.bf16.gmra.mxu1 %v3205_v44  ;;  %v3012_v44 = vadd.f32 %v3011_v20, %v5563_v33 }
 0x334   :  { %v3095_v14 = vadd.f32 %v3094_v58, %v2982_v45  ;;  %v3165_v61 = vmax.f32 %v3093_v60, 0.0 }
 0x335   :  { %v3098_v26 = vpop.f32.mrf.mxu1 }
 0x336   :  { %v3166_v38 = vmax.f32 %v3095_v14, 0.0  ;;  %v3209_v18 = vpack.c.bf16 %v3165_v61, %v3161_v35  ;;  %v3099_v6 = vadd.f32 %v3098_v26, %v2986_v25 }
 0x337   :  { %v3100_v42 = vpop.f32.mrf.mxu1 }
 0x338   :  { %v3210_v48 = vpack.c.bf16 %v3166_v38, %v3162_v0  ;;  %v3101_v37 = vadd.f32 %v3100_v42, %v2988_v9  ;;  %v3169_v24 = vmax.f32 %v3099_v6, 0.0 }
 0x339   :  { %v3102_v15 = vpop.f32.mrf.mxu1 }
 0x33a   :  { %v3103_v43 = vadd.f32 %v3102_v15, %v2990_v50  ;;  %3647 = vmatprep.mubr.bf16.mxu1 %v3210_v48  ;;  %v3170_v1 = vmax.f32 %v3101_v37, 0.0 }
 0x33b   :  { %v3104_v32 = vpop.f32.mrf.mxu1  ;;  %3648 = vmatmul.mubr.bf16.gmra.mxu1 %v3209_v18 }
 0x33c   :  { %v3105_v51 = vadd.f32 %v3104_v32, %v2992_v29  ;;  %v3173_v22 = vmax.f32 %v3103_v43, 0.0 }
 0x33d   :  { %v3108_v17 = vpop.f32.mrf.mxu1 }
 0x33e   :  { %v3174_v5 = vmax.f32 %v3105_v51, 0.0  ;;  %v3213_v30 = vpack.c.bf16 %v3173_v22, %v3169_v24  ;;  %v3109_v10 = vadd.f32 %v3108_v17, %v2996_v19  ;;  %v5642_v51 = vld [vmem:[%s5737_s8] ss:$0 sm:$0xff] }
 0x33f   :  { %v3110_v11 = vpop.f32.mrf.mxu1 }
 0x340   :  { %v3214_v2 = vpack.c.bf16 %v3174_v5, %v3170_v1  ;;  %v3111_v62 = vadd.f32 %v3110_v11, %v2998_v40  ;;  %v3177_v4 = vmax.f32 %v3109_v10, 0.0 }
 0x341   :  { %v3112_v34 = vpop.f32.mrf.mxu1 }
 0x342   :  { %v3113_v49 = vadd.f32 %v3112_v34, %v3000_v28  ;;  %3655 = vmatprep.mubr.bf16.mxu1 %v3214_v2  ;;  %v3178_v13 = vmax.f32 %v3111_v62, 0.0 }
 0x343   :  { %v3114_v55 = vpop.f32.mrf.mxu1  ;;  %3656 = vmatmul.mubr.bf16.gmra.mxu1 %v3213_v30 }
 0x344   :  { %v3115_v39 = vadd.f32 %v3114_v55, %v3002_v63  ;;  %v3181_v36 = vmax.f32 %v3113_v49, 0.0 }
 0x345   :  { %v3118_v8 = vpop.f32.mrf.mxu1 }
 0x346   :  { %v3182_v46 = vmax.f32 %v3115_v39, 0.0  ;;  %v3217_v54 = vpack.c.bf16 %v3181_v36, %v3177_v4  ;;  %v3119_v59 = vadd.f32 %v3118_v8, %v3006_v3 }
 0x347   :  { %v3120_v16 = vpop.f32.mrf.mxu1 }
 0x348   :  { %v3218_v53 = vpack.c.bf16 %v3182_v46, %v3178_v13  ;;  %v3121_v7 = vadd.f32 %v3120_v16, %v3008_v23  ;;  %v3185_v61 = vmax.f32 %v3119_v59, 0.0 }
 0x349   :  { %v3122_v52 = vpop.f32.mrf.mxu1 }
 0x34a   :  { %v3123_v45 = vadd.f32 %v3122_v52, %v3010_v21  ;;  %3663 = vmatprep.mubr.bf16.mxu1 %v3218_v53  ;;  %v3186_v58 = vmax.f32 %v3121_v7, 0.0 }
 0x34b   :  { %v3124_v60 = vpop.f32.mrf.mxu1  ;;  %3664 = vmatmul.mubr.bf16.gmra.mxu1 %v3217_v54 }
 0x34c   :  { %v3125_v12 = vadd.f32 %v3124_v60, %v3012_v44  ;;  %v3189_v41 = vmax.f32 %v3123_v45, 0.0 }
 0x34e   :  { %v3190_v14 = vmax.f32 %v3125_v12, 0.0  ;;  %v3221_v0 = vpack.c.bf16 %v3189_v41, %v3185_v61 }
 0x350   :  { %v3222_v26 = vpack.c.bf16 %v3190_v14, %v3186_v58 }
 0x352   :  { %3671 = vmatprep.mubr.bf16.mxu1 %v3222_v26 }
 0x353   :  { %3672 = vmatmul.mubr.bf16.gmra.mxu1 %v3221_v0 }
 0x39b   :  { %v4151_v56 = vpop.f32.mrf.mxu0 }
 0x39d   :  { %v4152_v38 = vpop.f32.mrf.mxu0 }
 0x39e   :  { %v4153_v32 = vadd.f32 %v4152_v38, %v4151_v56 }
 0x39f   :  { %v4154_v47 = vpop.f32.mrf.mxu0 }
 0x3a0   :  { %v3521_v5 = vadd.f32 %v4153_v32, %v5642_v51 }
 0x3a1   :  { %v4155_v35 = vpop.f32.mrf.mxu0 }
 0x3a2   :  { %v4156_v31 = vadd.f32 %v4155_v35, %v4154_v47 }
 0x3a3   :  { %v4157_v33 = vpop.f32.mrf.mxu0 }
 0x3a4   :  { %v3524_v19 = vadd.f32 %v4156_v31, %v5642_v51 }
 0x3a5   :  { %v4158_v42 = vpop.f32.mrf.mxu0 }
 0x3a6   :  { %v4159_v30 = vadd.f32 %v4158_v42, %v4157_v33 }
 0x3a7   :  { %v4160_v9 = vpop.f32.mrf.mxu0 }
 0x3a8   :  { %v3529_v55 = vadd.f32 %v4159_v30, %v5642_v51 }
 0x3a9   :  { %v4161_v50 = vpop.f32.mrf.mxu0 }
 0x3aa   :  { %v4162_v39 = vadd.f32 %v4161_v50, %v4160_v9 }
 0x3ab   :  { %v4163_v48 = vpop.f32.mrf.mxu0 }
 0x3ac   :  { %v3532_v16 = vadd.f32 %v4162_v39, %v5642_v51 }
 0x3ad   :  { %v4164_v25 = vpop.f32.mrf.mxu0 }
 0x3ae   :  { %v4165_v23 = vadd.f32 %v4164_v25, %v4163_v48 }
 0x3af   :  { %v4166_v18 = vpop.f32.mrf.mxu0 }
 0x3b0   :  { %v3537_v7 = vadd.f32 %v4165_v23, %v5642_v51 }
 0x3b1   :  { %v4167_v15 = vpop.f32.mrf.mxu0 }
 0x3b2   :  { %v4168_v45 = vadd.f32 %v4167_v15, %v4166_v18 }
 0x3b3   :  { %v4169_v29 = vpop.f32.mrf.mxu0 }
 0x3b4   :  { %v3540_v0 = vadd.f32 %v4168_v45, %v5642_v51 }
 0x3b5   :  { %v4170_v37 = vpop.f32.mrf.mxu0 }
 0x3b6   :  { %v4171_v61 = vadd.f32 %v4170_v37, %v4169_v29 }
 0x3b7   :  { %v5633_v43 = vpop.f32.mrf.mxu0 }
 0x3b8   :  { %v3545_v50 = vadd.f32 %v4171_v61, %v5642_v51 }
 0x3b9   :  { %v5635_v57 = vpop.f32.mrf.mxu0 }
 0x3ba   :  { %v4174_v25 = vadd.f32 %v5635_v57, %v5633_v43 }
 0x3bb   :  { %v5637_v6 = vpop.f32.mrf.mxu0 }
 0x3bd   :  { %v5644_v22 = vpop.f32.mrf.mxu0 }
 0x3bf   :  { %v5647_v11 = vpop.f32.mrf.mxu0 }
 0x3c1   :  { %v5650_v62 = vpop.f32.mrf.mxu0 }
 0x3c3   :  { %v5653_v13 = vpop.f32.mrf.mxu0 }
 0x3c5   :  { %v5656_v3 = vpop.f32.mrf.mxu0 }
 0x3c7   :  { %v5659_v12 = vpop.f32.mrf.mxu0 }
 0x3c9   :  { %v4185_v35 = vpop.f32.mrf.mxu0 }
 0x3ca   :  { %v4186_v45 = vadd.f32 %v4185_v35, %v5659_v12 }
 0x3cb   :  { %v4187_v37 = vpop.f32.mrf.mxu0 }
 0x3db   :  { %v4215_v17 = vpop.f32.mrf.mxu1 }
 0x3dd   :  { %v4216_v1 = vpop.f32.mrf.mxu1 }
 0x3de   :  { %v4217_v24 = vadd.f32 %v4216_v1, %v4215_v17 }
 0x3df   :  { %v4218_v40 = vpop.f32.mrf.mxu1 }
 0x3e0   :  { %v3618_v28 = vadd.f32 %v4217_v24, %v3521_v5  ;;  %v4177_v5 = vadd.f32 %v5644_v22, %v5637_v6  ;;  %v3548_v24 = vadd.f32 %v4174_v25, %v5642_v51 }
 0x3e1   :  { %v4219_v2 = vpop.f32.mrf.mxu1 }
 0x3e2   :  { %v4119_v34 = vmul.f32 -1.442695, %v3618_v28  ;;  %v4220_v63 = vadd.f32 %v4219_v2, %v4218_v40 }
 0x3e3   :  { %v4221_v49 = vpop.f32.mrf.mxu1 }
 0x3e4   :  { %4707 = vpow2.f32 %v4119_v34  ;;  %v3621_v27 = vadd.f32 %v4220_v63, %v3524_v19  ;;  %v4188_v19 = vpop.f32.mrf.mxu0  ;;  %v3553_v34 = vadd.f32 %v4177_v5, %v5642_v51 }
 0x3e5   :  { %v4222_v10 = vpop.f32.mrf.mxu1 }
 0x3e6   :  { %v4120_v36 = vmul.f32 -1.442695, %v3621_v27  ;;  %v4223_v8 = vadd.f32 %v4222_v10, %v4221_v49  ;;  %v4180_v49 = vadd.f32 %v5650_v62, %v5647_v11  ;;  %v4190_v10 = vpop.f32.mrf.mxu0 }
 0x3e7   :  { %v4224_v46 = vpop.f32.mrf.mxu1 }
 0x3e8   :  { %4709 = vpow2.f32 %v4120_v36  ;;  %v3626_v20 = vadd.f32 %v4223_v8, %v3529_v55 }
 0x3e9   :  { %v4225_v4 = vpop.f32.mrf.mxu1 }
 0x3ea   :  { %v4121_v21 = vmul.f32 -1.442695, %v3626_v20  ;;  %v4226_v53 = vadd.f32 %v4225_v4, %v4224_v46  ;;  %v3556_v20 = vadd.f32 %v4180_v49, %v5642_v51  ;;  %v4183_v4 = vadd.f32 %v5656_v3, %v5653_v13 }
 0x3eb   :  { %v4227_v54 = vpop.f32.mrf.mxu1 }
 0x3ec   :  { %4711 = vpow2.f32 %v4121_v21  ;;  %v3629_v52 = vadd.f32 %v4226_v53, %v3532_v16  ;;  %v4191_v16 = vpop.f32.mrf.mxu0 }
 0x3ed   :  { %v4228_v44 = vpop.f32.mrf.mxu1 }
 0x3ee   :  { %v4122_v59 = vmul.f32 -1.442695, %v3629_v52  ;;  %v4229_v60 = vadd.f32 %v4228_v44, %v4227_v54 }
 0x3ef   :  { %v4230_v41 = vpop.f32.mrf.mxu1 }
 0x3f0   :  { %4713 = vpow2.f32 %v4122_v59  ;;  %v3634_v58 = vadd.f32 %v4229_v60, %v3537_v7  ;;  %v3561_v7 = vadd.f32 %v4183_v4, %v5642_v51  ;;  %v4193_v59 = vpop.f32.mrf.mxu0 }
 0x3f1   :  { %v4708_v14 = vpop.eup %4707  ;;  %v4231_v26 = vpop.f32.mrf.mxu1 }
 0x3f2   :  { %v3728_v56 = vadd.f32 1.0, %v4708_v14  ;;  %v4123_v38 = vmul.f32 -1.442695, %v3634_v58  ;;  %v4232_v47 = vadd.f32 %v4231_v26, %v4230_v41 }
 0x3f3   :  { %v4233_v33 = vpop.f32.mrf.mxu1 }
 0x3f4   :  { %4715 = vrcp.f32 %v3728_v56  ;;  %v3637_v42 = vadd.f32 %v4232_v47, %v3540_v0  ;;  %v3564_v0 = vadd.f32 %v4186_v45, %v5642_v51  ;;  %v4189_v56 = vadd.f32 %v4188_v19, %v4187_v37  ;;  %v4194_v47 = vpop.f32.mrf.mxu0 }
 0x3f5   :  { %v4710_v9 = vpop.eup %4709  ;;  %4717 = vpow2.f32 %v4123_v38  ;;  %v4234_v48 = vpop.f32.mrf.mxu1 }
 0x3f6   :  { %v3729_v18 = vadd.f32 1.0, %v4710_v9  ;;  %v4124_v15 = vmul.f32 -1.442695, %v3637_v42  ;;  %v4235_v29 = vadd.f32 %v4234_v48, %v4233_v33  ;;  %v3569_v25 = vadd.f32 %v4189_v56, %v5642_v51  ;;  %v4196_v37 = vpop.f32.mrf.mxu0 }
 0x3f7   :  { %v4236_v32 = vpop.f32.mrf.mxu1 }
 0x3f8   :  { %4719 = vrcp.f32 %v3729_v18  ;;  %v3642_v17 = vadd.f32 %v4235_v29, %v3545_v50  ;;  %v4192_v18 = vadd.f32 %v4191_v16, %v4190_v10 }
 0x3f9   :  { %v4712_v1 = vpop.eup %4711  ;;  %4721 = vpow2.f32 %v4124_v15  ;;  %v4237_v31 = vpop.f32.mrf.mxu1 }
 0x3fa   :  { %v3730_v40 = vadd.f32 1.0, %v4712_v1  ;;  %v4125_v28 = vmul.f32 -1.442695, %v3642_v17  ;;  %v4238_v2 = vadd.f32 %v4237_v31, %v4236_v32  ;;  %v4195_v31 = vadd.f32 %v4194_v47, %v4193_v59 }
 0x3fb   :  { %v4239_v43 = vpop.f32.mrf.mxu1 }
 0x3fc   :  { %4723 = vrcp.f32 %v3730_v40  ;;  %v3645_v57 = vadd.f32 %v4238_v2, %v3548_v24  ;;  %v3577_v49 = vadd.f32 %v4195_v31, %v5642_v51 }
 0x3fd   :  { %v4714_v30 = vpop.eup %4713  ;;  %4725 = vpow2.f32 %v4125_v28  ;;  %v4240_v63 = vpop.f32.mrf.mxu1  ;;  %v3572_v28 = vadd.f32 %v4192_v18, %v5642_v51 }
 0x3fe   :  { %v3731_v6 = vadd.f32 1.0, %v4714_v30  ;;  %v4126_v22 = vmul.f32 -1.442695, %v3645_v57  ;;  %v4241_v27 = vadd.f32 %v4240_v63, %v4239_v43  ;;  %v4197_v57 = vpop.f32.mrf.mxu0 }
 0x3ff   :  { %v4242_v55 = vpop.f32.mrf.mxu1 }
 0x400   :  { %4727 = vrcp.f32 %v3731_v6  ;;  %v3650_v39 = vadd.f32 %v4241_v27, %v3553_v34  ;;  %v4198_v27 = vadd.f32 %v4197_v57, %v4196_v37 }
 0x401   :  { %v4716_v36 = vpop.eup %4715  ;;  %4729 = vpow2.f32 %v4126_v22  ;;  %v4243_v8 = vpop.f32.mrf.mxu1 }
 0x402   :  { %v4718_v46 = vpop.eup %4717  ;;  %3776 = vst [vmem:[%s5738_s9] sm:$0xff] %v4716_v36  ;;  %v4127_v11 = vmul.f32 -1.442695, %v3650_v39  ;;  %v4244_v62 = vadd.f32 %v4243_v8, %v4242_v55 }
 0x403   :  { %v3732_v23 = vadd.f32 1.0, %v4718_v46  ;;  %v4245_v21 = vpop.f32.mrf.mxu1 }
 0x404   :  { %4731 = vpow2.f32 %v4127_v11  ;;  %v3653_v53 = vadd.f32 %v4244_v62, %v3556_v20  ;;  %v3580_v11 = vadd.f32 %v4198_v27, %v5642_v51 }
 0x405   :  { %v4720_v54 = vpop.eup %4719  ;;  %4733 = vrcp.f32 %v3732_v23  ;;  %v4246_v52 = vpop.f32.mrf.mxu1 }
 0x406   :  { %v4722_v44 = vpop.eup %4721  ;;  %3777 = vst [vmem:[%s5738_s9 + $0x8] sm:$0xff] %v4720_v54  ;;  %v4128_v13 = vmul.f32 -1.442695, %v3653_v53  ;;  %v4247_v3 = vadd.f32 %v4246_v52, %v4245_v21 }
 0x407   :  { %v3733_v60 = vadd.f32 1.0, %v4722_v44  ;;  %v4248_v41 = vpop.f32.mrf.mxu1 }
 0x408   :  { %4735 = vpow2.f32 %v4128_v13  ;;  %v3658_v58 = vadd.f32 %v4247_v3, %v3561_v7 }
 0x409   :  { %v4724_v14 = vpop.eup %4723  ;;  %4737 = vrcp.f32 %v3733_v60  ;;  %v4249_v61 = vpop.f32.mrf.mxu1 }
 0x40a   :  { %v4726_v26 = vpop.eup %4725  ;;  %3778 = vst [vmem:[%s5738_s9 + $0x10] sm:$0xff] %v4724_v14  ;;  %v4129_v12 = vmul.f32 -1.442695, %v3658_v58  ;;  %v4250_v38 = vadd.f32 %v4249_v61, %v4248_v41 }
 0x40b   :  { %v3734_v35 = vadd.f32 1.0, %v4726_v26  ;;  %v4251_v33 = vpop.f32.mrf.mxu1 }
 0x40c   :  { %4739 = vpow2.f32 %v4129_v12  ;;  %v3661_v42 = vadd.f32 %v4250_v38, %v3564_v0 }
 0x40d   :  { %v4728_v9 = vpop.eup %4727  ;;  %4741 = vrcp.f32 %v3734_v35  ;;  %v4252_v50 = vpop.f32.mrf.mxu1 }
 0x40e   :  { %v4730_v48 = vpop.eup %4729  ;;  %3779 = vst [vmem:[%s5738_s9 + $0x18] sm:$0xff] %v4728_v9  ;;  %v4130_v15 = vmul.f32 -1.442695, %v3661_v42  ;;  %v4253_v29 = vadd.f32 %v4252_v50, %v4251_v33 }
 0x40f   :  { %v3735_v32 = vadd.f32 1.0, %v4730_v48  ;;  %v4254_v17 = vpop.f32.mrf.mxu1 }
 0x410   :  { %4743 = vpow2.f32 %v4130_v15  ;;  %v3666_v1 = vadd.f32 %v4253_v29, %v3569_v25 }
 0x411   :  { %v4732_v5 = vpop.eup %4731  ;;  %4745 = vrcp.f32 %v3735_v32  ;;  %v4255_v24 = vpop.f32.mrf.mxu1 }
 0x412   :  { %v4734_v40 = vpop.eup %4733  ;;  %v3736_v2 = vadd.f32 1.0, %v4732_v5  ;;  %v4131_v19 = vmul.f32 -1.442695, %v3666_v1  ;;  %v4256_v43 = vadd.f32 %v4255_v24, %v4254_v17 }
 0x413   :  { %3780 = vst [vmem:[%s5738_s9 + $0x20] sm:$0xff] %v4734_v40  ;;  %v4257_v30 = vpop.f32.mrf.mxu1 }
 0x414   :  { %4747 = vrcp.f32 %v3736_v2  ;;  %v3669_v34 = vadd.f32 %v4256_v43, %v3572_v28 }
 0x415   :  { %v4736_v63 = vpop.eup %4735  ;;  %4749 = vpow2.f32 %v4131_v19  ;;  %v4258_v6 = vpop.f32.mrf.mxu1 }
 0x416   :  { %v4738_v22 = vpop.eup %4737  ;;  %v3737_v10 = vadd.f32 1.0, %v4736_v63  ;;  %v4132_v55 = vmul.f32 -1.442695, %v3669_v34  ;;  %v4259_v39 = vadd.f32 %v4258_v6, %v4257_v30 }
 0x417   :  { %3781 = vst [vmem:[%s5738_s9 + $0x28] sm:$0xff] %v4738_v22  ;;  %v4260_v36 = vpop.f32.mrf.mxu1 }
 0x418   :  { %4751 = vrcp.f32 %v3737_v10  ;;  %v3674_v8 = vadd.f32 %v4259_v39, %v3577_v49 }
 0x419   :  { %v4740_v46 = vpop.eup %4739  ;;  %4753 = vpow2.f32 %v4132_v55  ;;  %v4261_v20 = vpop.f32.mrf.mxu1 }
 0x41a   :  { %v4742_v4 = vpop.eup %4741  ;;  %v3738_v62 = vadd.f32 1.0, %v4740_v46  ;;  %v4133_v16 = vmul.f32 -1.442695, %v3674_v8  ;;  %v4262_v23 = vadd.f32 %v4261_v20, %v4260_v36 }
 0x41b   :  { %3782 = vst [vmem:[%s5738_s9 + $0x30] sm:$0xff] %v4742_v4 }
 0x41c   :  { %4755 = vrcp.f32 %v3738_v62  ;;  %v3677_v21 = vadd.f32 %v4262_v23, %v3580_v11 }
 0x41d   :  { %v4744_v53 = vpop.eup %4743  ;;  %4757 = vpow2.f32 %v4133_v16 }
 0x41e   :  { %v4746_v54 = vpop.eup %4745  ;;  %v3739_v52 = vadd.f32 1.0, %v4744_v53  ;;  %v4134_v44 = vmul.f32 -1.442695, %v3677_v21 }
 0x41f   :  { %3783 = vst [vmem:[%s5738_s9 + $0x38] sm:$0xff] %v4746_v54 }
 0x420   :  { %4759 = vrcp.f32 %v3739_v52 }
 0x421   :  { %v4748_v51 = vpop.eup %4747  ;;  %4761 = vpow2.f32 %v4134_v44 }
 0x422   :  { %v4750_v7 = vpop.eup %4749  ;;  %3784 = vst [vmem:[%s5738_s9 + $0x40] sm:$0xff] %v4748_v51 }
 0x423   :  { %v3740_v45 = vadd.f32 1.0, %v4750_v7 }
 0x425   :  { %v4752_v13 = vpop.eup %4751  ;;  %4763 = vrcp.f32 %v3740_v45 }
 0x426   :  { %v4754_v3 = vpop.eup %4753  ;;  %3785 = vst [vmem:[%s5738_s9 + $0x48] sm:$0xff] %v4752_v13 }
 0x427   :  { %v3741_v59 = vadd.f32 1.0, %v4754_v3 }
 0x429   :  { %v4756_v60 = vpop.eup %4755  ;;  %4765 = vrcp.f32 %v3741_v59 }
 0x42a   :  { %v4758_v41 = vpop.eup %4757  ;;  %3786 = vst [vmem:[%s5738_s9 + $0x50] sm:$0xff] %v4756_v60 }
 0x42b   :  { %v3742_v58 = vadd.f32 1.0, %v4758_v41 }
 0x42d   :  { %v4760_v14 = vpop.eup %4759  ;;  %4767 = vrcp.f32 %v3742_v58 }
 0x42e   :  { %v4762_v61 = vpop.eup %4761  ;;  %3787 = vst [vmem:[%s5738_s9 + $0x58] sm:$0xff] %v4760_v14 }
 0x42f   :  { %v3743_v26 = vadd.f32 1.0, %v4762_v61 }
 0x431   :  { %4769 = vrcp.f32 %v3743_v26 }
 0x432   :  { %v4764_v0 = vpop.eup %4763 }
 0x433   :  { %3788 = vst [vmem:[%s5738_s9 + $0x60] sm:$0xff] %v4764_v0 }
 0x436   :  { %v4766_v56 = vpop.eup %4765 }
 0x437   :  { %3789 = vst [vmem:[%s5738_s9 + $0x68] sm:$0xff] %v4766_v56 }
 0x43a   :  { %v4768_v12 = vpop.eup %4767 }
 0x43b   :  { %3790 = vst [vmem:[%s5738_s9 + $0x70] sm:$0xff] %v4768_v12 }
 0x43e   :  { %v4770_v38 = vpop.eup %4769 }
 0x43f   :  { %3791 = vst [vmem:[%s5738_s9 + $0x78] sm:$0xff] %v4770_v38 }
 0x440   :  { %3796 = vsyncpa [#allocation3], 1 }
 0x441   :  { %3797 = vsyncpa [#allocation5], 1 }

</bundles_post_ra>
